<compile_context>
chip_gen: v7x
topology: tpu7x:2x2x1
jax: 0.10.0
libtpu: 0.0.40
codegen_flags: <defaults>
</compile_context>

<pallas_src>
import functools

import jax
import jax.numpy as jnp
from jax import lax
from jax.experimental import pallas as pl
from jax.experimental.pallas import tpu as pltpu

EPS = 1e-5
LANE = 128


def _group_norm(x, gamma, beta, M, relu):
    """GroupNorm (+ optional fused ReLU) for one sample.

    x: (HW, Cp) f32; gamma/beta: (1, Cp) f32; M: (Cp, Cp) block-diagonal averaging
    matrix (zero rows/cols for pad channels).  All statistics stay in f32.
    """
    s = jnp.sum(x, axis=0, keepdims=True)                 # (1, Cp) per-channel sum
    ss = jnp.sum(x * x, axis=0, keepdims=True)            # (1, Cp) per-channel sum of squares
    stats = jnp.concatenate([s, ss], axis=0)              # (2, Cp)
    back = jnp.dot(stats, M, preferred_element_type=jnp.float32)   # (2, Cp): [mean, E[x^2]]
    mean_c = back[0:1, :]
    var_c = back[1:2, :] - mean_c * mean_c
    scale = lax.rsqrt(var_c + EPS) * gamma                 # (1, Cp); pad channels -> 0
    shift = beta - mean_c * scale                          # (1, Cp); pad channels -> 0
    y = x * scale + shift
    if relu:
        y = jnp.maximum(y, 0.0)
    return y


def odefunc_kernel(x_ref, g1w, g1b, w1_ref, g2w, g2b, w2_ref, g3w, g3b, m_ref,
                   out_ref, buf_ref, *, H, W, Cp):
    HW = H * W
    x = x_ref[0]                                           # (HW, Cp) f32
    M = m_ref[...]                                         # (Cp, Cp) f32

    # (HW, 1) column-index masks; broadcast over lanes inside jnp.where.
    col = lax.broadcasted_iota(jnp.int32, (HW, 1), 0) % W
    first_col = col == 0
    last_col = col == W - 1

    # Zero only the halo rows of the staging buffer (two aligned (W, 3*Cp) slabs).
    # Done once per grid step so the kernel stays correct for any grid partitioning.
    halo = jnp.zeros((W, 3 * Cp), jnp.bfloat16)
    buf_ref[0:W, :] = halo
    buf_ref[W + HW:2 * W + HW, :] = halo

    def conv3x3(a, w_ref):
        # All three dx slabs are stored at the SAME aligned row offset W; the +/-1 pixel
        # shift is a sublane roll of the value (row-wrap masked to zero), so every store
        # into the staging buffer is a full, unmasked, lane/sublane-aligned vst.
        a_m1 = jnp.where(first_col, 0.0, pltpu.roll(a, 1, axis=0))       # pixel at x-1
        a_p1 = jnp.where(last_col, 0.0, pltpu.roll(a, HW - 1, axis=0))   # pixel at x+1
        buf_ref[W:W + HW, 0:Cp] = a_m1.astype(jnp.bfloat16)              # dx = 0
        buf_ref[W:W + HW, Cp:2 * Cp] = a.astype(jnp.bfloat16)            # dx = 1
        buf_ref[W:W + HW, 2 * Cp:3 * Cp] = a_p1.astype(jnp.bfloat16)     # dx = 2
        # dy windows are aligned (HW, 3*Cp) row slices; accumulate in registers.
        part = jnp.dot(buf_ref[0:HW, :], w_ref[0],
                       preferred_element_type=jnp.float32)               # dy = 0
        part += jnp.dot(buf_ref[W:W + HW, :], w_ref[1],
                        preferred_element_type=jnp.float32)              # dy = 1
        part += jnp.dot(buf_ref[2 * W:2 * W + HW, :], w_ref[2],
                        preferred_element_type=jnp.float32)              # dy = 2
        return part

    out = _group_norm(x, g1w[...], g1b[...], M, relu=True)
    out = conv3x3(out, w1_ref)
    out = _group_norm(out, g2w[...], g2b[...], M, relu=True)
    out = conv3x3(out, w2_ref)
    out = _group_norm(out, g3w[...], g3b[...], M, relu=False)

    out_ref[0] = out.astype(out_ref.dtype)


def _pack_params(params, C, H, W):
    """Zero-pad channels to a multiple of 128 and pre-pack weights for the kernel."""
    G = min(32, C)
    cs = C // G
    HW = H * W
    Cp = ((C + LANE - 1) // LANE) * LANE
    pad = Cp - C

    def pack_w(w):
        # (Cout, Cin, 3, 3) -> zero-pad channels -> (dy, dx*Cp + cin, cout), bf16 for MXU.
        w = jnp.pad(jnp.asarray(w, jnp.float32), ((0, pad), (0, pad), (0, 0), (0, 0)))
        return jnp.transpose(w, (2, 3, 1, 0)).reshape(3, 3 * Cp, Cp).astype(jnp.bfloat16)

    def pack_gn(v):
        return jnp.pad(jnp.asarray(v, jnp.float32), (0, pad)).reshape(1, Cp)

    # Block-diagonal group-averaging matrix M = (assign @ assign.T) / (cs * HW).
    # Pad channels get all-zero rows/cols, so their GN stats are zero and real groups
    # are untouched (pad gamma = beta = 0 keeps them identically zero afterwards).
    assign = (jnp.arange(C)[:, None] // cs == jnp.arange(G)[None, :]).astype(jnp.float32)
    M = jnp.pad(assign @ assign.T, ((0, pad), (0, pad))) / float(cs * HW)

    return dict(
        Cp=Cp,
        gn1_w=pack_gn(params["gn1_w"]), gn1_b=pack_gn(params["gn1_b"]),
        gn2_w=pack_gn(params["gn2_w"]), gn2_b=pack_gn(params["gn2_b"]),
        gn3_w=pack_gn(params["gn3_w"]), gn3_b=pack_gn(params["gn3_b"]),
        conv1_w=pack_w(params["conv1_w"]), conv2_w=pack_w(params["conv2_w"]),
        M=M,
    )


def nchw_to_packed(x_nchw, Cp):
    N, C, H, W = x_nchw.shape
    x = jnp.transpose(x_nchw, (0, 2, 3, 1)).reshape(N, H * W, C).astype(jnp.float32)
    return jnp.pad(x, ((0, 0), (0, 0), (0, Cp - C)))


def packed_to_nchw(y, C, H, W):
    N = y.shape[0]
    return jnp.transpose(y[:, :, :C].reshape(N, H, W, C), (0, 3, 1, 2))


def ode_forward_packed(x_packed, pp, *, H, W):
    """Core Pallas call on channel-padded (N, H*W, Cp) activations.

    Keep the ODE state in this layout across integrator steps and convert to/from NCHW
    once at the integration boundary to avoid per-call transpose HBM traffic.
    """
    N, HW, Cp = x_packed.shape
    kernel = functools.partial(odefunc_kernel, H=H, W=W, Cp=Cp)

    act_spec = pl.BlockSpec((1, HW, Cp), lambda n: (n, 0, 0))
    gn_spec = pl.BlockSpec((1, Cp), lambda n: (0, 0))
    wk_spec = pl.BlockSpec((3, 3 * Cp, Cp), lambda n: (0, 0, 0))

    return pl.pallas_call(
        kernel,
        out_shape=jax.ShapeDtypeStruct((N, HW, Cp), jnp.float32),
        grid=(N,),
        in_specs=[act_spec,
                  gn_spec, gn_spec, wk_spec,
                  gn_spec, gn_spec, wk_spec,
                  gn_spec, gn_spec,
                  pl.BlockSpec((Cp, Cp), lambda n: (0, 0))],
        out_specs=act_spec,
        scratch_shapes=[pltpu.VMEM(((H + 2) * W, 3 * Cp), jnp.bfloat16)],  # conv staging
        compiler_params=pltpu.CompilerParams(
            dimension_semantics=("parallel",),
            vmem_limit_bytes=32 * 1024 * 1024),
    )(x_packed, pp["gn1_w"], pp["gn1_b"], pp["conv1_w"],
      pp["gn2_w"], pp["gn2_b"], pp["conv2_w"],
      pp["gn3_w"], pp["gn3_b"], pp["M"])


def ode_forward(t, x_nchw, params):
    """Pallas implementation of ODEfunc.forward(t, x); t is unused (matches PyTorch)."""
    del t  # the PyTorch module only bumps self.nfe; t does not enter the math
    N, C, H, W = x_nchw.shape
    pp = _pack_params(params, C, H, W)
    x_packed = nchw_to_packed(x_nchw, pp["Cp"])
    y = ode_forward_packed(x_packed, pp, H=H, W=W)
    return packed_to_nchw(y, C, H, W)


# ---------------- pure-JAX reference (same bf16-matmul policy) for verification ----------------
def _groupnorm_ref(x, gamma, beta, G, eps=EPS):
    N, C, H, W = x.shape
    xg = x.reshape(N, G, C // G, H, W)
    mean = xg.mean(axis=(2, 3, 4), keepdims=True)
    var = ((xg - mean) ** 2).mean(axis=(2, 3, 4), keepdims=True)
    xn = ((xg - mean) / jnp.sqrt(var + eps)).reshape(N, C, H, W)
    return xn * gamma[None, :, None, None] + beta[None, :, None, None]


def ode_forward_ref(t, x, params):
    del t
    C = x.shape[1]
    G = min(32, C)
    dn = ("NCHW", "OIHW", "NCHW")

    def conv(o, w):
        return lax.conv_general_dilated(
            o.astype(jnp.bfloat16), w.astype(jnp.bfloat16), (1, 1), "SAME",
            dimension_numbers=dn, preferred_element_type=jnp.float32)

    out = _groupnorm_ref(x, params["gn1_w"], params["gn1_b"], G)
    out = jnp.maximum(out, 0.0)
    out = conv(out, params["conv1_w"])
    out = _groupnorm_ref(out, params["gn2_w"], params["gn2_b"], G)
    out = jnp.maximum(out, 0.0)
    out = conv(out, params["conv2_w"])
    out = _groupnorm_ref(out, params["gn3_w"], params["gn3_b"], G)
    return out


if __name__ == "__main__":
    N, C, H, W = 2, 64, 16, 16   # dim=64 -> GroupNorm(32, 64): 32 groups of 2 channels
    key = jax.random.PRNGKey(0)
    ks = jax.random.split(key, 9)
    params = {
        "gn1_w": 1.0 + 0.1 * jax.random.normal(ks[0], (C,), jnp.float32),
        "gn1_b": 0.1 * jax.random.normal(ks[1], (C,), jnp.float32),
        "conv1_w": 0.05 * jax.random.normal(ks[2], (C, C, 3, 3), jnp.float32),
        "gn2_w": 1.0 + 0.1 * jax.random.normal(ks[3], (C,), jnp.float32),
        "gn2_b": 0.1 * jax.random.normal(ks[4], (C,), jnp.float32),
        "conv2_w": 0.05 * jax.random.normal(ks[5], (C, C, 3, 3), jnp.float32),
        "gn3_w": 1.0 + 0.1 * jax.random.normal(ks[6], (C,), jnp.float32),
        "gn3_b": 0.1 * jax.random.normal(ks[7], (C,), jnp.float32),
    }
    x = jax.random.normal(ks[8], (N, C, H, W), jnp.float32)
    t = jnp.float32(0.0)

    out = jax.block_until_ready(ode_forward(t, x, params))
    ref = ode_forward_ref(t, x, params)

    assert out.shape == (N, C, H, W), out.shape
    max_err = float(jnp.max(jnp.abs(out - ref)))
    assert max_err < 2e-2, f"max abs error too large: {max_err}"
    print("KERNEL_OK")
</pallas_src>

<mosaic_0001>
module attributes {stable_mosaic.version = 11 : i64} {
  func.func @odefunc_kernel(%arg0: i32, %arg1: memref<1x256x128xf32, #tpu.memory_space<vmem>>, %arg2: memref<1x128xf32, #tpu.memory_space<vmem>>, %arg3: memref<1x128xf32, #tpu.memory_space<vmem>>, %arg4: memref<3x384x128xbf16, #tpu.memory_space<vmem>>, %arg5: memref<1x128xf32, #tpu.memory_space<vmem>>, %arg6: memref<1x128xf32, #tpu.memory_space<vmem>>, %arg7: memref<3x384x128xbf16, #tpu.memory_space<vmem>>, %arg8: memref<1x128xf32, #tpu.memory_space<vmem>>, %arg9: memref<1x128xf32, #tpu.memory_space<vmem>>, %arg10: memref<128x128xf32, #tpu.memory_space<vmem>>, %arg11: memref<1x256x128xf32, #tpu.memory_space<vmem>>, %arg12: memref<288x384xbf16, #tpu.memory_space<vmem>>) attributes {dimension_semantics = [#tpu.dimension_semantics<parallel>], iteration_bounds = array<i64: 2>, scalar_prefetch = 0 : i64, scratch_operands = 1 : i64, tpu.core_type = #tpu.core_type<tc>, window_params = [{transform_indices = @transform_0, window_bounds = array<i64: 1, 256, 128>}, {pipeline_mode = #tpu.pipeline_mode<synchronous>, transform_indices = @transform_1, window_bounds = array<i64: 1, 128>}, {pipeline_mode = #tpu.pipeline_mode<synchronous>, transform_indices = @transform_2, window_bounds = array<i64: 1, 128>}, {pipeline_mode = #tpu.pipeline_mode<synchronous>, transform_indices = @transform_3, window_bounds = array<i64: 3, 384, 128>}, {pipeline_mode = #tpu.pipeline_mode<synchronous>, transform_indices = @transform_4, window_bounds = array<i64: 1, 128>}, {pipeline_mode = #tpu.pipeline_mode<synchronous>, transform_indices = @transform_5, window_bounds = array<i64: 1, 128>}, {pipeline_mode = #tpu.pipeline_mode<synchronous>, transform_indices = @transform_6, window_bounds = array<i64: 3, 384, 128>}, {pipeline_mode = #tpu.pipeline_mode<synchronous>, transform_indices = @transform_7, window_bounds = array<i64: 1, 128>}, {pipeline_mode = #tpu.pipeline_mode<synchronous>, transform_indices = @transform_8, window_bounds = array<i64: 1, 128>}, {pipeline_mode = #tpu.pipeline_mode<synchronous>, transform_indices = @transform_9, window_bounds = array<i64: 128, 128>}, {transform_indices = @transform_10, window_bounds = array<i64: 1, 256, 128>}]} {
    %c0 = arith.constant 0 : index
    %c0_0 = arith.constant 0 : index
    %c0_1 = arith.constant 0 : index
    %0 = vector.load %arg1[%c0, %c0_0, %c0_1] : memref<1x256x128xf32, #tpu.memory_space<vmem>>, vector<1x256x128xf32>
    %1 = vector.shape_cast %0 : vector<1x256x128xf32> to vector<256x128xf32>
    %c0_2 = arith.constant 0 : index
    %c0_3 = arith.constant 0 : index
    %2 = vector.load %arg10[%c0_2, %c0_3] : memref<128x128xf32, #tpu.memory_space<vmem>>, vector<128x128xf32>
    %3 = tpu.iota {dimensions = array<i32: 0>} : vector<256x1xi32>
    %c16_i32 = arith.constant 16 : i32
    %c0_i32 = arith.constant 0 : i32
    %4 = arith.cmpi eq, %c16_i32, %c0_i32 : i32
    %c1_i32 = arith.constant 1 : i32
    %5 = arith.select %4, %c1_i32, %c16_i32 : i32
    %6 = vector.broadcast %5 : i32 to vector<256x1xi32>
    %7 = arith.remsi %3, %6 : vector<256x1xi32>
    %c0_i32_4 = arith.constant 0 : i32
    %8 = vector.broadcast %c0_i32_4 : i32 to vector<256x1xi32>
    %9 = arith.cmpi ne, %7, %8 : vector<256x1xi32>
    %c0_i32_5 = arith.constant 0 : i32
    %10 = vector.broadcast %c0_i32_5 : i32 to vector<256x1xi32>
    %11 = arith.cmpi slt, %7, %10 : vector<256x1xi32>
    %c0_i32_6 = arith.constant 0 : i32
    %12 = arith.cmpi slt, %5, %c0_i32_6 : i32
    %13 = vector.broadcast %12 : i1 to vector<256x1xi1>
    %14 = vector.broadcast %13 : vector<256x1xi1> to vector<256x1xi1>
    %15 = arith.xori %11, %14 : vector<256x1xi1>
    %16 = arith.andi %15, %9 : vector<256x1xi1>
    %17 = vector.broadcast %5 : i32 to vector<256x1xi32>
    %18 = arith.addi %7, %17 : vector<256x1xi32>
    %19 = arith.select %16, %18, %7 : vector<256x1xi1>, vector<256x1xi32>
    %c0_i32_7 = arith.constant 0 : i32
    %20 = vector.broadcast %c0_i32_7 : i32 to vector<256x1xi32>
    %21 = arith.cmpi eq, %19, %20 : vector<256x1xi32>
    %c15_i32 = arith.constant 15 : i32
    %22 = vector.broadcast %c15_i32 : i32 to vector<256x1xi32>
    %23 = arith.cmpi eq, %19, %22 : vector<256x1xi32>
    %cst = arith.constant 0.000000e+00 : bf16
    %24 = vector.broadcast %cst : bf16 to vector<16x384xbf16>
    %c0_8 = arith.constant 0 : index
    %c0_9 = arith.constant 0 : index
    %25 = vector.load %arg12[%c0_8, %c0_9] : memref<288x384xbf16, #tpu.memory_space<vmem>>, vector<16x384xbf16>
    tpu.vector_store %arg12[%c0_8, %c0_9], %24 {strides = array<i32>} : memref<288x384xbf16, #tpu.memory_space<vmem>>, vector<16x384xbf16>,
    %c272 = arith.constant 272 : index
    %c0_10 = arith.constant 0 : index
    %26 = vector.load %arg12[%c272, %c0_10] : memref<288x384xbf16, #tpu.memory_space<vmem>>, vector<16x384xbf16>
    tpu.vector_store %arg12[%c272, %c0_10], %24 {strides = array<i32>} : memref<288x384xbf16, #tpu.memory_space<vmem>>, vector<16x384xbf16>,
    %c0_11 = arith.constant 0 : index
    %c0_12 = arith.constant 0 : index
    %27 = vector.load %arg2[%c0_11, %c0_12] : memref<1x128xf32, #tpu.memory_space<vmem>>, vector<1x128xf32>
    %c0_13 = arith.constant 0 : index
    %c0_14 = arith.constant 0 : index
    %28 = vector.load %arg3[%c0_13, %c0_14] : memref<1x128xf32, #tpu.memory_space<vmem>>, vector<1x128xf32>
    %cst_15 = arith.constant dense<0.000000e+00> : vector<128xf32>
    %29 = vector.multi_reduction <add>, %1, %cst_15 [0] : vector<256x128xf32> to vector<128xf32>
    %30 = vector.shape_cast %29 : vector<128xf32> to vector<1x128xf32>
    %31 = arith.mulf %1, %1 : vector<256x128xf32>
    %cst_16 = arith.constant dense<0.000000e+00> : vector<128xf32>
    %32 = vector.multi_reduction <add>, %31, %cst_16 [0] : vector<256x128xf32> to vector<128xf32>
    %33 = vector.shape_cast %32 : vector<128xf32> to vector<1x128xf32>
    %34 = tpu.concatenate %30, %33 in 0 : vector<1x128xf32>, vector<1x128xf32> -> vector<2x128xf32>
    %cst_17 = arith.constant dense<0.000000e+00> : vector<2x128xf32>
    %35 = tpu.matmul %34, %2, %cst_17 {dimension_numbers = #tpu.dot_dimension_numbers<[1], [0], [0], [1], [0, 0, 1, 1], [], []>} : vector<2x128xf32>, vector<128x128xf32>, vector<2x128xf32> -> vector<2x128xf32>
    %36 = vector.extract_strided_slice %35 {offsets = [0, 0], sizes = [1, 128], strides = [1, 1]} : vector<2x128xf32> to vector<1x128xf32>
    %37 = vector.extract_strided_slice %35 {offsets = [1, 0], sizes = [1, 128], strides = [1, 1]} : vector<2x128xf32> to vector<1x128xf32>
    %38 = arith.mulf %36, %36 : vector<1x128xf32>
    %39 = arith.subf %37, %38 : vector<1x128xf32>
    %cst_18 = arith.constant 9.99999974E-6 : f32
    %40 = vector.broadcast %cst_18 : f32 to vector<1x128xf32>
    %41 = arith.addf %39, %40 : vector<1x128xf32>
    %42 = math.rsqrt %41 : vector<1x128xf32>
    %43 = arith.mulf %42, %27 : vector<1x128xf32>
    %44 = arith.mulf %36, %43 : vector<1x128xf32>
    %45 = arith.subf %28, %44 : vector<1x128xf32>
    %46 = vector.broadcast %43 : vector<1x128xf32> to vector<256x128xf32>
    %47 = arith.mulf %1, %46 : vector<256x128xf32>
    %48 = vector.broadcast %45 : vector<1x128xf32> to vector<256x128xf32>
    %49 = arith.addf %47, %48 : vector<256x128xf32>
    %cst_19 = arith.constant 0.000000e+00 : f32
    %50 = vector.broadcast %cst_19 : f32 to vector<256x128xf32>
    %51 = arith.maximumf %49, %50 : vector<256x128xf32>
    %c1_i32_20 = arith.constant 1 : i32
    %52 = tpu.dynamic_rotate %51 by %c1_i32_20 dim 0 : vector<256x128xf32>, i32 -> vector<256x128xf32>
    %cst_21 = arith.constant 0.000000e+00 : f32
    %53 = vector.shape_cast %21 : vector<256x1xi1> to vector<256x1xi1>
    %54 = vector.broadcast %53 : vector<256x1xi1> to vector<256x128xi1>
    %55 = vector.broadcast %cst_21 : f32 to vector<256x128xf32>
    %56 = arith.select %54, %55, %52 : vector<256x128xi1>, vector<256x128xf32>
    %c255_i32 = arith.constant 255 : i32
    %57 = tpu.dynamic_rotate %51 by %c255_i32 dim 0 : vector<256x128xf32>, i32 -> vector<256x128xf32>
    %cst_22 = arith.constant 0.000000e+00 : f32
    %58 = vector.shape_cast %23 : vector<256x1xi1> to vector<256x1xi1>
    %59 = vector.broadcast %58 : vector<256x1xi1> to vector<256x128xi1>
    %60 = vector.broadcast %cst_22 : f32 to vector<256x128xf32>
    %61 = arith.select %59, %60, %57 : vector<256x128xi1>, vector<256x128xf32>
    %62 = arith.truncf %56 : vector<256x128xf32> to vector<256x128xbf16>
    %c16 = arith.constant 16 : index
    %c0_23 = arith.constant 0 : index
    %63 = vector.load %arg12[%c16, %c0_23] : memref<288x384xbf16, #tpu.memory_space<vmem>>, vector<256x128xbf16>
    tpu.vector_store %arg12[%c16, %c0_23], %62 {strides = array<i32>} : memref<288x384xbf16, #tpu.memory_space<vmem>>, vector<256x128xbf16>,
    %64 = arith.truncf %51 : vector<256x128xf32> to vector<256x128xbf16>
    %c16_24 = arith.constant 16 : index
    %c128 = arith.constant 128 : index
    %65 = vector.load %arg12[%c16_24, %c128] : memref<288x384xbf16, #tpu.memory_space<vmem>>, vector<256x128xbf16>
    tpu.vector_store %arg12[%c16_24, %c128], %64 {strides = array<i32>} : memref<288x384xbf16, #tpu.memory_space<vmem>>, vector<256x128xbf16>,
    %66 = arith.truncf %61 : vector<256x128xf32> to vector<256x128xbf16>
    %c16_25 = arith.constant 16 : index
    %c256 = arith.constant 256 : index
    %67 = vector.load %arg12[%c16_25, %c256] : memref<288x384xbf16, #tpu.memory_space<vmem>>, vector<256x128xbf16>
    tpu.vector_store %arg12[%c16_25, %c256], %66 {strides = array<i32>} : memref<288x384xbf16, #tpu.memory_space<vmem>>, vector<256x128xbf16>,
    %c0_26 = arith.constant 0 : index
    %c0_27 = arith.constant 0 : index
    %68 = vector.load %arg12[%c0_26, %c0_27] : memref<288x384xbf16, #tpu.memory_space<vmem>>, vector<256x384xbf16>
    %c0_28 = arith.constant 0 : index
    %c0_29 = arith.constant 0 : index
    %c0_30 = arith.constant 0 : index
    %69 = vector.load %arg4[%c0_28, %c0_29, %c0_30] : memref<3x384x128xbf16, #tpu.memory_space<vmem>>, vector<1x384x128xbf16>
    %70 = vector.shape_cast %69 : vector<1x384x128xbf16> to vector<384x128xbf16>
    %cst_31 = arith.constant dense<0.000000e+00> : vector<256x128xf32>
    %71 = tpu.matmul %68, %70, %cst_31 {dimension_numbers = #tpu.dot_dimension_numbers<[1], [0], [0], [1], [0, 0, 1, 1], [], []>} : vector<256x384xbf16>, vector<384x128xbf16>, vector<256x128xf32> -> vector<256x128xf32>
    %c16_32 = arith.constant 16 : index
    %c0_33 = arith.constant 0 : index
    %72 = vector.load %arg12[%c16_32, %c0_33] : memref<288x384xbf16, #tpu.memory_space<vmem>>, vector<256x384xbf16>
    %c1 = arith.constant 1 : index
    %c0_34 = arith.constant 0 : index
    %c0_35 = arith.constant 0 : index
    %73 = vector.load %arg4[%c1, %c0_34, %c0_35] : memref<3x384x128xbf16, #tpu.memory_space<vmem>>, vector<1x384x128xbf16>
    %74 = vector.shape_cast %73 : vector<1x384x128xbf16> to vector<384x128xbf16>
    %cst_36 = arith.constant dense<0.000000e+00> : vector<256x128xf32>
    %75 = tpu.matmul %72, %74, %cst_36 {dimension_numbers = #tpu.dot_dimension_numbers<[1], [0], [0], [1], [0, 0, 1, 1], [], []>} : vector<256x384xbf16>, vector<384x128xbf16>, vector<256x128xf32> -> vector<256x128xf32>
    %76 = arith.addf %71, %75 : vector<256x128xf32>
    %c32 = arith.constant 32 : index
    %c0_37 = arith.constant 0 : index
    %77 = vector.load %arg12[%c32, %c0_37] : memref<288x384xbf16, #tpu.memory_space<vmem>>, vector<256x384xbf16>
    %c2 = arith.constant 2 : index
    %c0_38 = arith.constant 0 : index
    %c0_39 = arith.constant 0 : index
    %78 = vector.load %arg4[%c2, %c0_38, %c0_39] : memref<3x384x128xbf16, #tpu.memory_space<vmem>>, vector<1x384x128xbf16>
    %79 = vector.shape_cast %78 : vector<1x384x128xbf16> to vector<384x128xbf16>
    %cst_40 = arith.constant dense<0.000000e+00> : vector<256x128xf32>
    %80 = tpu.matmul %77, %79, %cst_40 {dimension_numbers = #tpu.dot_dimension_numbers<[1], [0], [0], [1], [0, 0, 1, 1], [], []>} : vector<256x384xbf16>, vector<384x128xbf16>, vector<256x128xf32> -> vector<256x128xf32>
    %81 = arith.addf %76, %80 : vector<256x128xf32>
    %c0_41 = arith.constant 0 : index
    %c0_42 = arith.constant 0 : index
    %82 = vector.load %arg5[%c0_41, %c0_42] : memref<1x128xf32, #tpu.memory_space<vmem>>, vector<1x128xf32>
    %c0_43 = arith.constant 0 : index
    %c0_44 = arith.constant 0 : index
    %83 = vector.load %arg6[%c0_43, %c0_44] : memref<1x128xf32, #tpu.memory_space<vmem>>, vector<1x128xf32>
    %cst_45 = arith.constant dense<0.000000e+00> : vector<128xf32>
    %84 = vector.multi_reduction <add>, %81, %cst_45 [0] : vector<256x128xf32> to vector<128xf32>
    %85 = vector.shape_cast %84 : vector<128xf32> to vector<1x128xf32>
    %86 = arith.mulf %81, %81 : vector<256x128xf32>
    %cst_46 = arith.constant dense<0.000000e+00> : vector<128xf32>
    %87 = vector.multi_reduction <add>, %86, %cst_46 [0] : vector<256x128xf32> to vector<128xf32>
    %88 = vector.shape_cast %87 : vector<128xf32> to vector<1x128xf32>
    %89 = tpu.concatenate %85, %88 in 0 : vector<1x128xf32>, vector<1x128xf32> -> vector<2x128xf32>
    %cst_47 = arith.constant dense<0.000000e+00> : vector<2x128xf32>
    %90 = tpu.matmul %89, %2, %cst_47 {dimension_numbers = #tpu.dot_dimension_numbers<[1], [0], [0], [1], [0, 0, 1, 1], [], []>} : vector<2x128xf32>, vector<128x128xf32>, vector<2x128xf32> -> vector<2x128xf32>
    %91 = vector.extract_strided_slice %90 {offsets = [0, 0], sizes = [1, 128], strides = [1, 1]} : vector<2x128xf32> to vector<1x128xf32>
    %92 = vector.extract_strided_slice %90 {offsets = [1, 0], sizes = [1, 128], strides = [1, 1]} : vector<2x128xf32> to vector<1x128xf32>
    %93 = arith.mulf %91, %91 : vector<1x128xf32>
    %94 = arith.subf %92, %93 : vector<1x128xf32>
    %cst_48 = arith.constant 9.99999974E-6 : f32
    %95 = vector.broadcast %cst_48 : f32 to vector<1x128xf32>
    %96 = arith.addf %94, %95 : vector<1x128xf32>
    %97 = math.rsqrt %96 : vector<1x128xf32>
    %98 = arith.mulf %97, %82 : vector<1x128xf32>
    %99 = arith.mulf %91, %98 : vector<1x128xf32>
    %100 = arith.subf %83, %99 : vector<1x128xf32>
    %101 = vector.broadcast %98 : vector<1x128xf32> to vector<256x128xf32>
    %102 = arith.mulf %81, %101 : vector<256x128xf32>
    %103 = vector.broadcast %100 : vector<1x128xf32> to vector<256x128xf32>
    %104 = arith.addf %102, %103 : vector<256x128xf32>
    %cst_49 = arith.constant 0.000000e+00 : f32
    %105 = vector.broadcast %cst_49 : f32 to vector<256x128xf32>
    %106 = arith.maximumf %104, %105 : vector<256x128xf32>
    %c1_i32_50 = arith.constant 1 : i32
    %107 = tpu.dynamic_rotate %106 by %c1_i32_50 dim 0 : vector<256x128xf32>, i32 -> vector<256x128xf32>
    %cst_51 = arith.constant 0.000000e+00 : f32
    %108 = vector.shape_cast %21 : vector<256x1xi1> to vector<256x1xi1>
    %109 = vector.broadcast %108 : vector<256x1xi1> to vector<256x128xi1>
    %110 = vector.broadcast %cst_51 : f32 to vector<256x128xf32>
    %111 = arith.select %109, %110, %107 : vector<256x128xi1>, vector<256x128xf32>
    %c255_i32_52 = arith.constant 255 : i32
    %112 = tpu.dynamic_rotate %106 by %c255_i32_52 dim 0 : vector<256x128xf32>, i32 -> vector<256x128xf32>
    %cst_53 = arith.constant 0.000000e+00 : f32
    %113 = vector.shape_cast %23 : vector<256x1xi1> to vector<256x1xi1>
    %114 = vector.broadcast %113 : vector<256x1xi1> to vector<256x128xi1>
    %115 = vector.broadcast %cst_53 : f32 to vector<256x128xf32>
    %116 = arith.select %114, %115, %112 : vector<256x128xi1>, vector<256x128xf32>
    %117 = arith.truncf %111 : vector<256x128xf32> to vector<256x128xbf16>
    %c16_54 = arith.constant 16 : index
    %c0_55 = arith.constant 0 : index
    %118 = vector.load %arg12[%c16_54, %c0_55] : memref<288x384xbf16, #tpu.memory_space<vmem>>, vector<256x128xbf16>
    tpu.vector_store %arg12[%c16_54, %c0_55], %117 {strides = array<i32>} : memref<288x384xbf16, #tpu.memory_space<vmem>>, vector<256x128xbf16>,
    %119 = arith.truncf %106 : vector<256x128xf32> to vector<256x128xbf16>
    %c16_56 = arith.constant 16 : index
    %c128_57 = arith.constant 128 : index
    %120 = vector.load %arg12[%c16_56, %c128_57] : memref<288x384xbf16, #tpu.memory_space<vmem>>, vector<256x128xbf16>
    tpu.vector_store %arg12[%c16_56, %c128_57], %119 {strides = array<i32>} : memref<288x384xbf16, #tpu.memory_space<vmem>>, vector<256x128xbf16>,
    %121 = arith.truncf %116 : vector<256x128xf32> to vector<256x128xbf16>
    %c16_58 = arith.constant 16 : index
    %c256_59 = arith.constant 256 : index
    %122 = vector.load %arg12[%c16_58, %c256_59] : memref<288x384xbf16, #tpu.memory_space<vmem>>, vector<256x128xbf16>
    tpu.vector_store %arg12[%c16_58, %c256_59], %121 {strides = array<i32>} : memref<288x384xbf16, #tpu.memory_space<vmem>>, vector<256x128xbf16>,
    %c0_60 = arith.constant 0 : index
    %c0_61 = arith.constant 0 : index
    %123 = vector.load %arg12[%c0_60, %c0_61] : memref<288x384xbf16, #tpu.memory_space<vmem>>, vector<256x384xbf16>
    %c0_62 = arith.constant 0 : index
    %c0_63 = arith.constant 0 : index
    %c0_64 = arith.constant 0 : index
    %124 = vector.load %arg7[%c0_62, %c0_63, %c0_64] : memref<3x384x128xbf16, #tpu.memory_space<vmem>>, vector<1x384x128xbf16>
    %125 = vector.shape_cast %124 : vector<1x384x128xbf16> to vector<384x128xbf16>
    %cst_65 = arith.constant dense<0.000000e+00> : vector<256x128xf32>
    %126 = tpu.matmul %123, %125, %cst_65 {dimension_numbers = #tpu.dot_dimension_numbers<[1], [0], [0], [1], [0, 0, 1, 1], [], []>} : vector<256x384xbf16>, vector<384x128xbf16>, vector<256x128xf32> -> vector<256x128xf32>
    %c16_66 = arith.constant 16 : index
    %c0_67 = arith.constant 0 : index
    %127 = vector.load %arg12[%c16_66, %c0_67] : memref<288x384xbf16, #tpu.memory_space<vmem>>, vector<256x384xbf16>
    %c1_68 = arith.constant 1 : index
    %c0_69 = arith.constant 0 : index
    %c0_70 = arith.constant 0 : index
    %128 = vector.load %arg7[%c1_68, %c0_69, %c0_70] : memref<3x384x128xbf16, #tpu.memory_space<vmem>>, vector<1x384x128xbf16>
    %129 = vector.shape_cast %128 : vector<1x384x128xbf16> to vector<384x128xbf16>
    %cst_71 = arith.constant dense<0.000000e+00> : vector<256x128xf32>
    %130 = tpu.matmul %127, %129, %cst_71 {dimension_numbers = #tpu.dot_dimension_numbers<[1], [0], [0], [1], [0, 0, 1, 1], [], []>} : vector<256x384xbf16>, vector<384x128xbf16>, vector<256x128xf32> -> vector<256x128xf32>
    %131 = arith.addf %126, %130 : vector<256x128xf32>
    %c32_72 = arith.constant 32 : index
    %c0_73 = arith.constant 0 : index
    %132 = vector.load %arg12[%c32_72, %c0_73] : memref<288x384xbf16, #tpu.memory_space<vmem>>, vector<256x384xbf16>
    %c2_74 = arith.constant 2 : index
    %c0_75 = arith.constant 0 : index
    %c0_76 = arith.constant 0 : index
    %133 = vector.load %arg7[%c2_74, %c0_75, %c0_76] : memref<3x384x128xbf16, #tpu.memory_space<vmem>>, vector<1x384x128xbf16>
    %134 = vector.shape_cast %133 : vector<1x384x128xbf16> to vector<384x128xbf16>
    %cst_77 = arith.constant dense<0.000000e+00> : vector<256x128xf32>
    %135 = tpu.matmul %132, %134, %cst_77 {dimension_numbers = #tpu.dot_dimension_numbers<[1], [0], [0], [1], [0, 0, 1, 1], [], []>} : vector<256x384xbf16>, vector<384x128xbf16>, vector<256x128xf32> -> vector<256x128xf32>
    %136 = arith.addf %131, %135 : vector<256x128xf32>
    %c0_78 = arith.constant 0 : index
    %c0_79 = arith.constant 0 : index
    %137 = vector.load %arg8[%c0_78, %c0_79] : memref<1x128xf32, #tpu.memory_space<vmem>>, vector<1x128xf32>
    %c0_80 = arith.constant 0 : index
    %c0_81 = arith.constant 0 : index
    %138 = vector.load %arg9[%c0_80, %c0_81] : memref<1x128xf32, #tpu.memory_space<vmem>>, vector<1x128xf32>
    %cst_82 = arith.constant dense<0.000000e+00> : vector<128xf32>
    %139 = vector.multi_reduction <add>, %136, %cst_82 [0] : vector<256x128xf32> to vector<128xf32>
    %140 = vector.shape_cast %139 : vector<128xf32> to vector<1x128xf32>
    %141 = arith.mulf %136, %136 : vector<256x128xf32>
    %cst_83 = arith.constant dense<0.000000e+00> : vector<128xf32>
    %142 = vector.multi_reduction <add>, %141, %cst_83 [0] : vector<256x128xf32> to vector<128xf32>
    %143 = vector.shape_cast %142 : vector<128xf32> to vector<1x128xf32>
    %144 = tpu.concatenate %140, %143 in 0 : vector<1x128xf32>, vector<1x128xf32> -> vector<2x128xf32>
    %cst_84 = arith.constant dense<0.000000e+00> : vector<2x128xf32>
    %145 = tpu.matmul %144, %2, %cst_84 {dimension_numbers = #tpu.dot_dimension_numbers<[1], [0], [0], [1], [0, 0, 1, 1], [], []>} : vector<2x128xf32>, vector<128x128xf32>, vector<2x128xf32> -> vector<2x128xf32>
    %146 = vector.extract_strided_slice %145 {offsets = [0, 0], sizes = [1, 128], strides = [1, 1]} : vector<2x128xf32> to vector<1x128xf32>
    %147 = vector.extract_strided_slice %145 {offsets = [1, 0], sizes = [1, 128], strides = [1, 1]} : vector<2x128xf32> to vector<1x128xf32>
    %148 = arith.mulf %146, %146 : vector<1x128xf32>
    %149 = arith.subf %147, %148 : vector<1x128xf32>
    %cst_85 = arith.constant 9.99999974E-6 : f32
    %150 = vector.broadcast %cst_85 : f32 to vector<1x128xf32>
    %151 = arith.addf %149, %150 : vector<1x128xf32>
    %152 = math.rsqrt %151 : vector<1x128xf32>
    %153 = arith.mulf %152, %137 : vector<1x128xf32>
    %154 = arith.mulf %146, %153 : vector<1x128xf32>
    %155 = arith.subf %138, %154 : vector<1x128xf32>
    %156 = vector.broadcast %153 : vector<1x128xf32> to vector<256x128xf32>
    %157 = arith.mulf %136, %156 : vector<256x128xf32>
    %158 = vector.broadcast %155 : vector<1x128xf32> to vector<256x128xf32>
    %159 = arith.addf %157, %158 : vector<256x128xf32>
    %c0_86 = arith.constant 0 : index
    %c0_87 = arith.constant 0 : index
    %c0_88 = arith.constant 0 : index
    %160 = vector.load %arg11[%c0_86, %c0_87, %c0_88] : memref<1x256x128xf32, #tpu.memory_space<vmem>>, vector<1x256x128xf32>
    %161 = vector.shape_cast %160 : vector<1x256x128xf32> to vector<256x128xf32>
    %162 = vector.shape_cast %159 : vector<256x128xf32> to vector<1x256x128xf32>
    tpu.vector_store %arg11[%c0_86, %c0_87, %c0_88], %162 {strides = array<i32>} : memref<1x256x128xf32, #tpu.memory_space<vmem>>, vector<1x256x128xf32>,
    return
  }
  func.func @transform_0(%arg0: i32) -> (i32, i32, i32) {
    %c0_i32 = arith.constant 0 : i32
    %c0_i32_0 = arith.constant 0 : i32
    %c0_i32_1 = arith.constant 0 : i32
    return %arg0, %c0_i32, %c0_i32_0 : i32, i32, i32
  }
  func.func @transform_1(%arg0: i32) -> (i32, i32) {
    %c0_i32 = arith.constant 0 : i32
    %c0_i32_0 = arith.constant 0 : i32
    %c0_i32_1 = arith.constant 0 : i32
    return %c0_i32, %c0_i32_0 : i32, i32
  }
  func.func @transform_2(%arg0: i32) -> (i32, i32) {
    %c0_i32 = arith.constant 0 : i32
    %c0_i32_0 = arith.constant 0 : i32
    %c0_i32_1 = arith.constant 0 : i32
    return %c0_i32, %c0_i32_0 : i32, i32
  }
  func.func @transform_3(%arg0: i32) -> (i32, i32, i32) {
    %c0_i32 = arith.constant 0 : i32
    %c0_i32_0 = arith.constant 0 : i32
    %c0_i32_1 = arith.constant 0 : i32
    %c0_i32_2 = arith.constant 0 : i32
    return %c0_i32, %c0_i32_0, %c0_i32_1 : i32, i32, i32
  }
  func.func @transform_4(%arg0: i32) -> (i32, i32) {
    %c0_i32 = arith.constant 0 : i32
    %c0_i32_0 = arith.constant 0 : i32
    %c0_i32_1 = arith.constant 0 : i32
    return %c0_i32, %c0_i32_0 : i32, i32
  }
  func.func @transform_5(%arg0: i32) -> (i32, i32) {
    %c0_i32 = arith.constant 0 : i32
    %c0_i32_0 = arith.constant 0 : i32
    %c0_i32_1 = arith.constant 0 : i32
    return %c0_i32, %c0_i32_0 : i32, i32
  }
  func.func @transform_6(%arg0: i32) -> (i32, i32, i32) {
    %c0_i32 = arith.constant 0 : i32
    %c0_i32_0 = arith.constant 0 : i32
    %c0_i32_1 = arith.constant 0 : i32
    %c0_i32_2 = arith.constant 0 : i32
    return %c0_i32, %c0_i32_0, %c0_i32_1 : i32, i32, i32
  }
  func.func @transform_7(%arg0: i32) -> (i32, i32) {
    %c0_i32 = arith.constant 0 : i32
    %c0_i32_0 = arith.constant 0 : i32
    %c0_i32_1 = arith.constant 0 : i32
    return %c0_i32, %c0_i32_0 : i32, i32
  }
  func.func @transform_8(%arg0: i32) -> (i32, i32) {
    %c0_i32 = arith.constant 0 : i32
    %c0_i32_0 = arith.constant 0 : i32
    %c0_i32_1 = arith.constant 0 : i32
    return %c0_i32, %c0_i32_0 : i32, i32
  }
  func.func @transform_9(%arg0: i32) -> (i32, i32) {
    %c0_i32 = arith.constant 0 : i32
    %c0_i32_0 = arith.constant 0 : i32
    %c0_i32_1 = arith.constant 0 : i32
    return %c0_i32, %c0_i32_0 : i32, i32
  }
  func.func @transform_10(%arg0: i32) -> (i32, i32, i32) {
    %c0_i32 = arith.constant 0 : i32
    %c0_i32_0 = arith.constant 0 : i32
    %c0_i32_1 = arith.constant 0 : i32
    return %arg0, %c0_i32, %c0_i32_0 : i32, i32, i32
  }
}

</mosaic_0001>

<bundles_post_ra>
// kernel: tpu_custom_call.1
= control target key start
LH: loop header
LB: loop body
LE: loop exit
PB: predicated region body
PF: predicated region fallthrough
CT: control target
= control target key end

     0   :  { %s12752_s0 = inlined_call_operand.hbm [shape: f32[2,256,128], index: 0, kind: input, shape index: {}]   ;;  %s12753_s1 = inlined_call_operand.vmem [shape: f32[1,128], index: 1, kind: input, shape index: {}]   ;;  %s12754_s2 = inlined_call_operand.vmem [shape: f32[1,128], index: 2, kind: input, shape index: {}]   ;;  %s12755_s3 = inlined_call_operand.hbm [shape: bf16[3,384,128], index: 3, kind: input, shape index: {}]   ;;  %s12756_s4 = inlined_call_operand.vmem [shape: f32[1,128], index: 4, kind: input, shape index: {}]   ;;  %s12757_s5 = inlined_call_operand.vmem [shape: f32[1,128], index: 5, kind: input, shape index: {}]   ;;  %s12758_s6 = inlined_call_operand.hbm [shape: bf16[3,384,128], index: 6, kind: input, shape index: {}]   ;;  %s12759_s7 = inlined_call_operand.vmem [shape: f32[1,128], index: 7, kind: input, shape index: {}]   ;;  %s12760_s8 = inlined_call_operand.vmem [shape: f32[1,128], index: 8, kind: input, shape index: {}]   ;;  %s12761_s9 = inlined_call_operand.hbm [shape: f32[128,128], index: 9, kind: input, shape index: {}]   ;;  %s12762_s10 = inlined_call_operand.hbm [shape: f32[2,256,128], index: 10, kind: output, shape index: {}]  }
   0x1   :  { %12997 = sst [smem:[#allocation78_spill]] %s12760_s8 }
   0x2   :  { %12998 = sst [smem:[#allocation79_spill]] %s12762_s10 }
   0x3   :  { %15 = vsyncpa [#allocation4], 0 }
   0x4   :  { %17 = vsyncpa [#allocation4 + $0x1], 0 }
   0x5   :  { %18 = vsyncpa [#allocation7], 0 }
   0x6   :  { %19 = vsyncpa [#allocation10], 0 }
   0x7   :  { %20 = vsyncpa [#allocation5], 0 }
   0x8   :  { %22 = vsyncpa [#allocation5 + $0x1], 0  ;;  %s9162_s13 = smov 0   ;;  %s9164_s14 = smov 0  }
   0x9   :  { %s9166_s15 = smov 0   ;;  %s9168_s16 = smov 0  }
   0xa LB: > { %12999 = sst [smem:[#allocation16_spill]] %s9077_s13  ;;  %s9183_s17 = sadd.s32 4294967295, %s9089_s16   ;;  %s9089_s16 = sphi %s9168_s16, %s13509_s16   ;;  %s9085_s15 = sphi %s9166_s15, %s13508_s15   ;;  %s9081_s14 = sphi %s9164_s14, %s13507_s14   ;;  %s9077_s13 = sphi %s9162_s13, %s13506_s13  }
   0xb   : > { %s6043_s18 = sadd.s32 4294967294, %s9089_s16   ;;  %p48_p0 = scmp.ne.s32.totalorder %s9081_s14, %s9077_s13 }
   0xc   : > { %p12763_p1 = scmp.eq.s32.totalorder %s9183_s17, 0  ;;  %p267_p3 = scmp.eq.s32.totalorder %s6043_s18, 1 }
   0xd   : > { %p6044_p5 = scmp.ge.s32.totalorder %s9089_s16, 1  ;;  %p274_p7 = scmp.lt.s32.totalorder %s9089_s16, 3 }
   0xe   : > { %p9192_p4 = por %p12763_p1, %p48_p0  ;;  %p9197_p6 = por %p267_p3, %p48_p0 }
   0xf   : > { %p9202_p8 = pnand %p6044_p5, %p274_p7  ;;  %s9091_s22 = smov [#allocation6]  }
  0x10   : > { %s13000_s19 = scalar_select %p9192_p4, 1, 0 }
  0x11   : > { %s13001_s20 = scalar_select %p9197_p6, 1, 0 }
  0x12   : > { %s13003_s21 = scalar_select %p9202_p8, 1, 0 }
  0x13   : > { %13002 = sst [smem:[#allocation17_spill]] %s13001_s20  ;;  %s292_s23 = sshll.u32 %s9091_s22, 4  ;;  %s9206_s23 = int_to_ptr.vmem [resolvable:$true] %s292_s23 }
  0x14   : > { %p8616_p9 = pneg %p9202_p8  ;;  %s9092_s25 = smov [#allocation8]  }
  0x15   : > { %s311_s26 = sshll.u32 %s9092_s25, 4  ;;  %s9093_s27 = smov [#allocation9]   ;;  %s9217_s26 = int_to_ptr.vmem [resolvable:$true] %s311_s26 }
  0x16   : > { %p9213_p11 = pnand %p8616_p9, %p12763_p1  ;;  %s9219_s28 = sshll.u32 %s9093_s27, 4  ;;  %s331_s28 = int_to_ptr.vmem [resolvable:$true] %s9219_s28 }
  0x17   : > { %s8901_s11 = scalar_lea.hbm %s12755_s3, 9216 }
  0x18   : > { %p8902_p12 = scmp.ne.s32.totalorder %s12755_s3, %s8901_s11  ;;  %p9229_p13 = pneg %p9213_p11 }
  0x19   : > { %p8908_p5 = scmp.lt.u32.totalorder %s8901_s11, %s12755_s3 }
  0x1a   : > { %p8904_p0 = pnand %p9229_p13, %p8902_p12 }
  0x1c   : > { %p8905_p3 = pneg %p8904_p0 }
  0x1e   : > { %p8910_p7 = pnand %p8908_p5, %p8905_p3 }
  0x20   : > { %8913 = shalt.err (!%p8910_p7)
}
  0x21   : > { %s8914_s29 = scalar_lea.vmem %s9206_s23, 9216  ;;  %p8922_p2 = scmp.lt.s32.totalorder %s9206_s23, %s9206_s23 }
  0x22   : > { %p8915_p9 = scmp.ne.s32.totalorder %s9206_s23, %s8914_s29  ;;  %p8923_p6 = scmp.lt.s32.totalorder %s8914_s29, %s8914_s29 }
  0x24   : > { %p8917_p10 = pnand %p8915_p9, %p9229_p13  ;;  %p8924_p12 = por %p8923_p6, %p8922_p2 }
  0x26   : > { %p8918_p1 = pneg %p8917_p10 }
  0x28   : > { %p8925_p0 = pnand %p8924_p12, %p8918_p1 }
  0x2a   : > { %8928 = shalt.err (!%p8925_p0)
}
  0x2b   : > { %s9094_s30 = smov 64   ;;  %s9095_s11 = smov 4  }
  0x2c   : > { %8619 = dma.hbm_to_vmem [thread:$0]  (!%p9213_p11), %s12755_s3, 9216, %s9206_s23, [#allocation7], %s9094_s30, %s9094_s30, %s9095_s11  }
  0x2d   : > { %s8929_s20 = scalar_lea.hbm %s12758_s6, 9216 }
  0x2e   : > { %p8930_p2 = scmp.ne.s32.totalorder %s12758_s6, %s8929_s20  ;;  %p8936_p10 = scmp.lt.u32.totalorder %s8929_s20, %s12758_s6 }
  0x30   : > { %p8932_p1 = pnand %p8930_p2, %p9229_p13 }
  0x32   : > { %p8933_p6 = pneg %p8932_p1 }
  0x34   : > { %p8938_p3 = pnand %p8936_p10, %p8933_p6 }
  0x36   : > { %8941 = shalt.err (!%p8938_p3)
}
  0x37   : > { %s8942_s23 = scalar_lea.vmem %s9217_s26, 9216  ;;  %p8950_p12 = scmp.lt.s32.totalorder %s9217_s26, %s9217_s26 }
  0x38   : > { %p8943_p5 = scmp.ne.s32.totalorder %s9217_s26, %s8942_s23  ;;  %p8951_p0 = scmp.lt.s32.totalorder %s8942_s23, %s8942_s23 }
  0x3a   : > { %p8945_p7 = pnand %p8943_p5, %p9229_p13  ;;  %p8952_p2 = por %p8951_p0, %p8950_p12 }
  0x3c   : > { %p8946_p9 = pneg %p8945_p7 }
  0x3e   : > { %p8953_p1 = pnand %p8952_p2, %p8946_p9 }
  0x40   : > { %8956 = shalt.err (!%p8953_p1)
}
  0x41   : > { %8622 = dma.hbm_to_vmem [thread:$0]  (!%p9213_p11), %s12758_s6, 9216, %s9217_s26, [#allocation7], %s9094_s30, %s9094_s30, %s9095_s11  }
  0x42   : > { %s8957_s12 = scalar_lea.hbm %s12761_s9, 2048 }
  0x43   : > { %p8958_p6 = scmp.ne.s32.totalorder %s12761_s9, %s8957_s12  ;;  %p8964_p5 = scmp.lt.u32.totalorder %s8957_s12, %s12761_s9 }
  0x45   : > { %p8960_p10 = pnand %p8958_p6, %p9229_p13 }
  0x47   : > { %p8961_p3 = pneg %p8960_p10 }
  0x49   : > { %p8966_p7 = pnand %p8964_p5, %p8961_p3 }
  0x4b   : > { %8969 = shalt.err (!%p8966_p7)
}
  0x4c   : > { %s8970_s23 = scalar_lea.vmem %s331_s28, 2048  ;;  %p8978_p2 = scmp.lt.s32.totalorder %s331_s28, %s331_s28 }
  0x4d   : > { %p8971_p9 = scmp.ne.s32.totalorder %s331_s28, %s8970_s23  ;;  %p8979_p1 = scmp.lt.s32.totalorder %s8970_s23, %s8970_s23 }
  0x4f   : > { %p8973_p12 = pnand %p8971_p9, %p9229_p13  ;;  %p8980_p4 = por %p8979_p1, %p8978_p2 }
  0x51   : > { %p8974_p0 = pneg %p8973_p12 }
  0x53   : > { %p8981_p8 = pnand %p8980_p4, %p8974_p0 }
  0x55   : > { %8984 = shalt.err (!%p8981_p8)
}
  0x56   : > { %s9096_s26 = smov 128   ;;  %s9097_s22 = smov 8  }
  0x57   : > { %8625 = dma.hbm_to_vmem [thread:$0]  (!%p9213_p11), %s12761_s9, 2048, %s331_s28, [#allocation10], %s9096_s26, %s9096_s26, %s9097_s22  }
  0x58   : > { %s9296_s8 = sadd.s32 1, %s9089_s16   ;;  %s35_s13 = sadd.s32 1, %s9085_s15 }
  0x59   : > { %s32_s10 = ssub.s32 %s9089_s16, %s9296_s8  ;;  %p42_p8 = scmp.ne.s32.totalorder %s9085_s15, %s9081_s14 }
  0x5a   : > { %p33_p4 = scmp.eq.s32.totalorder %s32_s10, 0  ;;  %p43_p13 = scmp.eq.s32.totalorder %s9089_s16, 0 }
  0x5b   : > { %p8637_p6 = scmp.lt.s32.totalorder %s9089_s16, 2  ;;  %p13006_p3 = scmp.eq.s32.totalorder %s9183_s17, 1 }
  0x5c   : > { %s9306_s20 = scalar_select %p33_p4, %s9085_s15, %s35_s13  }
  0x5d   : > { %p44_p10 = por %p43_p13, %p42_p8  ;;  %p9310_p5 = por %p13006_p3, %p42_p8 }
  0x5e   : > { %s344_s12 = sand.u32 1, %s9085_s15   ;;  %s6210_s18 = sshll.u32 %s9089_s16, 12 }
  0x5f   : > { %s6049_s28 = sshll.u32 %s344_s12, 8  ;;  %s9319_s29 = scalar_lea.hbm %s12752_s0, %s6210_s18 }
  0x60   : > { %s348_s23 = scalar_lea.vmem [#allocation3], %s6049_s28  ;;  %p9321_p11 = pnand %p8637_p6, %p44_p10 }
  0x61   : > { %s355_s30 = sshll.u32 %s348_s23, 4  ;;  %s9327_s10 = scalar_lea.sflag [#allocation4], %s344_s12  ;;  %s9325_s30 = int_to_ptr.vmem [resolvable:$true] %s355_s30 }
  0x62   : > { %s8985_s13 = scalar_lea.hbm %s9319_s29, 4096  ;;  %p8987_p9 = pneg %p9321_p11 }
  0x63   : > { %p8986_p7 = scmp.ne.s32.totalorder %s9319_s29, %s8985_s13  ;;  %s8990_s25 = scalar_lea.hbm %s12752_s0, 8192 }
  0x64   : > { %p8991_p2 = scmp.lt.u32.totalorder %s9319_s29, %s12752_s0  ;;  %p8992_p1 = scmp.lt.u32.totalorder %s8990_s25, %s8985_s13 }
  0x65   : > { %p8988_p12 = pnand %p8987_p9, %p8986_p7  ;;  %p8994_p8 = scmp.lt.u32.totalorder %s8985_s13, %s9319_s29 }
  0x66   : > { %p8993_p4 = por %p8992_p1, %p8991_p2 }
  0x67   : > { %p8989_p0 = pneg %p8988_p12 }
  0x68   : > { %p8995_p13 = por %p8994_p8, %p8993_p4 }
  0x6a   : > { %p8996_p6 = pnand %p8995_p13, %p8989_p0 }
  0x6c   : > { %8999 = shalt.err (!%p8996_p6)
}
  0x6d   : > { %s9000_s12 = scalar_lea.vmem %s9325_s30, 4096  ;;  %s9098_s18 = smov [#allocation3]  }
  0x6e   : > { %p9001_p10 = scmp.ne.s32.totalorder %s9325_s30, %s9000_s12  ;;  %s9005_s28 = sshll.u32 %s9098_s18, 4  ;;  %s9006_s28 = int_to_ptr.vmem [resolvable:$false] %s9005_s28 }
  0x6f   : > { %s9007_s27 = scalar_lea.vmem %s9006_s28, 8192  ;;  %p9008_p12 = scmp.lt.s32.totalorder %s9325_s30, %s9006_s28 }
  0x70   : > { %p9003_p3 = pnand %p9001_p10, %p8987_p9  ;;  %p9009_p2 = scmp.lt.s32.totalorder %s9007_s27, %s9000_s12 }
  0x72   : > { %p9004_p7 = pneg %p9003_p3  ;;  %p9010_p1 = por %p9009_p2, %p9008_p12 }
  0x74   : > { %p9011_p4 = pnand %p9010_p1, %p9004_p7 }
  0x76   : > { %9014 = shalt.err (!%p9011_p4)
}
  0x77   : > { %8629 = dma.hbm_to_vmem [thread:$0]  (!%p9321_p11), %s9319_s29, 4096, %s9325_s30, %s9327_s10, %s9096_s26, %s9096_s26, %s9097_s22  }
  0x78   : > { %p13009_p9 = scmp.ne.s32.totalorder %s13003_s21, 0 }
  0x7a   : > { %367 = sbr.rel (%p13009_p9) target bundleno = 2109 (0x83d), region = 60 }
  0x81   : > { %s9361_s13 = sand.u32 1, %s9081_s14   ;;  %p13010_p0 = scmp.ne.s32.totalorder %s13000_s19, 0 }
  0x82   : > { %s6053_s25 = sshll.u32 %s9361_s13, 8  ;;  %s370_s23 = scalar_lea.sflag [#allocation4], %s9361_s13 }
  0x83   : > { %s9367_s11 = scalar_lea.vmem [#allocation3], %s6053_s25 }
  0x84   : > { %9060 = dma.done.wait (%p13010_p0), %s370_s23, 4096  }
  0x85   : > { %9062 = vsyncadd (%p13010_p0), %s370_s23, 4294963200  ;;  %p13011_p11 = scmp.eq.s32.totalorder %s9183_s17, 0 }
  0x87   : > { %9064 = dma.done.wait (%p13011_p11), [#allocation7], 18432   ;;  %p13012_p8 = pmov %p13011_p11 }
  0x89   : > { %9066 = vsyncadd (%p13012_p8), [#allocation7], 4294948864  ;;  %p13013_p13 = pmov %p13012_p8 }
  0x8a   : > { %p13014_p6 = pmov %p13012_p8 }
  0x8b   : > { %9068 = dma.done.wait (%p13013_p13), [#allocation10], 2048  }
  0x8c   : > { %9070 = vsyncadd (%p13014_p6), [#allocation10], 4294965248  ;;  %v12771_v0 = vmov 0.0|0.0   ;;  %vm12841_vm0 = vmmov 0   ;;  %v12769_v1 = vmov 0.0   ;;  %v455_v2 = vld [vmem:[#allocation9] sm:$0xff] }
  0x8d   : > { %8208 = vmatprep.subr.bf16.mxu0 %v12771_v0  ;;  %7847 = vmatprep.mubr.msk.f32.mxu0 %vm12841_vm0, %v12769_v1  ;;  %v456_v3 = vld [vmem:[#allocation9 + $0x8] sm:$0xff]  ;;  %v457_v4 = vld [vmem:[#allocation9 + $0x10] sm:$0xff]  ;;  %v458_v6 = vld [vmem:[#allocation9 + $0x18] sm:$0xff]  ;;  %vm12840_vm1 = vcmask 1040384   ;;  %vm12849_vm6 = vmmov 1   ;;  %s12644_s19 = scalar_lea.vmem [#allocation11], %s6053_s25 }
  0x8e   : > { %v9384_v5 = vpack.c.bf16 %v456_v3, %v455_v2  ;;  %v9387_v7 = vpack.c.bf16 %v458_v6, %v457_v4  ;;  %v459_v8 = vld [vmem:[#allocation9 + $0x20] sm:$0xff]  ;;  %v460_v9 = vld [vmem:[#allocation9 + $0x28] sm:$0xff]  ;;  %v425_v12 = vld [vmem:[%s9367_s11 + $0x10] sm:$0xff]  ;;  %s6211_s25 = sshll.u32 %s9183_s17, 12  ;;  %s5941_s21 = sshll.u32 %s12644_s19, 4  ;;  %s12694_s21 = int_to_ptr.vmem [resolvable:$true] %s5941_s21 }
  0x8f   : > { %v423_v10 = vld [vmem:[%s9367_s11] sm:$0xff]  ;;  %v424_v11 = vld [vmem:[%s9367_s11 + $0x8] sm:$0xff]  ;;  %v426_v13 = vld [vmem:[%s9367_s11 + $0x18] sm:$0xff]  ;;  %v9395_v17 = vpack.c.bf16 %v460_v9, %v459_v8  ;;  %v999_v18 = vmul.f32 %v425_v12, %v425_v12  ;;  %s13501_s22 = sld [smem:[#allocation79_spill]]  ;;  %s5928_s30 = scalar_lea.sflag [#allocation5], %s9361_s13 }
  0x90   : > { %13015 = vst [vmem:[#allocation18_spill] sm:$0xff] %v9384_v5  ;;  %8210 = vmatpush3.bf16.msra.mxu0 %v9384_v5  ;;  %13016 = vst [vmem:[#allocation19_spill] sm:$0xff] %v9387_v7  ;;  %v960_v14 = vadd.f32 %v424_v11, %v423_v10  ;;  %v997_v15 = vmul.f32 %v423_v10, %v423_v10  ;;  %v998_v16 = vmul.f32 %v424_v11, %v424_v11  ;;  %v461_v19 = vld [vmem:[#allocation9 + $0x30] sm:$0xff]  ;;  %v462_v20 = vld [vmem:[#allocation9 + $0x38] sm:$0xff]  ;;  %s9015_s10 = scalar_lea.vmem %s12694_s21, 4096  ;;  %s9104_s12 = smov [#allocation11]  }
  0x91   : > { %8211 = vmatprep.subr.bf16.mxu0 %v12771_v0  ;;  %13017 = vst [vmem:[#allocation20_spill] sm:$0xff] %v9395_v17  ;;  %v427_v21 = vld [vmem:[%s9367_s11 + $0x20] sm:$0xff]  ;;  %v1000_v23 = vmul.f32 %v426_v13, %v426_v13  ;;  %v428_v25 = vld [vmem:[%s9367_s11 + $0x28] sm:$0xff]  ;;  %v9401_v27 = vpack.c.bf16 %v462_v20, %v461_v19  ;;  %v429_v32 = vld [vmem:[%s9367_s11 + $0x30] sm:$0xff]  ;;  %p9016_p10 = scmp.ne.s32.totalorder %s12694_s21, %s9015_s10  ;;  %s9019_s18 = sshll.u32 %s9104_s12, 4  ;;  %s9020_s18 = int_to_ptr.vmem [resolvable:$false] %s9019_s18 }
  0x92   : > { %v961_v22 = vadd.f32 %v960_v14, %v425_v12  ;;  %v1029_v24 = vadd.f32 %v998_v16, %v997_v15  ;;  %v1001_v28 = vmul.f32 %v427_v21, %v427_v21  ;;  %v463_v30 = vld [vmem:[#allocation9 + $0x40] sm:$0xff]  ;;  %v464_v31 = vld [vmem:[#allocation9 + $0x48] sm:$0xff]  ;;  %v1002_v34 = vmul.f32 %v428_v25, %v428_v25  ;;  %v430_v36 = vld [vmem:[%s9367_s11 + $0x38] sm:$0xff]  ;;  %s9021_s28 = scalar_lea.vmem %s9020_s18, 8192  ;;  %p9022_p12 = scmp.lt.s32.totalorder %s12694_s21, %s9020_s18 }
  0x93   : > { %13018 = vst [vmem:[#allocation21_spill] sm:$0xff] %v9401_v27  ;;  %v9407_v38 = vpack.c.bf16 %v464_v31, %v463_v30  ;;  %v465_v39 = vld [vmem:[#allocation9 + $0x50] sm:$0xff]  ;;  %v466_v40 = vld [vmem:[#allocation9 + $0x58] sm:$0xff]  ;;  %v1003_v41 = vmul.f32 %v429_v32, %v429_v32  ;;  %v431_v43 = vld [vmem:[%s9367_s11 + $0x40] sm:$0xff]  ;;  %v1004_v46 = vmul.f32 %v430_v36, %v430_v36  ;;  %p9017_p3 = pnand %p9016_p10, %p9310_p5  ;;  %p9023_p2 = scmp.lt.s32.totalorder %s9021_s28, %s9015_s10 }
  0x94   : > { %8213 = vmatpush3.bf16.msra.mxu0 %v9387_v7  ;;  %v962_v26 = vadd.f32 %v961_v22, %v426_v13  ;;  %v1030_v29 = vadd.f32 %v1029_v24, %v999_v18  ;;  %v432_v45 = vld [vmem:[%s9367_s11 + $0x48] sm:$0xff]  ;;  %v467_v48 = vld [vmem:[#allocation9 + $0x60] sm:$0xff]  ;;  %v433_v50 = vld [vmem:[%s9367_s11 + $0x50] sm:$0xff]  ;;  %v9414_v52 = vpack.c.bf16 %v466_v40, %v465_v39  ;;  %v1005_v53 = vmul.f32 %v431_v43, %v431_v43 }
  0x95   : > { %8214 = vmatprep.subr.bf16.mxu0 %v12771_v0  ;;  %13019 = vst [vmem:[#allocation22_spill] sm:$0xff] %v9407_v38  ;;  %v468_v49 = vld [vmem:[#allocation9 + $0x68] sm:$0xff]  ;;  %v434_v55 = vld [vmem:[%s9367_s11 + $0x58] sm:$0xff]  ;;  %v1006_v57 = vmul.f32 %v432_v45, %v432_v45  ;;  %v469_v59 = vld [vmem:[#allocation9 + $0x70] sm:$0xff]  ;;  %v1007_v2 = vmul.f32 %v433_v50, %v433_v50  ;;  %s12692_s29 = scalar_lea.hbm %s13501_s22, %s6211_s25  ;;  %p9018_p7 = pneg %p9017_p3 }
  0x96   : > { %v963_v33 = vadd.f32 %v962_v26, %v427_v21  ;;  %v1031_v35 = vadd.f32 %v1030_v29, %v1000_v23  ;;  %13020 = vst [vmem:[#allocation23_spill] sm:$0xff] %v9414_v52  ;;  %v470_v60 = vld [vmem:[#allocation9 + $0x78] sm:$0xff]  ;;  %v435_v61 = vld [vmem:[%s9367_s11 + $0x60] sm:$0xff]  ;;  %v9420_v63 = vpack.c.bf16 %v468_v49, %v467_v48  ;;  %v436_v4 = vld [vmem:[%s9367_s11 + $0x68] sm:$0xff]  ;;  %v1008_v8 = vmul.f32 %v434_v55, %v434_v55  ;;  %p9024_p1 = por %p9023_p2, %p9022_p12 }
  0x97   : > { %v437_v10 = vld [vmem:[%s9367_s11 + $0x70] sm:$0xff]  ;;  %v8720_v12 = vld [vmem:[#allocation6 + $0x40] sm:$0xff]   ;;  %v9426_v13 = vpack.c.bf16 %v470_v60, %v469_v59  ;;  %v1009_v14 = vmul.f32 %v435_v61, %v435_v61  ;;  %v438_v16 = vld [vmem:[%s9367_s11 + $0x78] sm:$0xff]  ;;  %v1010_v19 = vmul.f32 %v436_v4, %v436_v4 }
  0x98   : > { %8216 = vmatpush3.bf16.msra.mxu0 %v9395_v17  ;;  %v964_v37 = vadd.f32 %v963_v33, %v428_v25  ;;  %v1032_v42 = vadd.f32 %v1031_v35, %v1001_v28  ;;  %13021 = vst [vmem:[#allocation24_spill] sm:$0xff] %v9420_v63  ;;  %v439_v21 = vld [vmem:[%s9367_s11 + $0x80] sm:$0xff]  ;;  %v1011_v23 = vmul.f32 %v437_v10, %v437_v10  ;;  %v440_v25 = vld [vmem:[%s9367_s11 + $0x88] sm:$0xff]  ;;  %v441_v30 = vld [vmem:[%s9367_s11 + $0x90] sm:$0xff]  ;;  %v13057_v17 = vmov 0  ;;  %p9025_p4 = pnand %p9024_p1, %p9018_p7 }
  0x99   : > { %8217 = vmatprep.subr.bf16.mxu0 %v12771_v0  ;;  %13022 = vst [vmem:[#allocation25_spill] sm:$0xff] %v9426_v13  ;;  %v1012_v28 = vmul.f32 %v438_v16, %v438_v16  ;;  %v443_v39 = vld [vmem:[%s9367_s11 + $0xa0] sm:$0xff]  ;;  %v448_v60 = vld [vmem:[%s9367_s11 + $0xc8] sm:$0xff]  ;;  %v8877_v1 = vld [vmem:[%s9367_s11 + $0x38] sm:$0xff] }
  0x9a   : > { %v965_v44 = vadd.f32 %v964_v37, %v429_v32  ;;  %v1033_v47 = vadd.f32 %v1032_v42, %v1002_v34  ;;  %v1013_v32 = vmul.f32 %v439_v21, %v439_v21  ;;  %v442_v34 = vld [vmem:[%s9367_s11 + $0x98] sm:$0xff]  ;;  %v1017_v49 = vmul.f32 %v443_v39, %v443_v39  ;;  %v8890_v5 = vld [vmem:[%s9367_s11 + $0xa0] sm:$0xff] }
  0x9c   : > { %8219 = vmatpush3.bf16.msra.mxu0 %v9401_v27  ;;  %v966_v51 = vadd.f32 %v965_v44, %v430_v36  ;;  %v1034_v54 = vadd.f32 %v1033_v47, %v1003_v41  ;;  %v1014_v36 = vmul.f32 %v440_v25, %v440_v25  ;;  %v1015_v41 = vmul.f32 %v441_v30, %v441_v30  ;;  %v445_v47 = vld [vmem:[%s9367_s11 + $0xb0] sm:$0xff] }
  0x9d   : > { %8220 = vmatprep.subr.bf16.mxu0 %v12771_v0 }
  0x9e   : > { %v967_v56 = vadd.f32 %v966_v51, %v431_v43  ;;  %v1035_v58 = vadd.f32 %v1034_v54, %v1004_v46  ;;  %v444_v43 = vld [vmem:[%s9367_s11 + $0xa8] sm:$0xff]  ;;  %v446_v51 = vld [vmem:[%s9367_s11 + $0xb8] sm:$0xff] }
  0x9f   : > { %v1018_v54 = vmul.f32 %v444_v43, %v444_v43 }
  0xa0   : > { %8222 = vmatpush3.bf16.msra.mxu0 %v9407_v38  ;;  %v968_v62 = vadd.f32 %v967_v56, %v432_v45  ;;  %v1036_v3 = vadd.f32 %v1035_v58, %v1005_v53  ;;  %v1016_v45 = vmul.f32 %v442_v34, %v442_v34  ;;  %v447_v56 = vld [vmem:[%s9367_s11 + $0xc0] sm:$0xff]  ;;  %v1019_v58 = vmul.f32 %v445_v47, %v445_v47 }
  0xa1   : > { %8223 = vmatprep.subr.bf16.mxu0 %v12771_v0 }
  0xa2   : > { %v969_v6 = vadd.f32 %v968_v62, %v433_v50  ;;  %v1037_v9 = vadd.f32 %v1036_v3, %v1006_v57  ;;  %v1020_v62 = vmul.f32 %v446_v51, %v446_v51  ;;  %v449_v3 = vld [vmem:[%s9367_s11 + $0xd0] sm:$0xff] }
  0xa4   : > { %8225 = vmatpush3.bf16.msra.mxu0 %v9414_v52  ;;  %v970_v11 = vadd.f32 %v969_v6, %v434_v55  ;;  %v1038_v15 = vadd.f32 %v1037_v9, %v1007_v2  ;;  %v1021_v6 = vmul.f32 %v447_v56, %v447_v56  ;;  %v450_v9 = vld [vmem:[%s9367_s11 + $0xd8] sm:$0xff] }
  0xa5   : > { %8226 = vmatprep.subr.bf16.mxu0 %v12771_v0 }
  0xa6   : > { %v971_v18 = vadd.f32 %v970_v11, %v435_v61  ;;  %v1039_v20 = vadd.f32 %v1038_v15, %v1008_v8  ;;  %v1022_v11 = vmul.f32 %v448_v60, %v448_v60 }
  0xa8   : > { %8228 = vmatpush3.bf16.msra.mxu0 %v9420_v63  ;;  %v972_v22 = vadd.f32 %v971_v18, %v436_v4  ;;  %v1040_v24 = vadd.f32 %v1039_v20, %v1009_v14  ;;  %v451_v14 = vld [vmem:[%s9367_s11 + $0xe0] sm:$0xff] }
  0xa9   : > { %8229 = vmatprep.subr.bf16.mxu0 %v12771_v0  ;;  %v8878_v0 = vld [vmem:[%s9367_s11 + $0x40] sm:$0xff] }
  0xaa   : > { %v973_v26 = vadd.f32 %v972_v22, %v437_v10  ;;  %v1041_v29 = vadd.f32 %v1040_v24, %v1010_v19  ;;  %v452_v19 = vld [vmem:[%s9367_s11 + $0xe8] sm:$0xff] }
  0xac   : > { %8231 = vmatpush3.bf16.msra.mxu0 %v9426_v13  ;;  %v974_v31 = vadd.f32 %v973_v26, %v438_v16  ;;  %v1042_v33 = vadd.f32 %v1041_v29, %v1011_v23  ;;  %v1023_v16 = vmul.f32 %v449_v3, %v449_v3  ;;  %v453_v23 = vld [vmem:[%s9367_s11 + $0xf0] sm:$0xff]  ;;  %v8755_v13 = vld [vmem:[#allocation6 + $0x158] sm:$0xff]  }
  0xad   : > { %7101 = vmatprep.subr.bf16.mxu0 %v8720_v12 }
  0xae   : > { %v975_v35 = vadd.f32 %v974_v31, %v439_v21  ;;  %v1043_v37 = vadd.f32 %v1042_v33, %v1012_v28  ;;  %v1024_v21 = vmul.f32 %v450_v9, %v450_v9  ;;  %v9447_v28 = vld [vmem:[%s9367_s11 + $0xf8] sm:$0xff]  ;;  %v1027_v33 = vmul.f32 %v453_v23, %v453_v23 }
  0xb0   : > { %v976_v40 = vadd.f32 %v975_v35, %v440_v25  ;;  %v1044_v42 = vadd.f32 %v1043_v37, %v1013_v32  ;;  %v1025_v25 = vmul.f32 %v451_v14, %v451_v14 }
  0xb2   : > { %v977_v44 = vadd.f32 %v976_v40, %v441_v30  ;;  %v1045_v46 = vadd.f32 %v1044_v42, %v1014_v36  ;;  %v1026_v30 = vmul.f32 %v452_v19, %v452_v19  ;;  %v1028_v36 = vmul.f32 %v9447_v28, %v9447_v28 }
  0xb4   : > { %v978_v48 = vadd.f32 %v977_v44, %v442_v34  ;;  %v1046_v50 = vadd.f32 %v1045_v46, %v1015_v41 }
  0xb6   : > { %v979_v53 = vadd.f32 %v978_v48, %v443_v39  ;;  %v1047_v55 = vadd.f32 %v1046_v50, %v1016_v45 }
  0xb8   : > { %v980_v57 = vadd.f32 %v979_v53, %v444_v43  ;;  %v1048_v59 = vadd.f32 %v1047_v55, %v1017_v49 }
  0xba   : > { %v981_v61 = vadd.f32 %v980_v57, %v445_v47  ;;  %v1049_v2 = vadd.f32 %v1048_v59, %v1018_v54  ;;  %v8722_v57 = vld [vmem:[#allocation6 + $0x48] sm:$0xff]   ;;  %v8724_v59 = vld [vmem:[#allocation6 + $0x100] sm:$0xff]  }
  0xbb   : > { %6965 = vmatprep.subr.bf16.mxu1 %v8724_v59 }
  0xbc   : > { %v982_v4 = vadd.f32 %v981_v61, %v446_v51  ;;  %v1050_v8 = vadd.f32 %v1049_v2, %v1019_v58  ;;  %v8723_v58 = vld [vmem:[#allocation6 + $0x8] sm:$0xff]   ;;  %v8725_v61 = vld [vmem:[#allocation6 + $0xc0] sm:$0xff]  }
  0xbd   : > { %6966 = vmatpush3.bf16.msra.mxu1 %v8725_v61  ;;  %v8728_v2 = vld [vmem:[#allocation6 + $0x108] sm:$0xff]  }
  0xbe   : > { %v983_v10 = vadd.f32 %v982_v4, %v447_v56  ;;  %v1051_v12 = vadd.f32 %v1050_v8, %v1020_v62  ;;  %v8721_v56 = vld [vmem:[#allocation6] sm:$0xff]   ;;  %v8727_v62 = vld [vmem:[#allocation6 + $0x10] sm:$0xff]   ;;  %v8729_v4 = vld [vmem:[#allocation6 + $0xc8] sm:$0xff]   ;;  %6967 = vmatprep.subr.bf16.mxu1 %v8728_v2 }
  0xbf   : > { %v8732_v8 = vld [vmem:[#allocation6 + $0x110] sm:$0xff]  }
  0xc0   : > { %v984_v15 = vadd.f32 %v983_v10, %v448_v60  ;;  %v1052_v18 = vadd.f32 %v1051_v12, %v1021_v6  ;;  %v8726_v60 = vld [vmem:[#allocation6 + $0x50] sm:$0xff]   ;;  %v8731_v6 = vld [vmem:[#allocation6 + $0x18] sm:$0xff]  }
  0xc1   : > { %6968 = vmatpush3.bf16.msra.mxu1 %v8729_v4  ;;  %v8733_v10 = vld [vmem:[#allocation6 + $0xd0] sm:$0xff]   ;;  %v8736_v12 = vld [vmem:[#allocation6 + $0x118] sm:$0xff]  }
  0xc2   : > { %v985_v20 = vadd.f32 %v984_v15, %v449_v3  ;;  %v1053_v22 = vadd.f32 %v1052_v18, %v1022_v11  ;;  %v8730_v3 = vld [vmem:[#allocation6 + $0x58] sm:$0xff]   ;;  %v8735_v11 = vld [vmem:[#allocation6 + $0x20] sm:$0xff]   ;;  %6969 = vmatprep.subr.bf16.mxu1 %v8732_v8 }
  0xc3   : > { %v8737_v15 = vld [vmem:[#allocation6 + $0xd8] sm:$0xff]   ;;  %v8740_v18 = vld [vmem:[#allocation6 + $0x120] sm:$0xff]  }
  0xc4   : > { %v986_v24 = vadd.f32 %v985_v20, %v450_v9  ;;  %v1054_v26 = vadd.f32 %v1053_v22, %v1023_v16  ;;  %v8734_v9 = vld [vmem:[#allocation6 + $0x60] sm:$0xff]   ;;  %v8739_v16 = vld [vmem:[#allocation6 + $0x28] sm:$0xff]  }
  0xc5   : > { %6970 = vmatpush3.bf16.msra.mxu1 %v8733_v10  ;;  %v8741_v20 = vld [vmem:[#allocation6 + $0xe0] sm:$0xff]   ;;  %v8744_v22 = vld [vmem:[#allocation6 + $0x128] sm:$0xff]  }
  0xc6   : > { %v987_v29 = vadd.f32 %v986_v24, %v451_v14  ;;  %v1055_v31 = vadd.f32 %v1054_v26, %v1024_v21  ;;  %v8738_v14 = vld [vmem:[#allocation6 + $0x68] sm:$0xff]   ;;  %6971 = vmatprep.subr.bf16.mxu1 %v8736_v12  ;;  %v8743_v21 = vld [vmem:[#allocation6 + $0x30] sm:$0xff]  }
  0xc7   : > { %v8745_v24 = vld [vmem:[#allocation6 + $0xe8] sm:$0xff]   ;;  %v8748_v26 = vld [vmem:[#allocation6 + $0x130] sm:$0xff]  }
  0xc8   : > { %v988_v32 = vadd.f32 %v987_v29, %v452_v19  ;;  %v1056_v34 = vadd.f32 %v1055_v31, %v1025_v25  ;;  %v8742_v19 = vld [vmem:[#allocation6 + $0x70] sm:$0xff]   ;;  %v8747_v25 = vld [vmem:[#allocation6 + $0x38] sm:$0xff]  }
  0xc9   : > { %6972 = vmatpush3.bf16.msra.mxu1 %v8737_v15  ;;  %v8749_v29 = vld [vmem:[#allocation6 + $0xf0] sm:$0xff]   ;;  %v8750_v31 = vld [vmem:[#allocation6 + $0x138] sm:$0xff]  }
  0xca   : > { %v989_v35 = vadd.f32 %v988_v32, %v453_v23  ;;  %v1057_v37 = vadd.f32 %v1056_v34, %v1026_v30  ;;  %6973 = vmatprep.subr.bf16.mxu1 %v8740_v18  ;;  %v8746_v23 = vld [vmem:[#allocation6 + $0x78] sm:$0xff]   ;;  %v12773_v30 = vmov 0   ;;  %v471_v32 = vlaneseq  ;;  %v8763_v18 = vld [vmem:[#allocation6 + $0xa0] sm:$0xff]  }
  0xcc   : > { %v990_v39 = vadd.f32 %v989_v35, %v9447_v28  ;;  %v1058_v40 = vadd.f32 %v1057_v37, %v1027_v33  ;;  %v8751_v33 = vld [vmem:[#allocation6 + $0xf8] sm:$0xff]   ;;  %v9455_v34 = vshrl.u32 %v471_v32, 7 }
  0xcd   : > { %6974 = vmatpush3.bf16.msra.mxu1 %v8741_v20  ;;  %v8764_v20 = vld [vmem:[#allocation6 + $0xa8] sm:$0xff]  }
  0xce   : > { %v991_v41 = vrot.slane %v990_v39, 4  ;;  %v1059_v42 = vadd.f32 %v1058_v40, %v1028_v36  ;;  %6975 = vmatprep.subr.bf16.mxu1 %v8744_v22  ;;  %13023 = vst [vmem:[#allocation26_spill] sm:$0xff] %v9455_v34  ;;  %v508_v35 = vand.u32 15, %v9455_v34  ;;  %v9458_v36 = vld [vmem:[#allocation6 + $0x140] sm:$0xff]   ;;  %v9462_v37 = vadd.s32 16, %v9455_v34 }
  0xcf   : > { %v9466_v40 = vadd.s32 32, %v9455_v34  ;;  %v9498_v59 = vadd.s32 160, %v9455_v34  ;;  %v9502_v61 = vadd.s32 176, %v9455_v34  ;;  %v9506_v8 = vadd.s32 192, %v9455_v34 }
  0xd0   : > { %v992_v43 = vadd.f32 %v991_v41, %v990_v39  ;;  %v1060_v44 = vrot.slane %v1059_v42, 4  ;;  %v522_v39 = vand.u32 15, %v9462_v37  ;;  %v9510_v15 = vadd.s32 208, %v9455_v34 }
  0xd1   : > { %6976 = vmatpush3.bf16.msra.mxu1 %v8745_v24  ;;  %v536_v41 = vand.u32 15, %v9466_v40  ;;  %13025 = vst [vmem:[#allocation28_spill] sm:$0xff] %v9498_v59  ;;  %13026 = vst [vmem:[#allocation29_spill] sm:$0xff] %v9502_v61  ;;  %vm12835_vm2 = vcmp.lt.s32.totalorder %v9455_v34, 7  ;;  %vm12836_vm3 = vcmp.lt.s32.totalorder %v9455_v34, 1  ;;  %vm9538_vm4 = vcmp.ne.s32.totalorder %v508_v35, 0 }
  0xd2   : > { %v993_v45 = vrot.slane %v992_v43, 2  ;;  %v1061_v46 = vadd.f32 %v1060_v44, %v1059_v42  ;;  %6977 = vmatprep.subr.bf16.mxu1 %v8748_v26  ;;  %v9470_v42 = vadd.s32 48, %v9455_v34  ;;  %v9474_v44 = vadd.s32 64, %v9455_v34  ;;  %13027 = vst [vmem:[#allocation30_spill] sm:$0xff] %v9506_v8  ;;  %13028 = vst [vmem:[#allocation31_spill] sm:$0xff] %v9510_v15  ;;  %v8873_v35 = vld [vmem:[%s9367_s11 + $0x18] sm:$0xff] }
  0xd3   : > { %vm9585_vm5 = vcmp.ne.s32.totalorder %v522_v39, 0  ;;  %vm9610_vm7 = vmpackc.low %vm12849_vm6, %vm9538_vm4  ;;  %vm9661_vm8 = vcmp.ne.s32.totalorder %v536_v41, 0  ;;  %v8885_v41 = vld [vmem:[%s9367_s11 + $0x78] sm:$0xff]  ;;  %v9741_v52 = vadd.s32 240, %v9455_v34 }
  0xd4   : > { %v994_v47 = vadd.f32 %v993_v45, %v992_v43  ;;  %v1062_v48 = vrot.slane %v1061_v46, 2  ;;  %v8884_v45 = vld [vmem:[%s9367_s11 + $0x70] sm:$0xff]  ;;  %vm9686_vm9 = vmpackc.low %vm12849_vm6, %vm9585_vm5  ;;  %v8897_v8 = vld [vmem:[%s9367_s11 + $0xd8] sm:$0xff] }
  0xd5   : > { %6978 = vmatpush3.bf16.msra.mxu1 %v8749_v29  ;;  %v959_v29 = vld [vmem:[%s12754_s2] sm:$0x1]  ;;  %vm9775_vm11 = vmpackc.low %vm12849_vm6, %vm9661_vm8 }
  0xd6   : > { %v995_v49 = vrot.slane %v994_v47, 1  ;;  %v1063_v50 = vadd.f32 %v1062_v48, %v1061_v46  ;;  %6979 = vmatprep.subr.bf16.mxu1 %v8750_v31  ;;  %v9478_v46 = vadd.s32 80, %v9455_v34  ;;  %v9482_v48 = vadd.s32 96, %v9455_v34 }
  0xd7   : > { %v13058_v17 = vsel %vm9775_vm11, 4294967295, %v13057_v17 }
  0xd8   : > { %v996_v51 = vadd.f32 %v995_v49, %v994_v47  ;;  %v1064_v53 = vrot.slane %v1063_v50, 1  ;;  %13059 = vst [vmem:[#allocation46_spill] sm:$0xff] %v13058_v17 }
  0xd9   : > { %6980 = vmatpush3.bf16.msra.mxu1 %v8751_v33  ;;  %v9530_v33 = vsub.s32 0, %v9455_v34 }
  0xda   : > { %v1065_v54 = vadd.f32 %v1064_v53, %v1063_v50  ;;  %7850 = vmatprep.subr.bf16.mxu1 %v9458_v36  ;;  %v9486_v50 = vadd.s32 112, %v9455_v34  ;;  %v8757_v53 = vld [vmem:[#allocation6 + $0x80] sm:$0xff]  }
  0xdb   : > { %13031 = vst [vmem:[#allocation34_spill] sm:$0xff] %v9530_v33 }
  0xdc   : > { %v1067_v55 = vsel %vm12840_vm1, %v996_v51, %v1065_v54  ;;  %v9490_v54 = vadd.s32 128, %v9455_v34 }
  0xdd   : > { %7848 = vmatmul.mubr.f32.vlgmr.msra.gmra.mrb[0].mxu0 %v1067_v55  ;;  %v8882_v55 = vld [vmem:[%s9367_s11 + $0x60] sm:$0xff] }
  0xde   : > { %7102 = vmatpush3.bf16.msra.mxu0 %v8721_v56  ;;  %2471 = vmatprep.mubr.bf16.mxu0 %v12773_v30  ;;  %v9494_v56 = vadd.s32 144, %v9455_v34 }
  0xdf   : > { %7103 = vmatprep.subr.bf16.mxu0 %v8722_v57 }
  0xe0   : > { %13024 = vst [vmem:[#allocation27_spill] sm:$0xff] %v9494_v56 }
  0xe2   : > { %7104 = vmatpush3.bf16.msra.mxu0 %v8723_v58  ;;  %v8759_v58 = vld [vmem:[#allocation6 + $0x88] sm:$0xff]  }
  0xe3   : > { %7105 = vmatprep.subr.bf16.mxu0 %v8726_v60 }
  0xe6   : > { %7106 = vmatpush3.bf16.msra.mxu0 %v8727_v62  ;;  %v8753_v62 = vld [vmem:[#allocation6 + $0x148] sm:$0xff]  }
  0xe7   : > { %7107 = vmatprep.subr.bf16.mxu0 %v8730_v3 }
  0xea   : > { %7108 = vmatpush3.bf16.msra.mxu0 %v8731_v6  ;;  %v8761_v6 = vld [vmem:[#allocation6 + $0x90] sm:$0xff]  }
  0xeb   : > { %7109 = vmatprep.subr.bf16.mxu0 %v8734_v9 }
  0xee   : > { %7110 = vmatpush3.bf16.msra.mxu0 %v8735_v11 }
  0xef   : > { %7111 = vmatprep.subr.bf16.mxu0 %v8738_v14  ;;  %v8762_v14 = vld [vmem:[#allocation6 + $0x98] sm:$0xff]  }
  0xf2   : > { %7112 = vmatpush3.bf16.msra.mxu0 %v8739_v16  ;;  %v8879_v16 = vld [vmem:[%s9367_s11 + $0x48] sm:$0xff] }
  0xf3   : > { %7113 = vmatprep.subr.bf16.mxu0 %v8742_v19  ;;  %v6058_v19 = vld [vmem:[%s12753_s1] ss:$0 sm:$0xff] }
  0xf6   : > { %7114 = vmatpush3.bf16.msra.mxu0 %v8743_v21  ;;  %v9517_v21 = vadd.s32 224, %v9455_v34 }
  0xf7   : > { %7115 = vmatprep.subr.bf16.mxu0 %v8746_v23  ;;  %v9520_v23 = vsub.s32 1, %v9455_v34 }
  0xf8   : > { %13029 = vst [vmem:[#allocation32_spill] sm:$0xff] %v9517_v21  ;;  %v13067_v21 = vmov 0 }
  0xf9   : > { %13030 = vst [vmem:[#allocation33_spill] sm:$0xff] %v9520_v23 }
  0xfa   : > { %7116 = vmatpush3.bf16.msra.mxu0 %v8747_v25 }
  0xfb   : > { %7898 = vmatprep.subr.bf16.mxu0 %v8757_v53 }
  0xfd   : > { %2472 = vmatmul.mubr.bf16.vlgmr.msra.gmra.mrb[4].mxu0 %v12773_v30 }
  0xfe   : > { %7899 = vmatpush3.bf16.msra.mxu0 %v8757_v53  ;;  %v8766_v53 = vld [vmem:[#allocation6 + $0xb0] sm:$0xff]  }
  0xff   : > { %7900 = vmatprep.subr.bf16.mxu0 %v8759_v58 }
 0x102   : > { %7901 = vmatpush3.bf16.msra.mxu0 %v8759_v58  ;;  %v8767_v58 = vld [vmem:[#allocation6 + $0xb8] sm:$0xff]  }
 0x103   : > { %7902 = vmatprep.subr.bf16.mxu0 %v8761_v6 }
 0x106   : > { %7903 = vmatpush3.bf16.msra.mxu0 %v8761_v6 }
 0x107   : > { %7904 = vmatprep.subr.bf16.mxu0 %v8762_v14 }
 0x10a   : > { %7905 = vmatpush3.bf16.msra.mxu0 %v8762_v14  ;;  %v8872_v14 = vld [vmem:[%s9367_s11 + $0x10] sm:$0xff] }
 0x10b   : > { %7906 = vmatprep.subr.bf16.mxu0 %v8763_v18 }
 0x10e   : > { %7907 = vmatpush3.bf16.msra.mxu0 %v8763_v18 }
 0x10f   : > { %7908 = vmatprep.subr.bf16.mxu0 %v8764_v20 }
 0x112   : > { %7909 = vmatpush3.bf16.msra.mxu0 %v8764_v20  ;;  %v8874_v20 = vld [vmem:[%s9367_s11 + $0x20] sm:$0xff] }
 0x113   : > { %7910 = vmatprep.subr.bf16.mxu0 %v8766_v53 }
 0x116   : > { %7911 = vmatpush3.bf16.msra.mxu0 %v8766_v53 }
 0x117   : > { %7912 = vmatprep.subr.bf16.mxu0 %v8767_v58 }
 0x11a   : > { %7913 = vmatpush3.bf16.msra.mxu0 %v8767_v58 }
 0x1b0   : > { %v1134_v2 = vpop.f32.mrb[0].mxu0 }
 0x1b1   : > { %v1138_v3 = vmul.f32 %v1134_v2, %v1134_v2  ;;  %v7849_v4 = vpop.f32.mrb[1].mxu0 }
 0x1b3   : > { %v1140_v9 = vrot.slane %v1138_v3, 7 }
 0x1b5   : > { %v1142_v11 = vsub.f32 %v1134_v2, %v1140_v9  ;;  %v8870_v9 = vld [vmem:[%s9367_s11] sm:$0xff] }
 0x1b7   : > { %v1143_v12 = vadd.f32 1e-05, %v1142_v11 }
 0x1b9   : > { %8864 = vrsqrt.f32 %v1143_v12  ;;  %v8871_v12 = vld [vmem:[%s9367_s11 + $0x8] sm:$0xff] }
 0x1c3   : > { %v8865_v22 = vpop.eup %8864 }
 0x1c4   : > { %v1151_v25 = vmul.f32 %v8865_v22, %v6058_v19 }
 0x1c6   : > { %v1153_v26 = vrot.slane %v1151_v25, 1  ;;  %v9527_v31 = vrot.slane %v1151_v25, %v9520_v23  ;;  %v8875_v25 = vld [vmem:[%s9367_s11 + $0x28] sm:$0xff] }
 0x1c8   : > { %v1155_v32 = vmul.f32 %v1153_v26, %v1134_v2  ;;  %v1192_v4 = vmul.f32 %v9527_v31, %v9447_v28  ;;  %v1161_v11 = vmul.f32 %v8870_v9, %v9527_v31  ;;  %v1162_v28 = vmul.f32 %v8871_v12, %v9527_v31  ;;  %v8880_v2 = vld [vmem:[%s9367_s11 + $0x50] sm:$0xff] }
 0x1c9   : > { %v1163_v18 = vmul.f32 %v8872_v14, %v9527_v31  ;;  %v1164_v19 = vmul.f32 %v8873_v35, %v9527_v31  ;;  %v1165_v22 = vmul.f32 %v8874_v20, %v9527_v31  ;;  %v1166_v26 = vmul.f32 %v8875_v25, %v9527_v31 }
 0x1ca   : > { %v1156_v3 = vsub.f32 %v959_v29, %v1155_v32  ;;  %v8876_v29 = vld [vmem:[%s9367_s11 + $0x30] sm:$0xff]  ;;  %v1168_v20 = vmul.f32 %v8877_v1, %v9527_v31  ;;  %v1169_v25 = vmul.f32 %v8878_v0, %v9527_v31  ;;  %v1171_v60 = vmul.f32 %v8880_v2, %v9527_v31 }
 0x1cb   : > { %v1167_v32 = vmul.f32 %v8876_v29, %v9527_v31  ;;  %v1173_v51 = vmul.f32 %v8882_v55, %v9527_v31  ;;  %v1175_v40 = vmul.f32 %v8884_v45, %v9527_v31  ;;  %v1176_v43 = vmul.f32 %v8885_v41, %v9527_v31 }
 0x1cc   : > { %v9543_v6 = vrot.slane %v1156_v3, %v9530_v33 }
 0x1ce   : > { %v1199_v53 = vadd.f32 %v9543_v6, %v1161_v11  ;;  %v1200_v3 = vadd.f32 %v9543_v6, %v1162_v28  ;;  %v1230_v9 = vadd.f32 %v9543_v6, %v1192_v4  ;;  %v1201_v12 = vadd.f32 %v9543_v6, %v1163_v18 }
 0x1cf   : > { %v1202_v14 = vadd.f32 %v9543_v6, %v1164_v19  ;;  %v1203_v35 = vadd.f32 %v9543_v6, %v1165_v22  ;;  %v1204_v18 = vadd.f32 %v9543_v6, %v1166_v26  ;;  %v1205_v22 = vadd.f32 %v9543_v6, %v1167_v32 }
 0x1d0   : > { %v9569_v29 = vmax.f32 %v1199_v53, 0.0  ;;  %v1232_v11 = vmax.f32 %v1200_v3, 0.0  ;;  %v9571_v30 = vmax.f32 %v1230_v9, 0.0  ;;  %v9573_v28 = vmax.f32 %v1201_v12, 0.0 }
 0x1d1   : > { %v9575_v4 = vmax.f32 %v1202_v14, 0.0  ;;  %v9578_v19 = vmax.f32 %v1203_v35, 0.0  ;;  %v1206_v32 = vadd.f32 %v9543_v6, %v1168_v20  ;;  %v13037_v20 = vmov 0 }
 0x1d2   : > { %13034 = vst [vmem:[#allocation35_spill] sm:$0xff] %v9569_v29  ;;  %v1263_v1 = vrot.slane %v9569_v29, 7  ;;  %v1264_v24 = vrot.slane %v1232_v11, 7  ;;  %v12775_v0 = vrot.slane %v9569_v29, 1  ;;  %v1425_v58 = vrot.slane %v1232_v11, 1 }
 0x1d3   : > { %v1617_v3 = vpack.c.bf16 %v1232_v11, %v9569_v29  ;;  %v12776_v26 = vrot.slane %v9571_v30, 7  ;;  %v12777_v9 = vrot.slane %v9573_v28, 1  ;;  %v1265_v39 = vrot.slane %v9573_v28, 7 }
 0x1d4   : > { %v9597_v12 = vsel %vm12835_vm2, %v12775_v0, %v1425_v58  ;;  %v1326_v37 = vsel %vm12836_vm3, %v1263_v1, %v1264_v24  ;;  %v12778_v14 = vrot.slane %v9575_v4, 7  ;;  %v13038_v20 = vsel %vm9610_vm7, 4294967295, %v13037_v20  ;;  %v8881_v0 = vld [vmem:[%s9367_s11 + $0x58] sm:$0xff] }
 0x1d5   : > { %2005 = vmatprep.mubr.bf16.mxu1 %v1617_v3  ;;  %2479 = vmatprep.mubr.bf16.mxu0 %v1617_v3  ;;  %v1327_v35 = vsel %vm12836_vm3, %v12776_v26, %v1263_v1  ;;  %13039 = vst [vmem:[#allocation36_spill] sm:$0xff] %v13038_v20  ;;  %v9618_v11 = vsel %vm12835_vm2, %v1425_v58, %v12777_v9  ;;  %v9620_v3 = vmax.f32 %v1204_v18, 0.0  ;;  %v9634_v18 = vmax.f32 %v1205_v22, 0.0 }
 0x1d6   : > { %v1170_v1 = vmul.f32 %v8879_v16, %v9527_v31  ;;  %v6214_v10 = vpack.c.bf16 %v1326_v37, %v1327_v35  ;;  %v1172_v57 = vmul.f32 %v8881_v0, %v9527_v31  ;;  %v9632_v58 = vpack.c.bf16 %v9575_v4, %v9573_v28  ;;  %v8883_v16 = vld [vmem:[%s9367_s11 + $0x68] sm:$0xff] }
 0x1d7   : > { %v9636_v26 = vmax.f32 %v1206_v32, 0.0  ;;  %v1174_v37 = vmul.f32 %v8883_v16, %v9527_v31  ;;  %v1324_v55 = vsel %vm12836_vm3, %v1265_v39, %v12778_v14  ;;  %v1267_v0 = vrot.slane %v9578_v19, 7  ;;  %v8886_v14 = vld [vmem:[%s9367_s11 + $0x80] sm:$0xff] }
 0x1d8   : > { %13040 = vst [vmem:[#allocation37_spill] sm:$0xff] %v9632_v58  ;;  %6215 = vmatmul.mubr.msk.bf16.vlgmr.msra.gmra.mrb[0].mxu1 %vm9610_vm7, %v6214_v10  ;;  %6343 = vmatmul.mubr.msk.bf16.gmra.mrb[8].mxu0 %vm9610_vm7, %v6214_v10  ;;  %v1207_v22 = vadd.f32 %v9543_v6, %v1169_v25  ;;  %v1208_v32 = vadd.f32 %v9543_v6, %v1170_v1  ;;  %v1268_v10 = vrot.slane %v9620_v3, 7  ;;  %v1269_v2 = vrot.slane %v9634_v18, 7 }
 0x1d9   : > { %7851 = vmatpush3.bf16.msra.mxu1 %v9458_v36  ;;  %2013 = vmatprep.mubr.bf16.mxu1 %v9632_v58  ;;  %v1325_v35 = vsel %vm12836_vm3, %v1264_v24, %v1265_v39  ;;  %v1270_v16 = vrot.slane %v9636_v26, 7  ;;  %v8754_v39 = vld [vmem:[#allocation6 + $0x150] sm:$0xff]   ;;  %v1209_v1 = vadd.f32 %v9543_v6, %v1171_v60  ;;  %v1210_v9 = vadd.f32 %v9543_v6, %v1172_v57  ;;  %v8887_v60 = vld [vmem:[%s9367_s11 + $0x88] sm:$0xff] }
 0x1da   : > { %2487 = vmatprep.mubr.bf16.mxu0 %v9632_v58  ;;  %7852 = vmatprep.subr.bf16.mxu1 %v8753_v62  ;;  %v9665_v25 = vmax.f32 %v1207_v22, 0.0  ;;  %v9667_v24 = vmax.f32 %v1208_v32, 0.0  ;;  %v1211_v49 = vadd.f32 %v9543_v6, %v1173_v51  ;;  %v1212_v47 = vadd.f32 %v9543_v6, %v1174_v37 }
 0x1db   : > { %v1177_v20 = vmul.f32 %v8886_v14, %v9527_v31  ;;  %v1178_v57 = vmul.f32 %v8887_v60, %v9527_v31  ;;  %v13043_v51 = vmov 0  ;;  %v9690_v45 = vpack.c.bf16 %v1324_v55, %v1325_v35 }
 0x1dc   : > { %v1271_v22 = vrot.slane %v9665_v25, 7  ;;  %v1272_v32 = vrot.slane %v9667_v24, 7  ;;  %v13044_v51 = vsel %vm9686_vm9, 4294967295, %v13043_v51  ;;  %v9694_v37 = vpack.c.bf16 %v9620_v3, %v9578_v19 }
 0x1dd   : > { %13045 = vst [vmem:[#allocation38_spill] sm:$0xff] %v13044_v51  ;;  %13046 = vst [vmem:[#allocation39_spill] sm:$0xff] %v9690_v45  ;;  %7853 = vmatpush3.bf16.msra.mxu1 %v8753_v62  ;;  %v9696_v41 = vmax.f32 %v1209_v1, 0.0  ;;  %v9698_v14 = vmax.f32 %v1210_v9, 0.0  ;;  %v1322_v53 = vsel %vm12836_vm3, %v1267_v0, %v1268_v10  ;;  %v13048_v60 = vrot.slane %v9575_v4, 7 }
 0x1de   : > { %13047 = vst [vmem:[#allocation40_spill] sm:$0xff] %v9694_v37  ;;  %v1320_v35 = vsel %vm12836_vm3, %v1269_v2, %v1270_v16  ;;  %v1321_v62 = vsel %vm12836_vm3, %v1268_v10, %v1269_v2  ;;  %7854 = vmatprep.subr.bf16.mxu1 %v8754_v39  ;;  %v1318_v9 = vsel %vm12836_vm3, %v1271_v22, %v1272_v32  ;;  %v9714_v33 = vmax.f32 %v1211_v49, 0.0  ;;  %v8888_v2 = vld [vmem:[%s9367_s11 + $0x90] sm:$0xff]  ;;  %v8889_v49 = vld [vmem:[%s9367_s11 + $0x98] sm:$0xff] }
 0x1df   : > { %v1323_v55 = vsel %vm12836_vm3, %v13048_v60, %v1267_v0  ;;  %v1319_v1 = vsel %vm12836_vm3, %v1270_v16, %v1271_v22  ;;  %v9716_v23 = vmax.f32 %v1212_v47, 0.0  ;;  %v1273_v0 = vrot.slane %v9696_v41, 7 }
 0x1e0   : > { %6219 = vmatmul.mubr.msk.bf16.gmra.mrb[4].mxu1 %vm9686_vm9, %v9690_v45  ;;  %6347 = vmatmul.mubr.msk.bf16.gmra.mrb[12].mxu0 %vm9686_vm9, %v9690_v45  ;;  %v1274_v10 = vrot.slane %v9698_v14, 7  ;;  %v1179_v16 = vmul.f32 %v8888_v2, %v9527_v31  ;;  %v1180_v47 = vmul.f32 %v8889_v49, %v9527_v31  ;;  %v9732_v22 = vpack.c.bf16 %v1322_v53, %v1323_v55 }
 0x1e1   : > { %2021 = vmatprep.mubr.bf16.mxu1 %v9694_v37  ;;  %2495 = vmatprep.mubr.bf16.mxu0 %v9694_v37  ;;  %v9736_v60 = vpack.c.bf16 %v9636_v26, %v9634_v18  ;;  %v9738_v63 = vpack.c.bf16 %v1320_v35, %v1321_v62  ;;  %v13052_v2 = vand.u32 15, %v9470_v42  ;;  %v9751_v49 = vpack.c.bf16 %v9667_v24, %v9665_v25 }
 0x1e2   : > { %13049 = vst [vmem:[#allocation41_spill] sm:$0xff] %v9732_v22  ;;  %v9753_v53 = vpack.c.bf16 %v1318_v9, %v1319_v1  ;;  %7855 = vmatpush3.bf16.msra.mxu1 %v8754_v39  ;;  %v1213_v55 = vadd.f32 %v9543_v6, %v1175_v40  ;;  %v1214_v35 = vadd.f32 %v9543_v6, %v1176_v43  ;;  %v8756_v39 = vld [vmem:[#allocation6 + $0x160] sm:$0xff]   ;;  %v8891_v43 = vld [vmem:[%s9367_s11 + $0xa8] sm:$0xff] }
 0x1e3   : > { %13050 = vst [vmem:[#allocation42_spill] sm:$0xff] %v9736_v60  ;;  %13051 = vst [vmem:[#allocation43_spill] sm:$0xff] %v9738_v63  ;;  %vm9745_vm10 = vcmp.ne.s32.totalorder %v13052_v2, 0  ;;  %v9759_v42 = vpack.c.bf16 %v9698_v14, %v9696_v41  ;;  %v9763_v62 = vpack.c.bf16 %v9716_v23, %v9714_v33  ;;  %7856 = vmatprep.subr.bf16.mxu1 %v8755_v13  ;;  %v1275_v2 = vrot.slane %v9714_v33, 7 }
 0x1e4   : > { %13055 = vst [vmem:[#allocation44_spill] sm:$0xff] %v9751_v49  ;;  %v1216_v9 = vadd.f32 %v9543_v6, %v1178_v57  ;;  %v1316_v40 = vsel %vm12836_vm3, %v1273_v0, %v1274_v10  ;;  %v1217_v1 = vadd.f32 %v9543_v6, %v1179_v16  ;;  %v1218_v27 = vadd.f32 %v9543_v6, %v1180_v47  ;;  %vm9864_vm13 = vmpackc.low %vm12849_vm6, %vm9745_vm10 }
 0x1e5   : > { %13056 = vst [vmem:[#allocation45_spill] sm:$0xff] %v9763_v62  ;;  %v1317_v57 = vsel %vm12836_vm3, %v1272_v32, %v1273_v0  ;;  %v1181_v37 = vmul.f32 %v8890_v5, %v9527_v31  ;;  %v1182_v16 = vmul.f32 %v8891_v43, %v9527_v31  ;;  %v9787_v47 = vmax.f32 %v1213_v55, 0.0 }
 0x1e6   : > { %v9781_v7 = vmax.f32 %v1216_v9, 0.0  ;;  %7857 = vmatpush3.bf16.msra.mxu1 %v8755_v13  ;;  %v9789_v36 = vmax.f32 %v1214_v35, 0.0  ;;  %v9791_v51 = vmax.f32 %v1217_v1, 0.0  ;;  %v9793_v45 = vmax.f32 %v1218_v27, 0.0  ;;  %v8758_v9 = vld [vmem:[#allocation6 + $0x168] sm:$0xff]  }
 0x1e7   : > { %v9796_v58 = vadd.f32 %v9543_v6, %v1177_v20  ;;  %7858 = vmatprep.subr.bf16.mxu1 %v8756_v39  ;;  %v1219_v5 = vadd.f32 %v9543_v6, %v1181_v37  ;;  %v1220_v0 = vadd.f32 %v9543_v6, %v1182_v16  ;;  %v9807_v27 = vpack.c.bf16 %v1316_v40, %v1317_v57 }
 0x1e8   : > { %v12809_v32 = vrot.slane %v9781_v7, 7  ;;  %6223 = vmatmul.mubr.msk.bf16.gmra.mrb[8].mxu1 %vm9775_vm11, %v9732_v22  ;;  %6351 = vmatmul.mubr.msk.bf16.gmra.mrb[16].mxu0 %vm9775_vm11, %v9732_v22  ;;  %v9811_v13 = vpack.c.bf16 %v9793_v45, %v9791_v51  ;;  %v1281_v20 = vrot.slane %v9791_v51, 7  ;;  %v1282_v37 = vrot.slane %v9793_v45, 7  ;;  %v8894_v22 = vld [vmem:[%s9367_s11 + $0xc0] sm:$0xff] }
 0x1e9   : > { %2029 = vmatprep.mubr.bf16.mxu1 %v9736_v60  ;;  %2503 = vmatprep.mubr.bf16.mxu0 %v9736_v60  ;;  %v13061_v55 = vrot.slane %v9716_v23, 7  ;;  %v9825_v40 = vsel %vm12836_vm3, %v1274_v10, %v1275_v2  ;;  %v9827_v43 = vmax.f32 %v1219_v5, 0.0  ;;  %v9829_v1 = vmax.f32 %v1220_v0, 0.0  ;;  %v8893_v0 = vld [vmem:[%s9367_s11 + $0xb8] sm:$0xff] }
 0x1ea   : > { %13060 = vst [vmem:[#allocation47_spill] sm:$0xff] %v9811_v13  ;;  %v13062_v57 = vand.u32 15, %v9474_v44  ;;  %7859 = vmatpush3.bf16.msra.mxu1 %v8756_v39  ;;  %v1309_v10 = vsel %vm12836_vm3, %v12809_v32, %v1281_v20  ;;  %v1184_v44 = vmul.f32 %v8893_v0, %v9527_v31  ;;  %v1185_v0 = vmul.f32 %v8894_v22, %v9527_v31 }
 0x1eb   : > { %v9821_v35 = vsel %vm12836_vm3, %v1275_v2, %v13061_v55  ;;  %v1308_v55 = vsel %vm12836_vm3, %v1281_v20, %v1282_v37  ;;  %v8892_v2 = vld [vmem:[%s9367_s11 + $0xb0] sm:$0xff]  ;;  %v9851_v39 = vpack.c.bf16 %v9829_v1, %v9827_v43  ;;  %7860 = vmatprep.subr.bf16.mxu1 %v8758_v9  ;;  %v1283_v60 = vrot.slane %v9827_v43, 7 }
 0x1ec   : > { %vm9833_vm12 = vcmp.ne.s32.totalorder %v13062_v57, 0  ;;  %v1183_v5 = vmul.f32 %v8892_v2, %v9527_v31  ;;  %v9847_v57 = vpack.c.bf16 %v1308_v55, %v1309_v10  ;;  %v1284_v17 = vrot.slane %v9829_v1, 7  ;;  %v8760_v20 = vld [vmem:[#allocation6 + $0x170] sm:$0xff]   ;;  %v8895_v55 = vld [vmem:[%s9367_s11 + $0xc8] sm:$0xff] }
 0x1ed   : > { %13066 = vst [vmem:[#allocation49_spill] sm:$0xff] %v9851_v39  ;;  %v1222_v2 = vadd.f32 %v9543_v6, %v1184_v44  ;;  %v1186_v10 = vmul.f32 %v8895_v55, %v9527_v31  ;;  %v13068_v21 = vsel %vm9864_vm13, 4294967295, %v13067_v21  ;;  %v8896_v44 = vld [vmem:[%s9367_s11 + $0xd0] sm:$0xff]  ;;  %v1188_v55 = vmul.f32 %v8897_v8, %v9527_v31  ;;  %vm9946_vm15 = vmpackc.low %vm12849_vm6, %vm9833_vm12 }
 0x1ee   : > { %13065 = vst [vmem:[#allocation48_spill] sm:$0xff] %v9847_v57  ;;  %v1221_v32 = vadd.f32 %v9543_v6, %v1183_v5  ;;  %13069 = vst [vmem:[#allocation50_spill] sm:$0xff] %v13068_v21  ;;  %v1306_v15 = vsel %vm12836_vm3, %v1283_v60, %v1284_v17  ;;  %v1307_v5 = vsel %vm12836_vm3, %v1282_v37, %v1283_v60  ;;  %7861 = vmatpush3.bf16.msra.mxu1 %v8758_v9 }
 0x1ef   : > { %v1187_v22 = vmul.f32 %v8896_v44, %v9527_v31  ;;  %v9876_v61 = vpack.c.bf16 %v1306_v15, %v1307_v5  ;;  %v9880_v59 = vmax.f32 %v1222_v2, 0.0  ;;  %v1223_v39 = vadd.f32 %v9543_v6, %v1185_v0  ;;  %7862 = vmatprep.subr.bf16.mxu1 %v8760_v20  ;;  %v8898_v44 = vld [vmem:[%s9367_s11 + $0xe0] sm:$0xff]  ;;  %v8765_v15 = vld [vmem:[#allocation6 + $0x178] sm:$0xff]  }
 0x1f0   : > { %v9878_v38 = vmax.f32 %v1221_v32, 0.0  ;;  %v1224_v57 = vadd.f32 %v9543_v6, %v1186_v10  ;;  %v1226_v37 = vadd.f32 %v9543_v6, %v1188_v55  ;;  %v1189_v8 = vmul.f32 %v8898_v44, %v9527_v31  ;;  %6227 = vmatmul.mubr.msk.bf16.gmra.mrb[12].mxu1 %vm9864_vm13, %v9738_v63  ;;  %6355 = vmatmul.mubr.msk.bf16.gmra.mrb[20].mxu0 %vm9864_vm13, %v9738_v63  ;;  %v9902_v10 = vld [vmem:[#allocation6 + $0x200] sm:$0xff]   ;;  %v8899_v44 = vld [vmem:[%s9367_s11 + $0xe8] sm:$0xff] }
 0x1f1   : > { %13070 = vst [vmem:[#allocation51_spill] sm:$0xff] %v9876_v61  ;;  %v1225_v60 = vadd.f32 %v9543_v6, %v1187_v22  ;;  %v1286_v2 = vrot.slane %v9880_v59, 7  ;;  %v9900_v0 = vmax.f32 %v1223_v39, 0.0  ;;  %13072 = vst [vmem:[#allocation53_spill] sm:$0xff] %v9902_v10  ;;  %2037 = vmatprep.mubr.bf16.mxu1 %v9751_v49  ;;  %2511 = vmatprep.mubr.bf16.mxu0 %v9751_v49  ;;  %v13073_v63 = vand.u32 15, %v9478_v46 }
 0x1f2   : > { %v9896_v32 = vpack.c.bf16 %v9880_v59, %v9878_v38  ;;  %v1285_v9 = vrot.slane %v9878_v38, 7  ;;  %v9906_v5 = vmax.f32 %v1224_v57, 0.0  ;;  %v9910_v55 = vmax.f32 %v1226_v37, 0.0  ;;  %7863 = vmatpush3.bf16.msra.mxu1 %v8760_v20  ;;  %7946 = vmatprep.subr.bf16.mxu0 %v9902_v10 }
 0x1f3   : > { %v9908_v22 = vmax.f32 %v1225_v60, 0.0  ;;  %v1190_v21 = vmul.f32 %v8899_v44, %v9527_v31  ;;  %vm9916_vm14 = vcmp.ne.s32.totalorder %v13073_v63, 0  ;;  %v1287_v60 = vrot.slane %v9900_v0, 7  ;;  %7864 = vmatprep.subr.bf16.mxu1 %v8765_v15 }
 0x1f4   : > { %13071 = vst [vmem:[#allocation52_spill] sm:$0xff] %v9896_v32  ;;  %v1304_v32 = vsel %vm12836_vm3, %v1285_v9, %v1286_v2  ;;  %v1305_v57 = vsel %vm12836_vm3, %v1284_v17, %v1285_v9  ;;  %v1227_v37 = vadd.f32 %v9543_v6, %v1189_v8  ;;  %v9931_v63 = vpack.c.bf16 %v9906_v5, %v9900_v0  ;;  %v8768_v17 = vld [vmem:[#allocation6 + $0x1c0] sm:$0xff]   ;;  %vm10029_vm5 = vmpackc.low %vm12849_vm6, %vm9916_vm14 }
 0x1f5   : > { %v9927_v44 = vpack.c.bf16 %v1304_v32, %v1305_v57  ;;  %v1288_v46 = vrot.slane %v9906_v5, 7  ;;  %v9936_v49 = vpack.c.bf16 %v9910_v55, %v9908_v22  ;;  %v1303_v20 = vsel %vm12836_vm3, %v1286_v2, %v1287_v60 }
 0x1f6   : > { %13077 = vst [vmem:[#allocation55_spill] sm:$0xff] %v9931_v63  ;;  %v1289_v8 = vrot.slane %v9908_v22, 7  ;;  %v1290_v32 = vrot.slane %v9910_v55, 7  ;;  %v1228_v9 = vadd.f32 %v9543_v6, %v1190_v21  ;;  %v13079_v57 = vmov 0  ;;  %v8900_v63 = vld [vmem:[%s9367_s11 + $0xf0] sm:$0xff]  ;;  %7865 = vmatpush3.bf16.msra.mxu1 %v8765_v15  ;;  %s13499_s11 = sld [smem:[#allocation78_spill]] }
 0x1f7   : > { %13076 = vst [vmem:[#allocation54_spill] sm:$0xff] %v9927_v44  ;;  %13078 = vst [vmem:[#allocation56_spill] sm:$0xff] %v9936_v49  ;;  %v13080_v57 = vsel %vm9946_vm15, 4294967295, %v13079_v57  ;;  %v1302_v10 = vsel %vm12836_vm3, %v1287_v60, %v1288_v46  ;;  %v9952_v49 = vmax.f32 %v1227_v37, 0.0  ;;  %v1191_v2 = vmul.f32 %v8900_v63, %v9527_v31  ;;  %7237 = vmatprep.subr.bf16.mxu1 %v8768_v17 }
 0x1f8   : > { %13081 = vst [vmem:[#allocation57_spill] sm:$0xff] %v13080_v57  ;;  %v9957_v61 = vpack.c.bf16 %v1302_v10, %v1303_v20  ;;  %v1300_v21 = vsel %vm12836_vm3, %v1289_v8, %v1290_v32  ;;  %v1301_v16 = vsel %vm12836_vm3, %v1288_v46, %v1289_v8  ;;  %v9963_v29 = vmax.f32 %v1228_v9, 0.0  ;;  %6231 = vmatmul.mubr.msk.bf16.gmra.mrb[16].mxu1 %vm9946_vm15, %v9753_v53 }
 0x1f9   : > { %v9965_v56 = vpack.c.bf16 %v1300_v21, %v1301_v16  ;;  %v1291_v60 = vrot.slane %v9952_v49, 7  ;;  %v1229_v37 = vadd.f32 %v9543_v6, %v1191_v2  ;;  %6359 = vmatmul.mubr.msk.bf16.gmra.mrb[24].mxu0 %vm9946_vm15, %v9753_v53  ;;  %v1277_v31 = vrot.slane %v9787_v47, 7  ;;  %2045 = vmatprep.mubr.bf16.mxu1 %v9759_v42 }
 0x1fa   : > { %v9978_v15 = vpack.c.bf16 %v9963_v29, %v9952_v49  ;;  %v1292_v10 = vrot.slane %v9963_v29, 7  ;;  %v9982_v63 = vadd.s32 8, %v9455_v34  ;;  %2519 = vmatprep.mubr.bf16.mxu0 %v9759_v42  ;;  %v9992_v17 = vpack.c.bf16 %v9618_v11, %v9597_v12 }
 0x1fb   : > { %v1299_v6 = vsel %vm12836_vm3, %v1290_v32, %v1291_v60  ;;  %v9988_v46 = vmax.f32 %v1229_v37, 0.0  ;;  %v9995_v20 = vadd.s32 24, %v9455_v34  ;;  %v13083_v8 = vand.u32 15, %v9482_v48 }
 0x1fc   : > { %13082 = vst [vmem:[#allocation58_spill] sm:$0xff] %v9978_v15  ;;  %v1298_v2 = vsel %vm12836_vm3, %v1291_v60, %v1292_v10  ;;  %v1427_v21 = vrot.slane %v9575_v4, 1  ;;  %v1428_v16 = vrot.slane %v9578_v19, 1  ;;  %v10010_v12 = vpack.c.bf16 %v9821_v35, %v9825_v40 }
 0x1fd   : > { %vm9999_vm4 = vcmp.ne.s32.totalorder %v13083_v8, 0  ;;  %v10012_v11 = vpack.c.bf16 %v1298_v2, %v1299_v6  ;;  %v1293_v48 = vrot.slane %v9988_v46, 7  ;;  %v10018_v8 = vpack.c.bf16 %v9789_v36, %v9787_v47 }
 0x1fe   : > { %v1484_v60 = vsel %vm12835_vm2, %v1427_v21, %v1428_v16  ;;  %v13087_v4 = vrot.slane %v9573_v28, 1  ;;  %v13088_v35 = vmov 0  ;;  %v13091_v6 = vrot.slane %v9571_v30, 7  ;;  %vm10099_vm8 = vmpackc.low %vm12849_vm6, %vm9999_vm4 }
 0x1ff   : > { %13086 = vst [vmem:[#allocation59_spill] sm:$0xff] %v10018_v8  ;;  %v13089_v35 = vsel %vm10029_vm5, 4294967295, %v13088_v35  ;;  %v1297_v28 = vsel %vm12836_vm3, %v1292_v10, %v1293_v48  ;;  %v10045_v39 = vadd.s32 40, %v9455_v34  ;;  %v1430_v32 = vrot.slane %v9634_v18, 1 }
 0x200   : > { %v1485_v19 = vsel %vm12835_vm2, %v13087_v4, %v1427_v21  ;;  %13090 = vst [vmem:[#allocation60_spill] sm:$0xff] %v13089_v35  ;;  %v1296_v2 = vsel %vm12836_vm3, %v1293_v48, %v13091_v6  ;;  %v1429_v4 = vrot.slane %v9620_v3, 1  ;;  %v10050_v44 = vadd.s32 56, %v9455_v34  ;;  %6235 = vmatmul.mubr.msk.bf16.gmra.mrb[20].mxu1 %vm10029_vm5, %v9807_v27 }
 0x201   : > { %v10040_v37 = vpack.c.bf16 %v1296_v2, %v1297_v28  ;;  %v10042_v21 = vpack.c.bf16 %v1484_v60, %v1485_v19  ;;  %v1431_v40 = vrot.slane %v9636_v26, 1  ;;  %v1432_v6 = vrot.slane %v9665_v25, 1  ;;  %6363 = vmatmul.mubr.msk.bf16.gmra.mrb[28].mxu0 %vm10029_vm5, %v9807_v27  ;;  %2053 = vmatprep.mubr.bf16.mxu1 %v9763_v62 }
 0x202   : > { %v1483_v3 = vsel %vm12835_vm2, %v1428_v16, %v1429_v4  ;;  %v10064_v18 = vadd.s32 72, %v9455_v34  ;;  %v1433_v26 = vrot.slane %v9667_v24, 1  ;;  %2527 = vmatprep.mubr.bf16.mxu0 %v9763_v62  ;;  %v1482_v25 = vsel %vm12835_vm2, %v1429_v4, %v1430_v32 }
 0x203   : > { %13092 = vst [vmem:[#allocation61_spill] sm:$0xff] %v10040_v37  ;;  %v1480_v60 = vsel %vm12835_vm2, %v1431_v40, %v1432_v6  ;;  %v1481_v16 = vsel %vm12835_vm2, %v1430_v32, %v1431_v40  ;;  %v13093_v19 = vrot.slane %v9716_v23, 7  ;;  %v10080_v2 = vpack.c.bf16 %v1482_v25, %v1483_v3 }
 0x204   : > { %v10082_v28 = vpack.c.bf16 %v1480_v60, %v1481_v16  ;;  %v10085_v10 = vmax.f32 %v9796_v58, 0.0  ;;  %v1434_v48 = vrot.slane %v9696_v41, 1  ;;  %v1479_v62 = vsel %vm12835_vm2, %v1432_v6, %v1433_v26 }
 0x205   : > { %v1313_v24 = vsel %vm12836_vm3, %v13093_v19, %v1277_v31  ;;  %v10092_v32 = vadd.s32 88, %v9455_v34  ;;  %v1435_v40 = vrot.slane %v9698_v14, 1  ;;  %v1436_v3 = vrot.slane %v9714_v33, 1 }
 0x206   : > { %v13094_v58 = vmov 0  ;;  %v13097_v25 = vrot.slane %v9789_v36, 7  ;;  %v1478_v6 = vsel %vm12835_vm2, %v1433_v26, %v1434_v48  ;;  %v10110_v60 = vadd.s32 104, %v9455_v34 }
 0x207   : > { %v13095_v58 = vsel %vm10099_vm8, 4294967295, %v13094_v58  ;;  %v10112_v14 = vpack.c.bf16 %v1478_v6, %v1479_v62  ;;  %v1476_v9 = vsel %vm12835_vm2, %v1435_v40, %v1436_v3  ;;  %v1477_v16 = vsel %vm12835_vm2, %v1434_v48, %v1435_v40 }
 0x208   : > { %13096 = vst [vmem:[#allocation62_spill] sm:$0xff] %v13095_v58  ;;  %v1312_v41 = vsel %vm12836_vm3, %v1277_v31, %v13097_v25  ;;  %v10119_v19 = vpack.c.bf16 %v1476_v9, %v1477_v16  ;;  %v1437_v25 = vrot.slane %v9716_v23, 1  ;;  %v1438_v26 = vrot.slane %v9787_v47, 1  ;;  %6239 = vmatmul.mubr.msk.bf16.gmra.mrb[24].mxu1 %vm10099_vm8, %v10010_v12 }
 0x209   : > { %6367 = vmatmul.mubr.msk.bf16.gmra.mrb[32].mxu0 %vm10099_vm8, %v10010_v12  ;;  %v13098_v62 = vand.u32 15, %v9486_v50  ;;  %v10137_v40 = vadd.s32 120, %v9455_v34  ;;  %v1439_v23 = vrot.slane %v9789_v36, 1  ;;  %2061 = vmatprep.mubr.bf16.mxu1 %v10018_v8  ;;  %v10142_v47 = vpack.c.bf16 %v1312_v41, %v1313_v24 }
 0x20a   : > { %2535 = vmatprep.mubr.bf16.mxu0 %v10018_v8  ;;  %v1474_v6 = vsel %vm12835_vm2, %v1437_v25, %v1438_v26  ;;  %v1475_v50 = vsel %vm12835_vm2, %v1436_v3, %v1437_v25  ;;  %v13101_v9 = vand.u32 15, %v9490_v54  ;;  %v1440_v33 = vrot.slane %v10085_v10, 1 }
 0x20b   : > { %vm10132_vm10 = vcmp.ne.s32.totalorder %v13098_v62, 0  ;;  %v10154_v62 = vpack.c.bf16 %v1474_v6, %v1475_v50  ;;  %v1473_v24 = vsel %vm12835_vm2, %v1438_v26, %v1439_v23  ;;  %v10161_v41 = vadd.s32 136, %v9455_v34 }
 0x20c   : > { %vm10150_vm12 = vcmp.ne.s32.totalorder %v13101_v9, 0  ;;  %v1441_v3 = vrot.slane %v9781_v7, 1  ;;  %v1442_v54 = vrot.slane %v9791_v51, 1  ;;  %v10166_v25 = vadd.s32 152, %v9455_v34  ;;  %vm10175_vm14 = vmpackc.low %vm12849_vm6, %vm10132_vm10 }
 0x20d   : > { %v1279_v6 = vrot.slane %v10085_v10, 7  ;;  %v1472_v50 = vsel %vm12835_vm2, %v1439_v23, %v1440_v33  ;;  %v1443_v9 = vrot.slane %v9793_v45, 1  ;;  %v13104_v26 = vmov 0  ;;  %vm10246_vm4 = vmpackc.low %vm12849_vm6, %vm10150_vm12 }
 0x20e   : > { %v13105_v26 = vsel %vm10175_vm14, 4294967295, %v13104_v26  ;;  %v10179_v31 = vpack.c.bf16 %v1472_v50, %v1473_v24  ;;  %v1470_v4 = vsel %vm12835_vm2, %v1441_v3, %v1442_v54  ;;  %v1471_v8 = vsel %vm12835_vm2, %v1440_v33, %v1441_v3 }
 0x20f   : > { %13106 = vst [vmem:[#allocation63_spill] sm:$0xff] %v13105_v26  ;;  %v10186_v23 = vpack.c.bf16 %v1470_v4, %v1471_v8  ;;  %v1444_v48 = vrot.slane %v9827_v43, 1  ;;  %v1469_v58 = vsel %vm12835_vm2, %v1442_v54, %v1443_v9  ;;  %v10194_v24 = vpack.c.bf16 %v9781_v7, %v10085_v10 }
 0x210   : > { %v10197_v50 = vadd.s32 168, %v9455_v34  ;;  %v1445_v51 = vrot.slane %v9829_v1, 1  ;;  %6243 = vmatmul.mubr.msk.bf16.gmra.mrb[28].mxu1 %vm10175_vm14, %v10142_v47  ;;  %v13107_v43 = vrot.slane %v9789_v36, 7  ;;  %v1446_v4 = vrot.slane %v9878_v38, 1 }
 0x211   : > { %6371 = vmatmul.mubr.msk.bf16.gmra.mrb[36].mxu0 %vm10175_vm14, %v10142_v47  ;;  %v1468_v10 = vsel %vm12835_vm2, %v1443_v9, %v1444_v48  ;;  %2069 = vmatprep.mubr.bf16.mxu1 %v10194_v24  ;;  %v10221_v36 = vadd.s32 184, %v9455_v34  ;;  %v1447_v9 = vrot.slane %v9880_v59, 1  ;;  %v1448_v38 = vrot.slane %v9900_v0, 1 }
 0x212   : > { %v1311_v8 = vsel %vm12836_vm3, %v13107_v43, %v1279_v6  ;;  %2543 = vmatprep.mubr.bf16.mxu0 %v10194_v24  ;;  %v10215_v1 = vpack.c.bf16 %v1468_v10, %v1469_v58  ;;  %v1467_v3 = vsel %vm12835_vm2, %v1444_v48, %v1445_v51  ;;  %v1466_v54 = vsel %vm12835_vm2, %v1445_v51, %v1446_v4 }
 0x213   : > { %v10228_v43 = vadd.s32 200, %v9455_v34  ;;  %v13108_v58 = vrot.slane %v9781_v7, 7  ;;  %v10234_v33 = vpack.c.bf16 %v1466_v54, %v1467_v3  ;;  %v1464_v45 = vsel %vm12835_vm2, %v1447_v9, %v1448_v38 }
 0x214   : > { %v1465_v59 = vsel %vm12835_vm2, %v1446_v4, %v1447_v9  ;;  %v1449_v51 = vrot.slane %v9906_v5, 1  ;;  %v13109_v7 = vmov 0  ;;  %v1450_v3 = vrot.slane %v9908_v22, 1 }
 0x215   : > { %v1310_v10 = vsel %vm12836_vm3, %v1279_v6, %v13108_v58  ;;  %v13110_v7 = vsel %vm10246_vm4, 4294967295, %v13109_v7  ;;  %v10250_v6 = vpack.c.bf16 %v1464_v45, %v1465_v59  ;;  %v10258_v9 = vadd.s32 216, %v9455_v34 }
 0x216   : > { %13111 = vst [vmem:[#allocation64_spill] sm:$0xff] %v13110_v7  ;;  %v10253_v54 = vpack.c.bf16 %v1310_v10, %v1311_v8  ;;  %v1463_v4 = vsel %vm12835_vm2, %v1448_v38, %v1449_v51  ;;  %v1462_v5 = vsel %vm12835_vm2, %v1449_v51, %v1450_v3  ;;  %v1451_v16 = vrot.slane %v9910_v55, 1 }
 0x217   : > { %v1452_v58 = vrot.slane %v9952_v49, 1  ;;  %v10265_v45 = vadd.s32 232, %v9455_v34  ;;  %v10273_v22 = vpack.c.bf16 %v1462_v5, %v1463_v4  ;;  %v1453_v38 = vrot.slane %v9963_v29, 1  ;;  %v13112_v4 = vld [vmem:[#allocation27_spill] sm:$0xff] }
 0x218   : > { %6247 = vmatmul.mubr.msk.bf16.gmra.mrb[32].mxu1 %vm10246_vm4, %v10253_v54  ;;  %v1454_v55 = vrot.slane %v9988_v46, 1  ;;  %v1461_v10 = vsel %vm12835_vm2, %v1450_v3, %v1451_v16  ;;  %v10286_v51 = vadd.s32 248, %v9455_v34  ;;  %v13113_v5 = vand.u32 15, %v13112_v4 }
 0x219   : > { %6375 = vmatmul.mubr.msk.bf16.gmra.mrb[40].mxu0 %vm10246_vm4, %v10253_v54  ;;  %2077 = vmatprep.mubr.bf16.mxu1 %v9811_v13  ;;  %v1460_v49 = vsel %vm12835_vm2, %v1451_v16, %v1452_v58  ;;  %v1459_v0 = vsel %vm12835_vm2, %v1452_v58, %v1453_v38  ;;  %v1455_v3 = vrot.slane %v9571_v30, 1  ;;  %v13114_v16 = vmov 0 }
 0x21a   : > { %2551 = vmatprep.mubr.bf16.mxu0 %v9811_v13  ;;  %vm8650_vm10 = vcmp.ne.s32.totalorder %v13113_v5, 0  ;;  %v10290_v29 = vpack.c.bf16 %v1460_v49, %v1461_v10  ;;  %v1458_v8 = vsel %vm12835_vm2, %v1453_v38, %v1454_v55  ;;  %v13117_v10 = vld [vmem:[#allocation35_spill] sm:$0xff]  ;;  %v13119_v38 = vld [vmem:[#allocation48_spill] sm:$0xff]  ;;  %v13132_v34 = vmov 0 }
 0x21b   : > { %v10297_v13 = vpack.c.bf16 %v1458_v8, %v1459_v0  ;;  %vm10301_vm12 = vmpackc.low %vm12849_vm6, %vm8650_vm10  ;;  %v1457_v49 = vsel %vm12835_vm2, %v1454_v55, %v1455_v3  ;;  %v13118_v4 = vrot.slane %v13117_v10, 1  ;;  %v13120_v0 = vld [vmem:[#allocation49_spill] sm:$0xff]  ;;  %v13121_v8 = vld [vmem:[#allocation28_spill] sm:$0xff]  ;;  %v7117_v10 = vpop.f32.mrb[4].mxu0 }
 0x21c   : > { %v13115_v16 = vsel %vm10301_vm12, 4294967295, %v13114_v16  ;;  %v13122_v55 = vand.u32 15, %v13121_v8  ;;  %v7118_v48 = vpop.f32.mrb[5].mxu0  ;;  %v13128_v8 = vld [vmem:[#allocation52_spill] sm:$0xff] }
 0x21d   : > { %13116 = vst [vmem:[#allocation27_spill] sm:$0xff] %v13115_v16  ;;  %v1488_v5 = vsel %vm12835_vm2, %v1455_v3, %v13118_v4  ;;  %v10323_v3 = vadd.f32 %v7118_v48, %v7117_v10  ;;  %v13127_v4 = vld [vmem:[#allocation51_spill] sm:$0xff] }
 0x21e   : > { %v10311_v58 = vpack.c.bf16 %v1488_v5, %v1457_v49  ;;  %vm8651_vm10 = vcmp.ne.s32.totalorder %v13122_v55, 0  ;;  %v13124_v49 = vmov 0  ;;  %v7120_v5 = vpop.f32.mrb[6].mxu0  ;;  %v13129_v55 = vld [vmem:[#allocation29_spill] sm:$0xff] }
 0x21f   : > { %13123 = vst [vmem:[#allocation35_spill] sm:$0xff] %v10323_v3  ;;  %vm10326_vm2 = vmpackc.low %vm12849_vm6, %vm8651_vm10  ;;  %v7121_v48 = vpop.f32.mrb[7].mxu0  ;;  %v13130_v10 = vand.u32 15, %v13129_v55  ;;  %v13135_v3 = vld [vmem:[#allocation54_spill] sm:$0xff] }
 0x220   : > { %6251 = vmatmul.mubr.msk.bf16.gmra.mrb[36].mxu1 %vm10301_vm12, %v13119_v38  ;;  %v13125_v49 = vsel %vm10326_vm2, 4294967295, %v13124_v49  ;;  %v10340_v59 = vadd.f32 %v7121_v48, %v7120_v5  ;;  %v13137_v55 = vld [vmem:[#allocation30_spill] sm:$0xff]  ;;  %v13139_v48 = vmov 0 }
 0x221   : > { %6379 = vmatmul.mubr.msk.bf16.gmra.mrb[44].mxu0 %vm10301_vm12, %v13119_v38  ;;  %2085 = vmatprep.mubr.bf16.mxu1 %v13120_v0  ;;  %13126 = vst [vmem:[#allocation48_spill] sm:$0xff] %v13125_v49  ;;  %vm8652_vm10 = vcmp.ne.s32.totalorder %v13130_v10, 0  ;;  %v13138_v5 = vand.u32 15, %v13137_v55  ;;  %v13142_v10 = vld [vmem:[#allocation56_spill] sm:$0xff] }
 0x222   : > { %2559 = vmatprep.mubr.bf16.mxu0 %v13120_v0  ;;  %13131 = vst [vmem:[#allocation49_spill] sm:$0xff] %v10340_v59  ;;  %vm10343_vm3 = vmpackc.low %vm12849_vm6, %vm8652_vm10  ;;  %v13143_v59 = vld [vmem:[#allocation31_spill] sm:$0xff] }
 0x223   : > { %v13133_v34 = vsel %vm10343_vm3, 4294967295, %v13132_v34  ;;  %vm8653_vm1 = vcmp.ne.s32.totalorder %v13138_v5, 0  ;;  %v13144_v55 = vand.u32 15, %v13143_v59  ;;  %v13145_v5 = vmov 0 }
 0x224   : > { %13134 = vst [vmem:[#allocation28_spill] sm:$0xff] %v13133_v34  ;;  %vm10358_vm10 = vmpackc.low %vm12849_vm6, %vm8653_vm1 }
 0x225   : > { %v13140_v48 = vsel %vm10358_vm10, 4294967295, %v13139_v48  ;;  %vm8654_vm0 = vcmp.ne.s32.totalorder %v13144_v55, 0  ;;  %v13150_v55 = vmov 0 }
 0x226   : > { %13141 = vst [vmem:[#allocation51_spill] sm:$0xff] %v13140_v48  ;;  %vm10373_vm1 = vmpackc.low %vm12849_vm6, %vm8654_vm0  ;;  %v10394_v48 = vpack.c.bf16 %v9571_v30, %v9988_v46  ;;  %v13157_v30 = vand.u32 15, %v9995_v20  ;;  %v13159_v46 = vmov 0  ;;  %v13169_v20 = vld [vmem:[#allocation53_spill] sm:$0xff] }
 0x227   : > { %v13146_v5 = vsel %vm10373_vm1, 4294967295, %v13145_v5 }
 0x228   : > { %6255 = vmatmul.mubr.msk.bf16.gmra.mrb[40].mxu1 %vm10326_vm2, %v13127_v4  ;;  %13147 = vst [vmem:[#allocation29_spill] sm:$0xff] %v13146_v5 }
 0x229   : > { %6383 = vmatmul.mubr.msk.bf16.gmra.mrb[48].mxu0 %vm10326_vm2, %v13127_v4  ;;  %2093 = vmatprep.mubr.bf16.mxu1 %v13128_v8 }
 0x22a   : > { %2567 = vmatprep.mubr.bf16.mxu0 %v13128_v8  ;;  %v13136_v8 = vld [vmem:[#allocation55_spill] sm:$0xff] }
 0x22b   : > { %13153 = vst [vmem:[#allocation55_spill] sm:$0xff] %v10394_v48 }
 0x230   : > { %6259 = vmatmul.mubr.msk.bf16.gmra.mrb[44].mxu1 %vm10343_vm3, %v13135_v3 }
 0x231   : > { %6387 = vmatmul.mubr.msk.bf16.gmra.mrb[52].mxu0 %vm10343_vm3, %v13135_v3  ;;  %2101 = vmatprep.mubr.bf16.mxu1 %v13136_v8 }
 0x232   : > { %2575 = vmatprep.mubr.bf16.mxu0 %v13136_v8 }
 0x238   : > { %6263 = vmatmul.mubr.msk.bf16.gmra.mrb[48].mxu1 %vm10358_vm10, %v9957_v61 }
 0x239   : > { %6391 = vmatmul.mubr.msk.bf16.gmra.mrb[56].mxu0 %vm10358_vm10, %v9957_v61  ;;  %2109 = vmatprep.mubr.bf16.mxu1 %v13142_v10  ;;  %vm13158_vm10 = vmmov 1  }
 0x23a   : > { %2583 = vmatprep.mubr.bf16.mxu0 %v13142_v10  ;;  %v13148_v10 = vld [vmem:[#allocation32_spill] sm:$0xff] }
 0x23b   : > { %v13149_v59 = vand.u32 15, %v13148_v10  ;;  %v13154_v10 = vmov 0  }
 0x23d   : > { %vm8655_vm7 = vcmp.ne.s32.totalorder %v13149_v59, 0  ;;  %v13155_v59 = vand.u32 15, %v9741_v52  ;;  %v13165_v52 = vmov 0 }
 0x23e   : > { %vm10388_vm0 = vmpackc.low %vm12849_vm6, %vm8655_vm7 }
 0x23f   : > { %v13151_v55 = vsel %vm10388_vm0, 4294967295, %v13150_v55  ;;  %vm8656_vm7 = vcmp.ne.s32.totalorder %v13155_v59, 0  ;;  %v8780_v59 = vld [vmem:[#allocation6 + $0x210] sm:$0xff]  }
 0x240   : > { %6267 = vmatmul.mubr.msk.bf16.gmra.mrb[52].mxu1 %vm10373_vm1, %v9965_v56  ;;  %13152 = vst [vmem:[#allocation54_spill] sm:$0xff] %v13151_v55  ;;  %vm10411_vm3 = vmpackc.low %vm13158_vm10, %vm8656_vm7  ;;  %v13162_v55 = vmov 0 }
 0x241   : > { %6395 = vmatmul.mubr.msk.bf16.gmra.mrb[60].mxu0 %vm10373_vm1, %v9965_v56  ;;  %2117 = vmatprep.mubr.bf16.mxu1 %v9978_v15  ;;  %vm8658_vm1 = vcmp.ne.s32.totalorder %v13157_v30, 15  ;;  %v13160_v46 = vsel %vm10411_vm3, 4294967295, %v13159_v46  ;;  %v13170_v30 = vand.u32 15, %v10050_v44  ;;  %v8781_v44 = vld [vmem:[#allocation6 + $0x218] sm:$0xff]  }
 0x242   : > { %2591 = vmatprep.mubr.bf16.mxu0 %v9978_v15  ;;  %v13156_v15 = vand.u32 15, %v9982_v63  ;;  %13161 = vst [vmem:[#allocation30_spill] sm:$0xff] %v13160_v46  ;;  %vm10421_vm2 = vmpackc.low %vm8658_vm1, %vm13158_vm10  ;;  %v8777_v63 = vld [vmem:[#allocation6 + $0x208] sm:$0xff]   ;;  %v13171_v46 = vmov 0 }
 0x243   : > { %v13166_v52 = vsel %vm10421_vm2, 4294967295, %v13165_v52  ;;  %vm8660_vm1 = vcmp.ne.s32.totalorder %v13170_v30, 15  ;;  %v13179_v30 = vmov 0 }
 0x244   : > { %vm8657_vm6 = vcmp.ne.s32.totalorder %v13156_v15, 15  ;;  %13167 = vst [vmem:[#allocation32_spill] sm:$0xff] %v13166_v52  ;;  %v13168_v15 = vand.u32 15, %v10045_v39  ;;  %v8771_v39 = vld [vmem:[#allocation6 + $0x188] sm:$0xff]  }
 0x248   : > { %6271 = vmatmul.mubr.msk.bf16.gmra.mrb[56].mxu1 %vm10388_vm0, %v10012_v11 }
 0x249   : > { %6399 = vmatmul.mubr.msk.bf16.gmra.mrb[64].mxu0 %vm10388_vm0, %v10012_v11  ;;  %2125 = vmatprep.mubr.bf16.mxu1 %v10394_v48  ;;  %vm10416_vm0 = vmpackc.low %vm8657_vm6, %vm13158_vm10  ;;  %vm8659_vm6 = vcmp.ne.s32.totalorder %v13168_v15, 15  ;;  %v8772_v15 = vld [vmem:[#allocation6 + $0x1d0] sm:$0xff]   ;;  %v13190_v48 = vmov 0 }
 0x24a   : > { %7914 = vmatprep.mubr.bf16.mxu0 %v13154_v10  ;;  %v13163_v55 = vsel %vm10416_vm0, 4294967295, %v13162_v55  ;;  %vm10443_vm7 = vmpackc.low %vm8659_vm6, %vm13158_vm10 }
 0x24b   : > { %13164 = vst [vmem:[#allocation31_spill] sm:$0xff] %v13163_v55  ;;  %v13172_v46 = vsel %vm10443_vm7, 4294967295, %v13171_v46  ;;  %v8770_v55 = vld [vmem:[#allocation6 + $0x1c8] sm:$0xff]  }
 0x24c   : > { %13173 = vst [vmem:[#allocation53_spill] sm:$0xff] %v13172_v46 }
 0x250   : > { %6275 = vmatmul.mubr.msk.bf16.gmra.mrb[60].mxu1 %vm10411_vm3, %v10040_v37  ;;  %v13174_v37 = vmov 0 }
 0x251   : > { %7915 = vmatmul.mubr.msk.bf16.vlgmr.msra.gmra.mrb[68].mxu0 %vm10416_vm0, %v9992_v17  ;;  %7866 = vmatprep.mubr.msk.bf16.mxu1 %vm10416_vm0, %v9992_v17  ;;  %v8769_v17 = vld [vmem:[#allocation6 + $0x180] sm:$0xff]   ;;  %vm10448_vm0 = vmpackc.low %vm8660_vm1, %vm13158_vm10 }
 0x252   : > { %7918 = vmatprep.mubr.msk.bf16.mxu0 %vm10421_vm2, %v10042_v21  ;;  %7947 = vmatpush3.bf16.msra.mxu0 %v13169_v20  ;;  %v13175_v37 = vsel %vm10448_vm0, 4294967295, %v13174_v37  ;;  %v13178_v20 = vand.u32 15, %v10092_v32  ;;  %v8785_v32 = vld [vmem:[#allocation6 + $0x228] sm:$0xff]  }
 0x253   : > { %7948 = vmatprep.subr.bf16.mxu0 %v8777_v63  ;;  %13176 = vst [vmem:[#allocation65_spill] sm:$0xff] %v13175_v37 }
 0x254   : > { %vm8662_vm1 = vcmp.ne.s32.totalorder %v13178_v20, 15  ;;  %v13187_v20 = vmov 0 }
 0x255   : > { %vm10474_vm12 = vmpackc.low %vm8662_vm1, %vm13158_vm10 }
 0x256   : > { %7949 = vmatpush3.bf16.msra.mxu0 %v8777_v63  ;;  %v13177_v63 = vand.u32 15, %v10064_v18  ;;  %v8773_v18 = vld [vmem:[#allocation6 + $0x190] sm:$0xff]  }
 0x257   : > { %7950 = vmatprep.subr.bf16.mxu0 %v8780_v59 }
 0x258   : > { %7867 = vmatmul.mubr.msk.bf16.vlgmr.msra.gmra.mrb[64].mxu1 %vm10421_vm2, %v10042_v21  ;;  %vm8661_vm6 = vcmp.ne.s32.totalorder %v13177_v63, 15  ;;  %v8774_v63 = vld [vmem:[#allocation6 + $0x1d8] sm:$0xff]  }
 0x259   : > { %7919 = vmatmul.mubr.msk.bf16.gmra.mrb[72].mxu0 %vm10443_vm7, %v10080_v2  ;;  %7238 = vmatpush3.bf16.msra.mxu1 %v8769_v17  ;;  %vm10469_vm3 = vmpackc.low %vm8661_vm6, %vm13158_vm10  ;;  %v13182_v17 = vmov 0 }
 0x25a   : > { %7870 = vmatprep.mubr.msk.bf16.mxu1 %vm10443_vm7, %v10080_v2  ;;  %7922 = vmatprep.mubr.msk.bf16.mxu0 %vm10448_vm0, %v10082_v28  ;;  %v13180_v30 = vsel %vm10469_vm3, 4294967295, %v13179_v30  ;;  %v13183_v17 = vsel %vm10474_vm12, 4294967295, %v13182_v17 }
 0x25b   : > { %7239 = vmatprep.subr.bf16.mxu1 %v8770_v55  ;;  %7951 = vmatpush3.bf16.msra.mxu0 %v8780_v59  ;;  %13181 = vst [vmem:[#allocation66_spill] sm:$0xff] %v13180_v30  ;;  %13184 = vst [vmem:[#allocation67_spill] sm:$0xff] %v13183_v17  ;;  %v8784_v55 = vld [vmem:[#allocation6 + $0x220] sm:$0xff]   ;;  %v13185_v59 = vand.u32 15, %v10110_v60 }
 0x25c   : > { %7952 = vmatprep.subr.bf16.mxu0 %v8781_v44  ;;  %v8779_v60 = vld [vmem:[#allocation6 + $0x1a0] sm:$0xff]  }
 0x25d   : > { %7240 = vmatpush3.bf16.msra.mxu1 %v8771_v39  ;;  %vm8663_vm6 = vcmp.ne.s32.totalorder %v13185_v59, 15  ;;  %v13186_v39 = vand.u32 15, %v10137_v40  ;;  %v8782_v40 = vld [vmem:[#allocation6 + $0x1e8] sm:$0xff]   ;;  %v13194_v59 = vand.u32 15, %v10166_v25  ;;  %v8790_v25 = vld [vmem:[#allocation6 + $0x1f8] sm:$0xff]  }
 0x25e   : > { %7241 = vmatprep.subr.bf16.mxu1 %v8772_v15  ;;  %v8778_v15 = vld [vmem:[#allocation6 + $0x1e0] sm:$0xff]   ;;  %vm10495_vm4 = vmpackc.low %vm8663_vm6, %vm13158_vm10 }
 0x25f   : > { %7953 = vmatpush3.bf16.msra.mxu0 %v8781_v44  ;;  %v8775_v44 = vld [vmem:[#allocation6 + $0x198] sm:$0xff]   ;;  %vm8664_vm1 = vcmp.ne.s32.totalorder %v13186_v39, 15  ;;  %v13188_v20 = vsel %vm10495_vm4, 4294967295, %v13187_v20  ;;  %v13195_v39 = vmov 0 }
 0x260   : > { %7871 = vmatmul.mubr.msk.bf16.gmra.mrb[68].mxu1 %vm10448_vm0, %v10082_v28  ;;  %7954 = vmatprep.subr.bf16.mxu0 %v8784_v55  ;;  %13189 = vst [vmem:[#allocation68_spill] sm:$0xff] %v13188_v20  ;;  %vm10500_vm14 = vmpackc.low %vm8664_vm1, %vm13158_vm10  ;;  %vm8666_vm1 = vcmp.ne.s32.totalorder %v13194_v59, 15  ;;  %v13212_v59 = vmov 0 }
 0x261   : > { %7923 = vmatmul.mubr.msk.bf16.gmra.mrb[76].mxu0 %vm10469_vm3, %v10112_v14  ;;  %7874 = vmatprep.mubr.msk.bf16.mxu1 %vm10469_vm3, %v10112_v14  ;;  %v13191_v48 = vsel %vm10500_vm14, 4294967295, %v13190_v48  ;;  %vm10526_vm5 = vmpackc.low %vm8666_vm1, %vm13158_vm10 }
 0x262   : > { %7926 = vmatprep.mubr.msk.bf16.mxu0 %vm10474_vm12, %v10119_v19  ;;  %7242 = vmatpush3.bf16.msra.mxu1 %v8773_v18  ;;  %13192 = vst [vmem:[#allocation69_spill] sm:$0xff] %v13191_v48  ;;  %v8788_v18 = vld [vmem:[#allocation6 + $0x230] sm:$0xff]  }
 0x263   : > { %7243 = vmatprep.subr.bf16.mxu1 %v8774_v63  ;;  %7955 = vmatpush3.bf16.msra.mxu0 %v8784_v55  ;;  %v8789_v55 = vld [vmem:[#allocation6 + $0x238] sm:$0xff]   ;;  %v13193_v63 = vand.u32 15, %v10161_v41  ;;  %v8787_v41 = vld [vmem:[#allocation6 + $0x1b0] sm:$0xff]  }
 0x264   : > { %7956 = vmatprep.subr.bf16.mxu0 %v8785_v32 }
 0x265   : > { %vm8665_vm6 = vcmp.ne.s32.totalorder %v13193_v63, 15  ;;  %v13206_v63 = vmov 0 }
 0x266   : > { %7244 = vmatpush3.bf16.msra.mxu1 %v8775_v44  ;;  %v8786_v44 = vld [vmem:[#allocation6 + $0x1f0] sm:$0xff]   ;;  %vm10521_vm8 = vmpackc.low %vm8665_vm6, %vm13158_vm10 }
 0x267   : > { %7245 = vmatprep.subr.bf16.mxu1 %v8778_v15  ;;  %7957 = vmatpush3.bf16.msra.mxu0 %v8785_v32  ;;  %v8783_v32 = vld [vmem:[#allocation6 + $0x1a8] sm:$0xff]   ;;  %v13196_v39 = vsel %vm10521_vm8, 4294967295, %v13195_v39  ;;  %v13198_v15 = vmov 0 }
 0x268   : > { %7875 = vmatmul.mubr.msk.bf16.gmra.mrb[72].mxu1 %vm10474_vm12, %v10119_v19  ;;  %7958 = vmatprep.subr.bf16.mxu0 %v8788_v18  ;;  %13197 = vst [vmem:[#allocation70_spill] sm:$0xff] %v13196_v39  ;;  %v13199_v15 = vsel %vm10526_vm5, 4294967295, %v13198_v15 }
 0x269   : > { %7927 = vmatmul.mubr.msk.bf16.gmra.mrb[80].mxu0 %vm10495_vm4, %v10154_v62  ;;  %7878 = vmatprep.mubr.msk.bf16.mxu1 %vm10495_vm4, %v10154_v62  ;;  %13200 = vst [vmem:[#allocation71_spill] sm:$0xff] %v13199_v15 }
 0x26a   : > { %7930 = vmatprep.mubr.msk.bf16.mxu0 %vm10500_vm14, %v10179_v31  ;;  %7246 = vmatpush3.bf16.msra.mxu1 %v8779_v60  ;;  %v13201_v60 = vand.u32 15, %v10197_v50  ;;  %v13210_v50 = vand.u32 15, %v10228_v43  ;;  %v13218_v43 = vand.u32 15, %v10265_v45  ;;  %v13222_v45 = vand.u32 15, %v10286_v51 }
 0x26b   : > { %7247 = vmatprep.subr.bf16.mxu1 %v8782_v40  ;;  %7959 = vmatpush3.bf16.msra.mxu0 %v8788_v18  ;;  %v8791_v18 = vld [vmem:[#allocation6 + $0x1b8] sm:$0xff]   ;;  %v13202_v40 = vand.u32 15, %v10221_v36  ;;  %v13211_v36 = vand.u32 15, %v10258_v9  ;;  %v13219_v9 = vmov 0 }
 0x26c   : > { %7960 = vmatprep.subr.bf16.mxu0 %v8789_v55  ;;  %vm8667_vm6 = vcmp.ne.s32.totalorder %v13201_v60, 15  ;;  %v13229_v60 = vld [vmem:[#allocation40_spill] sm:$0xff] }
 0x26d   : > { %vm8668_vm1 = vcmp.ne.s32.totalorder %v13202_v40, 15  ;;  %vm10547_vm15 = vmpackc.low %vm8667_vm6, %vm13158_vm10  ;;  %vm8669_vm6 = vcmp.ne.s32.totalorder %v13210_v50, 15  ;;  %v13236_v50 = vld [vmem:[#allocation21_spill] sm:$0xff] }
 0x26e   : > { %7248 = vmatpush3.bf16.msra.mxu1 %v8783_v32  ;;  %v13209_v32 = vmov 0.0|0.0  }
 0x26f   : > { %7249 = vmatprep.subr.bf16.mxu1 %v8786_v44  ;;  %7961 = vmatpush3.bf16.msra.mxu0 %v8789_v55  ;;  %v13203_v55 = vmov 0  ;;  %v13215_v44 = vmov 0 }
 0x270   : > { %7879 = vmatmul.mubr.msk.bf16.gmra.mrb[76].mxu1 %vm10500_vm14, %v10179_v31  ;;  %v13204_v55 = vsel %vm10547_vm15, 4294967295, %v13203_v55 }
 0x271   : > { %7931 = vmatmul.mubr.msk.bf16.gmra.mrb[84].mxu0 %vm10521_vm8, %v10186_v23  ;;  %7882 = vmatprep.mubr.msk.bf16.mxu1 %vm10521_vm8, %v10186_v23  ;;  %13205 = vst [vmem:[#allocation72_spill] sm:$0xff] %v13204_v55  ;;  %vm10552_vm8 = vmpackc.low %vm8668_vm1, %vm13158_vm10  ;;  %vm8670_vm1 = vcmp.ne.s32.totalorder %v13211_v36, 15  ;;  %v13237_v36 = vld [vmem:[#allocation43_spill] sm:$0xff] }
 0x272   : > { %7934 = vmatprep.mubr.msk.bf16.mxu0 %vm10526_vm5, %v10215_v1  ;;  %7250 = vmatpush3.bf16.msra.mxu1 %v8787_v41  ;;  %v13207_v63 = vsel %vm10552_vm8, 4294967295, %v13206_v63  ;;  %vm10579_vm13 = vmpackc.low %vm8670_vm1, %vm13158_vm10  ;;  %v13223_v41 = vmov 0 }
 0x273   : > { %7251 = vmatprep.subr.bf16.mxu1 %v8790_v25  ;;  %13208 = vst [vmem:[#allocation73_spill] sm:$0xff] %v13207_v63  ;;  %v13216_v44 = vsel %vm10579_vm13, 4294967295, %v13215_v44  ;;  %v13226_v25 = vld [vmem:[#allocation37_spill] sm:$0xff] }
 0x274   : > { %13217 = vst [vmem:[#allocation75_spill] sm:$0xff] %v13216_v44 }
 0x276   : > { %7252 = vmatpush3.bf16.msra.mxu1 %v8791_v18  ;;  %v13231_v18 = vld [vmem:[#allocation19_spill] sm:$0xff] }
 0x277   : > { %8232 = vmatprep.subr.bf16.mxu1 %v13209_v32 }
 0x278   : > { %7883 = vmatmul.mubr.msk.bf16.gmra.mrb[80].mxu1 %vm10526_vm5, %v10215_v1  ;;  %vm10574_vm5 = vmpackc.low %vm8669_vm6, %vm13158_vm10  ;;  %vm8671_vm6 = vcmp.ne.s32.totalorder %v13218_v43, 15  ;;  %v13238_v43 = vld [vmem:[#allocation50_spill] sm:$0xff] }
 0x279   : > { %7935 = vmatmul.mubr.msk.bf16.gmra.mrb[88].mxu0 %vm10547_vm15, %v10234_v33  ;;  %7886 = vmatprep.mubr.msk.bf16.mxu1 %vm10547_vm15, %v10234_v33  ;;  %v13213_v59 = vsel %vm10574_vm5, 4294967295, %v13212_v59  ;;  %vm10598_vm1 = vmpackc.low %vm8671_vm6, %vm13158_vm10  ;;  %vm8672_vm6 = vcmp.ne.s32.totalorder %v13222_v45, 15 }
 0x27a   : > { %7938 = vmatprep.mubr.msk.bf16.mxu0 %vm10552_vm8, %v10250_v6  ;;  %13214 = vst [vmem:[#allocation74_spill] sm:$0xff] %v13213_v59  ;;  %v13220_v9 = vsel %vm10598_vm1, 4294967295, %v13219_v9 }
 0x27b   : > { %13221 = vst [vmem:[#allocation76_spill] sm:$0xff] %v13220_v9 }
 0x280   : > { %7887 = vmatmul.mubr.msk.bf16.gmra.mrb[84].mxu1 %vm10552_vm8, %v10250_v6 }
 0x281   : > { %7939 = vmatmul.mubr.msk.bf16.gmra.mrb[92].mxu0 %vm10574_vm5, %v10273_v22  ;;  %7890 = vmatprep.mubr.msk.bf16.mxu1 %vm10574_vm5, %v10273_v22  ;;  %vm10617_vm5 = vmpackc.low %vm8672_vm6, %vm13158_vm10  ;;  %vm13239_vm10 = vnez %v13238_v43  ;;  %vm13240_vm6 = vnez %v13196_v39 }
 0x282   : > { %7942 = vmatprep.mubr.msk.bf16.mxu0 %vm10579_vm13, %v10290_v29  ;;  %v13224_v41 = vsel %vm10617_vm5, 4294967295, %v13223_v41 }
 0x283   : > { %13225 = vst [vmem:[#allocation77_spill] sm:$0xff] %v13224_v41 }
 0x288   : > { %7891 = vmatmul.mubr.msk.bf16.gmra.mrb[88].mxu1 %vm10579_vm13, %v10290_v29 }
 0x289   : > { %7943 = vmatmul.mubr.msk.bf16.gmra.mrb[96].mxu0 %vm10598_vm1, %v10297_v13  ;;  %7894 = vmatprep.mubr.msk.bf16.mxu1 %vm10598_vm1, %v10297_v13 }
 0x28a   : > { %7962 = vmatprep.mubr.msk.bf16.mxu0 %vm10421_vm2, %v10042_v21  ;;  %v13227_v21 = vld [vmem:[#allocation39_spill] sm:$0xff] }
 0x290   : > { %7895 = vmatmul.mubr.msk.bf16.gmra.mrb[92].mxu1 %vm10617_vm5, %v10311_v58 }
 0x291   : > { %7963 = vmatmul.mubr.msk.bf16.vlgmr.msra.gmra.mrb[68].mxu0 %vm10443_vm7, %v10080_v2  ;;  %3034 = vmatprep.mubr.bf16.mxu1 %v13226_v25  ;;  %v13230_v2 = vld [vmem:[#allocation18_spill] sm:$0xff] }
 0x292   : > { %7966 = vmatprep.mubr.msk.bf16.mxu0 %vm10448_vm0, %v10082_v28  ;;  %v13232_v28 = vld [vmem:[#allocation41_spill] sm:$0xff] }
 0x298   : > { %6463 = vmatmul.mubr.msk.bf16.vlgmr.msra.gmra.mrb[96].mxu1 %vm9686_vm9, %v13227_v21 }
 0x299   : > { %7967 = vmatmul.mubr.msk.bf16.gmra.mrb[72].mxu0 %vm10469_vm3, %v10112_v14  ;;  %3042 = vmatprep.mubr.bf16.mxu1 %v13229_v60  ;;  %v13234_v14 = vld [vmem:[#allocation42_spill] sm:$0xff] }
 0x29a   : > { %7970 = vmatprep.mubr.msk.bf16.mxu0 %vm10474_vm12, %v10119_v19  ;;  %8234 = vmatpush3.bf16.msra.mxu1 %v13230_v2  ;;  %v13235_v19 = vld [vmem:[#allocation20_spill] sm:$0xff] }
 0x29b   : > { %8235 = vmatprep.subr.bf16.mxu1 %v13209_v32 }
 0x29e   : > { %8237 = vmatpush3.bf16.msra.mxu1 %v13231_v18 }
 0x29f   : > { %8238 = vmatprep.subr.bf16.mxu1 %v13209_v32 }
 0x2a0   : > { %6467 = vmatmul.mubr.msk.bf16.gmra.mrb[100].mxu1 %vm9775_vm11, %v13232_v28 }
 0x2a1   : > { %7971 = vmatmul.mubr.msk.bf16.gmra.mrb[76].mxu0 %vm10495_vm4, %v10154_v62  ;;  %3050 = vmatprep.mubr.bf16.mxu1 %v13234_v14  ;;  %v13241_v62 = vld [vmem:[#allocation44_spill] sm:$0xff] }
 0x2a2   : > { %7974 = vmatprep.mubr.msk.bf16.mxu0 %vm10500_vm14, %v10179_v31  ;;  %8240 = vmatpush3.bf16.msra.mxu1 %v13235_v19  ;;  %vm13242_vm14 = vnez %v13199_v15  ;;  %v13243_v31 = vld [vmem:[#allocation22_spill] sm:$0xff]  ;;  %v13244_v19 = vld [vmem:[#allocation23_spill] sm:$0xff] }
 0x2a3   : > { %8241 = vmatprep.subr.bf16.mxu1 %v13209_v32 }
 0x2a6   : > { %8243 = vmatpush3.bf16.msra.mxu1 %v13236_v50 }
 0x2a7   : > { %8244 = vmatprep.subr.bf16.mxu1 %v13209_v32 }
 0x2a8   : > { %6471 = vmatmul.mubr.msk.bf16.gmra.mrb[104].mxu1 %vm13239_vm10, %v13237_v36 }
 0x2a9   : > { %7975 = vmatmul.mubr.msk.bf16.gmra.mrb[80].mxu0 %vm13240_vm6, %v10186_v23  ;;  %3058 = vmatprep.mubr.bf16.mxu1 %v13241_v62 }
 0x2aa   : > { %7978 = vmatprep.mubr.msk.bf16.mxu0 %vm13242_vm14, %v10215_v1  ;;  %8246 = vmatpush3.bf16.msra.mxu1 %v13243_v31  ;;  %vm13245_vm14 = vnez %v13080_v57 }
 0x2ab   : > { %v6981_v45 = vpop.f32.mrb[0].mxu1  ;;  %v7123_v25 = vpop.f32.mrb[8].mxu0  ;;  %8247 = vmatprep.subr.bf16.mxu1 %v13209_v32 }
 0x2ac   : > { %v6982_v21 = vpop.f32.mrb[1].mxu1  ;;  %v7124_v60 = vpop.f32.mrb[9].mxu0 }
 0x2ad   : > { %v10671_v28 = vadd.f32 %v7124_v60, %v7123_v25  ;;  %v6984_v14 = vpop.f32.mrb[2].mxu1  ;;  %v7126_v36 = vpop.f32.mrb[10].mxu0  ;;  %v10673_v50 = vadd.f32 %v6982_v21, %v6981_v45  ;;  %v13246_v45 = vld [vmem:[#allocation24_spill] sm:$0xff] }
 0x2ae   : > { %v6985_v23 = vpop.f32.mrb[3].mxu1  ;;  %v7127_v62 = vpop.f32.mrb[11].mxu0  ;;  %8249 = vmatpush3.bf16.msra.mxu1 %v13244_v19  ;;  %v13247_v19 = vld [vmem:[#allocation25_spill] sm:$0xff] }
 0x2af   : > { %v10676_v18 = vadd.f32 %v7127_v62, %v7126_v36  ;;  %v10678_v1 = vadd.f32 %v6985_v23, %v6984_v14  ;;  %8250 = vmatprep.subr.bf16.mxu1 %v13209_v32 }
 0x2b0   : > { %6475 = vmatmul.mubr.msk.bf16.gmra.mrb[108].mxu1 %vm13245_vm14, %v9753_v53 }
 0x2b1   : > { %7979 = vmatmul.mubr.msk.bf16.gmra.mrb[84].mxu0 %vm10547_vm15, %v10234_v33  ;;  %3066 = vmatprep.mubr.bf16.mxu1 %v9759_v42  ;;  %vm13249_vm15 = vnez %v13213_v59 }
 0x2b2   : > { %7982 = vmatprep.mubr.msk.bf16.mxu0 %vm10552_vm8, %v10250_v6  ;;  %8252 = vmatpush3.bf16.msra.mxu1 %v13246_v45  ;;  %vm13248_vm8 = vnez %v13089_v35 }
 0x2b3   : > { %v6987_v25 = vpop.f32.mrb[4].mxu1  ;;  %v7129_v21 = vpop.f32.mrb[12].mxu0  ;;  %8253 = vmatprep.subr.bf16.mxu1 %v13209_v32 }
 0x2b4   : > { %v6988_v60 = vpop.f32.mrb[5].mxu1  ;;  %v7130_v14 = vpop.f32.mrb[13].mxu0 }
 0x2b5   : > { %v10693_v36 = vadd.f32 %v7130_v14, %v7129_v21  ;;  %v6990_v53 = vpop.f32.mrb[6].mxu1  ;;  %v7132_v23 = vpop.f32.mrb[14].mxu0  ;;  %v10695_v62 = vadd.f32 %v6988_v60, %v6987_v25  ;;  %v13250_v21 = vld [vmem:[#allocation45_spill] sm:$0xff] }
 0x2b6   : > { %v6991_v33 = vpop.f32.mrb[7].mxu1  ;;  %v7133_v42 = vpop.f32.mrb[15].mxu0  ;;  %8255 = vmatpush3.bf16.msra.mxu1 %v13247_v19 }
 0x2b7   : > { %v10698_v31 = vadd.f32 %v7133_v42, %v7132_v23  ;;  %v10700_v6 = vadd.f32 %v6991_v33, %v6990_v53 }
 0x2b8   : > { %6479 = vmatmul.mubr.msk.bf16.gmra.mrb[112].mxu1 %vm13248_vm8, %v9807_v27 }
 0x2b9   : > { %7983 = vmatmul.mubr.msk.bf16.gmra.mrb[88].mxu0 %vm13249_vm15, %v10273_v22  ;;  %3074 = vmatprep.mubr.bf16.mxu1 %v13250_v21  ;;  %v13251_v21 = vld [vmem:[#allocation62_spill] sm:$0xff] }
 0x2ba   : > { %7986 = vmatprep.mubr.msk.bf16.mxu0 %vm10579_vm13, %v10290_v29  ;;  %vm13252_vm15 = vnez %v13251_v21  ;;  %v13253_v29 = vld [vmem:[#allocation59_spill] sm:$0xff] }
 0x2bb   : > { %v6993_v25 = vpop.f32.mrb[8].mxu1  ;;  %v7135_v60 = vpop.f32.mrb[16].mxu0 }
 0x2bc   : > { %v6994_v14 = vpop.f32.mrb[9].mxu1  ;;  %v7136_v23 = vpop.f32.mrb[17].mxu0 }
 0x2bd   : > { %v10712_v53 = vadd.f32 %v7136_v23, %v7135_v60  ;;  %v6996_v33 = vpop.f32.mrb[10].mxu1  ;;  %v7138_v42 = vpop.f32.mrb[18].mxu0  ;;  %v10714_v19 = vadd.f32 %v6994_v14, %v6993_v25 }
 0x2be   : > { %v6997_v27 = vpop.f32.mrb[11].mxu1  ;;  %v7139_v45 = vpop.f32.mrb[19].mxu0 }
 0x2bf   : > { %v10716_v2 = vadd.f32 %v7139_v45, %v7138_v42  ;;  %v10718_v22 = vadd.f32 %v6997_v27, %v6996_v33 }
 0x2c0   : > { %6483 = vmatmul.mubr.msk.bf16.gmra.mrb[116].mxu1 %vm13252_vm15, %v10010_v12 }
 0x2c1   : > { %7987 = vmatmul.mubr.msk.bf16.gmra.mrb[92].mxu0 %vm10598_vm1, %v10297_v13  ;;  %3082 = vmatprep.mubr.bf16.mxu1 %v13253_v29  ;;  %vm13254_vm1 = vnez %v13105_v26 }
 0x2c2   : > { %7990 = vmatprep.mubr.msk.bf16.mxu0 %vm10617_vm5, %v10311_v58  ;;  %vm13255_vm5 = vnez %v13110_v7 }
 0x2c3   : > { %v6999_v25 = vpop.f32.mrb[12].mxu1  ;;  %v7141_v60 = vpop.f32.mrb[20].mxu0 }
 0x2c4   : > { %v7000_v45 = vpop.f32.mrb[13].mxu1  ;;  %v7142_v14 = vpop.f32.mrb[21].mxu0 }
 0x2c5   : > { %v10730_v23 = vadd.f32 %v7142_v14, %v7141_v60  ;;  %v7002_v33 = vpop.f32.mrb[14].mxu1  ;;  %v7144_v42 = vpop.f32.mrb[22].mxu0  ;;  %v10732_v27 = vadd.f32 %v7000_v45, %v6999_v25 }
 0x2c6   : > { %v7003_v12 = vpop.f32.mrb[15].mxu1  ;;  %v7145_v44 = vpop.f32.mrb[23].mxu0 }
 0x2c7   : > { %v10734_v9 = vadd.f32 %v7145_v44, %v7144_v42  ;;  %v10736_v13 = vadd.f32 %v7003_v12, %v7002_v33 }
 0x2c8   : > { %6487 = vmatmul.mubr.msk.bf16.gmra.mrb[120].mxu1 %vm13254_vm1, %v10142_v47  ;;  %v13256_v47 = vld [vmem:[#allocation47_spill] sm:$0xff] }
 0x2c9   : > { %7991 = vmatmul.mubr.bf16.gmra.mrb[96].mxu0 %v13154_v10  ;;  %3090 = vmatprep.mubr.bf16.mxu1 %v10194_v24 }
 0x2cb   : > { %v7005_v58 = vpop.f32.mrb[16].mxu1 }
 0x2cc   : > { %v7147_v29 = vpop.f32.mrb[24].mxu0  ;;  %v7006_v60 = vpop.f32.mrb[17].mxu1 }
 0x2cd   : > { %v7148_v14 = vpop.f32.mrb[25].mxu0  ;;  %v7008_v45 = vpop.f32.mrb[18].mxu1  ;;  %v10745_v44 = vadd.f32 %v7006_v60, %v7005_v58 }
 0x2ce   : > { %v10743_v25 = vadd.f32 %v7148_v14, %v7147_v29  ;;  %v7150_v41 = vpop.f32.mrb[26].mxu0  ;;  %v7009_v33 = vpop.f32.mrb[19].mxu1 }
 0x2cf   : > { %v7151_v42 = vpop.f32.mrb[27].mxu0  ;;  %v10749_v26 = vadd.f32 %v7009_v33, %v7008_v45 }
 0x2d0   : > { %v10747_v12 = vadd.f32 %v7151_v42, %v7150_v41  ;;  %6491 = vmatmul.mubr.msk.bf16.gmra.mrb[124].mxu1 %vm13255_vm5, %v10253_v54  ;;  %vm13257_vm5 = vnez %v13115_v16 }
 0x2d1   : > { %3098 = vmatprep.mubr.bf16.mxu1 %v13256_v47 }
 0x2d3   : > { %v7011_v24 = vpop.f32.mrb[20].mxu1 }
 0x2d4   : > { %v7153_v21 = vpop.f32.mrb[28].mxu0  ;;  %v7012_v29 = vpop.f32.mrb[21].mxu1 }
 0x2d5   : > { %v7154_v14 = vpop.f32.mrb[29].mxu0  ;;  %v7014_v58 = vpop.f32.mrb[22].mxu1  ;;  %v10757_v63 = vadd.f32 %v7012_v29, %v7011_v24 }
 0x2d6   : > { %v10755_v59 = vadd.f32 %v7154_v14, %v7153_v21  ;;  %v7156_v60 = vpop.f32.mrb[30].mxu0  ;;  %v7015_v41 = vpop.f32.mrb[23].mxu1 }
 0x2d7   : > { %v7157_v42 = vpop.f32.mrb[31].mxu0  ;;  %v10761_v33 = vadd.f32 %v7015_v41, %v7014_v58 }
 0x2d8   : > { %v10759_v45 = vadd.f32 %v7157_v42, %v7156_v60  ;;  %6495 = vmatmul.mubr.msk.bf16.gmra.mrb[128].mxu1 %vm13257_vm5, %v13119_v38  ;;  %vm13258_vm5 = vnez %v13125_v49  ;;  %v13259_v38 = vld [vmem:[#allocation52_spill] sm:$0xff] }
 0x2d9   : > { %3106 = vmatprep.mubr.bf16.mxu1 %v13120_v0 }
 0x2db   : > { %v7017_v54 = vpop.f32.mrb[24].mxu1 }
 0x2dc   : > { %v7159_v47 = vpop.f32.mrb[32].mxu0  ;;  %v7018_v21 = vpop.f32.mrb[25].mxu1 }
 0x2dd   : > { %v7160_v14 = vpop.f32.mrb[33].mxu0  ;;  %v7020_v24 = vpop.f32.mrb[26].mxu1  ;;  %v10769_v35 = vadd.f32 %v7018_v21, %v7017_v54 }
 0x2de   : > { %v10767_v7 = vadd.f32 %v7160_v14, %v7159_v47  ;;  %v7162_v29 = vpop.f32.mrb[34].mxu0  ;;  %v7021_v60 = vpop.f32.mrb[27].mxu1 }
 0x2df   : > { %v7163_v42 = vpop.f32.mrb[35].mxu0  ;;  %v10773_v41 = vadd.f32 %v7021_v60, %v7020_v24 }
 0x2e0   : > { %v10771_v58 = vadd.f32 %v7163_v42, %v7162_v29  ;;  %6499 = vmatmul.mubr.msk.bf16.gmra.mrb[132].mxu1 %vm13258_vm5, %v13127_v4  ;;  %vm13260_vm5 = vnez %v13133_v34 }
 0x2e1   : > { %3114 = vmatprep.mubr.bf16.mxu1 %v13259_v38 }
 0x2e3   : > { %v7023_v0 = vpop.f32.mrb[28].mxu1 }
 0x2e4   : > { %v7165_v16 = vpop.f32.mrb[36].mxu0  ;;  %v7024_v47 = vpop.f32.mrb[29].mxu1 }
 0x2e5   : > { %v7166_v14 = vpop.f32.mrb[37].mxu0  ;;  %v7026_v54 = vpop.f32.mrb[30].mxu1  ;;  %v10781_v15 = vadd.f32 %v7024_v47, %v7023_v0 }
 0x2e6   : > { %v10779_v55 = vadd.f32 %v7166_v14, %v7165_v16  ;;  %v7168_v21 = vpop.f32.mrb[38].mxu0  ;;  %v7027_v29 = vpop.f32.mrb[31].mxu1 }
 0x2e7   : > { %v7169_v42 = vpop.f32.mrb[39].mxu0  ;;  %v10785_v60 = vadd.f32 %v7027_v29, %v7026_v54 }
 0x2e8   : > { %v10783_v24 = vadd.f32 %v7169_v42, %v7168_v21  ;;  %6503 = vmatmul.mubr.msk.bf16.gmra.mrb[136].mxu1 %vm13260_vm5, %v13135_v3  ;;  %v13261_v3 = vld [vmem:[#allocation51_spill] sm:$0xff] }
 0x2e9   : > { %3122 = vmatprep.mubr.bf16.mxu1 %v13136_v8  ;;  %vm13262_vm5 = vnez %v13261_v3  ;;  %v13263_v8 = vld [vmem:[#allocation56_spill] sm:$0xff] }
 0x2eb   : > { %v7029_v4 = vpop.f32.mrb[32].mxu1 }
 0x2ec   : > { %v7171_v38 = vpop.f32.mrb[40].mxu0  ;;  %v7030_v16 = vpop.f32.mrb[33].mxu1 }
 0x2ed   : > { %v7172_v14 = vpop.f32.mrb[41].mxu0  ;;  %v7032_v0 = vpop.f32.mrb[34].mxu1  ;;  %v10793_v57 = vadd.f32 %v7030_v16, %v7029_v4 }
 0x2ee   : > { %v10791_v49 = vadd.f32 %v7172_v14, %v7171_v38  ;;  %v7174_v47 = vpop.f32.mrb[42].mxu0  ;;  %v7033_v21 = vpop.f32.mrb[35].mxu1 }
 0x2ef   : > { %v7175_v42 = vpop.f32.mrb[43].mxu0  ;;  %v10797_v29 = vadd.f32 %v7033_v21, %v7032_v0 }
 0x2f0   : > { %v10795_v54 = vadd.f32 %v7175_v42, %v7174_v47  ;;  %6507 = vmatmul.mubr.msk.bf16.gmra.mrb[140].mxu1 %vm13262_vm5, %v9957_v61  ;;  %vm13264_vm5 = vnez %v13146_v5  ;;  %v13265_v61 = vld [vmem:[#allocation58_spill] sm:$0xff] }
 0x2f1   : > { %3130 = vmatprep.mubr.bf16.mxu1 %v13263_v8 }
 0x2f3   : > { %v7035_v34 = vpop.f32.mrb[36].mxu1 }
 0x2f4   : > { %v7177_v32 = vpop.f32.mrb[44].mxu0  ;;  %v7036_v38 = vpop.f32.mrb[37].mxu1 }
 0x2f5   : > { %v7178_v14 = vpop.f32.mrb[45].mxu0  ;;  %v10803_v39 = vadd.f32 %v7036_v38, %v7035_v34  ;;  %v7038_v16 = vpop.f32.mrb[38].mxu1 }
 0x2f6   : > { %v10805_v4 = vadd.f32 %v7178_v14, %v7177_v32  ;;  %v7180_v48 = vpop.f32.mrb[46].mxu0  ;;  %v7039_v47 = vpop.f32.mrb[39].mxu1 }
 0x2f7   : > { %v7181_v42 = vpop.f32.mrb[47].mxu0  ;;  %v10807_v0 = vadd.f32 %v7039_v47, %v7038_v16 }
 0x2f8   : > { %v10809_v21 = vadd.f32 %v7181_v42, %v7180_v48  ;;  %6511 = vmatmul.mubr.msk.bf16.gmra.mrb[144].mxu1 %vm13264_vm5, %v9965_v56  ;;  %v13266_v56 = vld [vmem:[#allocation54_spill] sm:$0xff] }
 0x2f9   : > { %3138 = vmatprep.mubr.bf16.mxu1 %v13265_v61  ;;  %vm13267_vm5 = vnez %v13266_v56  ;;  %v13268_v61 = vld [vmem:[#allocation55_spill] sm:$0xff]  ;;  %v13271_v56 = vld [vmem:[#allocation61_spill] sm:$0xff] }
 0x2fb   : > { %v7041_v8 = vpop.f32.mrb[40].mxu1 }
 0x2fc   : > { %v7183_v3 = vpop.f32.mrb[48].mxu0  ;;  %v7042_v34 = vpop.f32.mrb[41].mxu1 }
 0x2fd   : > { %v7184_v38 = vpop.f32.mrb[49].mxu0  ;;  %v10815_v32 = vadd.f32 %v7042_v34, %v7041_v8  ;;  %v7044_v43 = vpop.f32.mrb[42].mxu1 }
 0x2fe   : > { %v10817_v14 = vadd.f32 %v7184_v38, %v7183_v3  ;;  %v7186_v20 = vpop.f32.mrb[50].mxu0  ;;  %v7045_v16 = vpop.f32.mrb[43].mxu1 }
 0x2ff   : > { %v7187_v47 = vpop.f32.mrb[51].mxu0  ;;  %v10819_v48 = vadd.f32 %v7045_v16, %v7044_v43 }
 0x300   : > { %v10821_v42 = vadd.f32 %v7187_v47, %v7186_v20  ;;  %6515 = vmatmul.mubr.msk.bf16.gmra.mrb[148].mxu1 %vm13267_vm5, %v10012_v11  ;;  %v13272_v11 = vld [vmem:[#allocation30_spill] sm:$0xff] }
 0x301   : > { %3146 = vmatprep.mubr.bf16.mxu1 %v13268_v61  ;;  %vm13273_vm5 = vnez %v13272_v11 }
 0x303   : > { %v7047_v5 = vpop.f32.mrb[44].mxu1 }
 0x304   : > { %v7189_v17 = vpop.f32.mrb[52].mxu0  ;;  %v7048_v8 = vpop.f32.mrb[45].mxu1 }
 0x305   : > { %v7190_v34 = vpop.f32.mrb[53].mxu0  ;;  %v10827_v3 = vadd.f32 %v7048_v8, %v7047_v5  ;;  %v7050_v40 = vpop.f32.mrb[46].mxu1 }
 0x306   : > { %v10829_v38 = vadd.f32 %v7190_v34, %v7189_v17  ;;  %v7192_v30 = vpop.f32.mrb[54].mxu0  ;;  %v7051_v43 = vpop.f32.mrb[47].mxu1 }
 0x307   : > { %v7193_v16 = vpop.f32.mrb[55].mxu0  ;;  %v10831_v20 = vadd.f32 %v7051_v43, %v7050_v40 }
 0x308   : > { %13269 = vst [vmem:[#allocation37_spill] sm:$0xff] %v10829_v38  ;;  %v10833_v47 = vadd.f32 %v7193_v16, %v7192_v30  ;;  %6519 = vmatmul.mubr.msk.bf16.gmra.mrb[152].mxu1 %vm13273_vm5, %v13271_v56  ;;  %v13278_v56 = vmov 0.0   ;;  %vm13279_vm5 = vmmov 0  }
 0x309   : > { %3154 = vmatprep.mubr.bf16.mxu1 %v13154_v10 }
 0x30a   : > { %13270 = vst [vmem:[#allocation39_spill] sm:$0xff] %v10833_v47 }
 0x30b   : > { %v7053_v61 = vpop.f32.mrb[48].mxu1 }
 0x30c   : > { %v7195_v37 = vpop.f32.mrb[56].mxu0  ;;  %v7054_v5 = vpop.f32.mrb[49].mxu1 }
 0x30d   : > { %v7196_v8 = vpop.f32.mrb[57].mxu0  ;;  %v10839_v17 = vadd.f32 %v7054_v5, %v7053_v61  ;;  %v7056_v51 = vpop.f32.mrb[50].mxu1 }
 0x30e   : > { %v10841_v34 = vadd.f32 %v7196_v8, %v7195_v37  ;;  %v7198_v46 = vpop.f32.mrb[58].mxu0  ;;  %v7057_v40 = vpop.f32.mrb[51].mxu1 }
 0x30f   : > { %13274 = vst [vmem:[#allocation40_spill] sm:$0xff] %v10839_v17  ;;  %v7199_v43 = vpop.f32.mrb[59].mxu0  ;;  %v10843_v30 = vadd.f32 %v7057_v40, %v7056_v51 }
 0x310   : > { %13275 = vst [vmem:[#allocation41_spill] sm:$0xff] %v10841_v34  ;;  %v10845_v16 = vadd.f32 %v7199_v43, %v7198_v46  ;;  %3155 = vmatmul.mubr.bf16.gmra.mrb[156].mxu1 %v13154_v10 }
 0x311   : > { %13276 = vst [vmem:[#allocation42_spill] sm:$0xff] %v10843_v30  ;;  %8026 = vmatprep.mubr.msk.f32.mxu1 %vm13279_vm5, %v13278_v56  ;;  %vm13304_vm5 = vcmask 1040384  }
 0x312   : > { %13277 = vst [vmem:[#allocation43_spill] sm:$0xff] %v10845_v16 }
 0x313   : > { %v7059_v11 = vpop.f32.mrb[52].mxu1 }
 0x314   : > { %v7201_v52 = vpop.f32.mrb[60].mxu0  ;;  %v7060_v47 = vpop.f32.mrb[53].mxu1 }
 0x315   : > { %v7202_v61 = vpop.f32.mrb[61].mxu0  ;;  %v10850_v5 = vadd.f32 %v7060_v47, %v7059_v11  ;;  %v7062_v8 = vpop.f32.mrb[54].mxu1 }
 0x316   : > { %v10852_v37 = vadd.f32 %v7202_v61, %v7201_v52  ;;  %v7204_v38 = vpop.f32.mrb[62].mxu0  ;;  %v7063_v34 = vpop.f32.mrb[55].mxu1 }
 0x317   : > { %13280 = vst [vmem:[#allocation44_spill] sm:$0xff] %v10850_v5  ;;  %v7205_v51 = vpop.f32.mrb[63].mxu0  ;;  %v10854_v40 = vadd.f32 %v7063_v34, %v7062_v8 }
 0x318   : > { %13281 = vst [vmem:[#allocation45_spill] sm:$0xff] %v10852_v37  ;;  %v10856_v46 = vadd.f32 %v7205_v51, %v7204_v38 }
 0x319   : > { %13282 = vst [vmem:[#allocation59_spill] sm:$0xff] %v10854_v40 }
 0x31a   : > { %13283 = vst [vmem:[#allocation47_spill] sm:$0xff] %v10856_v46 }
 0x31b   : > { %v7065_v43 = vpop.f32.mrb[56].mxu1 }
 0x31c   : > { %v7207_v10 = vpop.f32.mrb[64].mxu0  ;;  %v7066_v16 = vpop.f32.mrb[57].mxu1 }
 0x31d   : > { %v7208_v56 = vpop.f32.mrb[65].mxu0  ;;  %v10858_v30 = vadd.f32 %v7066_v16, %v7065_v43  ;;  %v7068_v47 = vpop.f32.mrb[58].mxu1 }
 0x31e   : > { %v10860_v17 = vadd.f32 %v7208_v56, %v7207_v10  ;;  %v7210_v11 = vpop.f32.mrb[66].mxu0  ;;  %v7069_v52 = vpop.f32.mrb[59].mxu1 }
 0x31f   : > { %v7211_v61 = vpop.f32.mrb[67].mxu0  ;;  %v10862_v37 = vadd.f32 %v7069_v52, %v7068_v47 }
 0x320   : > { %13284 = vst [vmem:[#allocation52_spill] sm:$0xff] %v10860_v17  ;;  %v10864_v5 = vadd.f32 %v7211_v61, %v7210_v11  ;;  %v13285_v61 = vld [vmem:[#allocation35_spill] sm:$0xff] }
 0x323   : > { %v7071_v34 = vpop.f32.mrb[60].mxu1 }
 0x324   : > { %v7072_v8 = vpop.f32.mrb[61].mxu1 }
 0x325   : > { %v10866_v38 = vadd.f32 %v7072_v8, %v7071_v34  ;;  %v7074_v51 = vpop.f32.mrb[62].mxu1 }
 0x326   : > { %v7075_v46 = vpop.f32.mrb[63].mxu1 }
 0x327   : > { %v10868_v40 = vadd.f32 %v7075_v46, %v7074_v51  ;;  %v13286_v51 = vld [vmem:[#allocation49_spill] sm:$0xff] }
 0x32b   : > { %v7868_v16 = vpop.f32.mrb[64].mxu1 }
 0x32c   : > { %v2177_v10 = vadd.f32 %v7868_v16, %v10695_v62  ;;  %v2168_v56 = vpop.f32.mrb[65].mxu1 }
 0x32d   : > { %v2169_v43 = vadd.f32 %v10673_v50, %v2168_v56  ;;  %v7869_v17 = vpop.f32.mrb[66].mxu1 }
 0x32e   : > { %v10873_v47 = vadd.f32 %v10671_v28, %v2177_v10  ;;  %v2180_v11 = vadd.f32 %v7869_v17, %v10700_v6  ;;  %v2171_v52 = vpop.f32.mrb[67].mxu1 }
 0x32f   : > { %v10877_v34 = vadd.f32 %v13285_v61, %v2169_v43  ;;  %v2172_v8 = vadd.f32 %v10678_v1, %v2171_v52 }
 0x330   : > { %v10881_v46 = vadd.f32 %v10676_v18, %v2180_v11 }
 0x331   : > { %v10884_v62 = vadd.f32 %v13286_v51, %v2172_v8 }
 0x333   : > { %v7872_v16 = vpop.f32.mrb[68].mxu1 }
 0x334   : > { %v2193_v50 = vadd.f32 %v7872_v16, %v10732_v27  ;;  %v2184_v56 = vpop.f32.mrb[69].mxu1 }
 0x335   : > { %v2185_v28 = vadd.f32 %v10714_v19, %v2184_v56  ;;  %v7873_v10 = vpop.f32.mrb[70].mxu1 }
 0x336   : > { %v10889_v6 = vadd.f32 %v10712_v53, %v2193_v50  ;;  %v2196_v17 = vadd.f32 %v7873_v10, %v10736_v13  ;;  %v2187_v43 = vpop.f32.mrb[71].mxu1 }
 0x337   : > { %v10893_v1 = vadd.f32 %v10693_v36, %v2185_v28  ;;  %v2188_v18 = vadd.f32 %v10718_v22, %v2187_v43 }
 0x338   : > { %v10897_v11 = vadd.f32 %v10716_v2, %v2196_v17 }
 0x339   : > { %v10900_v27 = vadd.f32 %v10698_v31, %v2188_v18 }
 0x33b   : > { %v7876_v52 = vpop.f32.mrb[72].mxu1 }
 0x33c   : > { %v2209_v19 = vadd.f32 %v7876_v52, %v10757_v63  ;;  %v2200_v61 = vpop.f32.mrb[73].mxu1 }
 0x33d   : > { %v2201_v53 = vadd.f32 %v10745_v44, %v2200_v61  ;;  %v7877_v8 = vpop.f32.mrb[74].mxu1 }
 0x33e   : > { %v10905_v13 = vadd.f32 %v10743_v25, %v2209_v19  ;;  %v2212_v36 = vadd.f32 %v7877_v8, %v10761_v33  ;;  %v2203_v51 = vpop.f32.mrb[75].mxu1 }
 0x33f   : > { %v10909_v22 = vadd.f32 %v10730_v23, %v2201_v53  ;;  %v2204_v2 = vadd.f32 %v10749_v26, %v2203_v51 }
 0x340   : > { %v10913_v31 = vadd.f32 %v10747_v12, %v2212_v36 }
 0x341   : > { %v10916_v63 = vadd.f32 %v10734_v9, %v2204_v2 }
 0x343   : > { %v7880_v16 = vpop.f32.mrb[76].mxu1 }
 0x344   : > { %v2225_v44 = vadd.f32 %v7880_v16, %v10781_v15  ;;  %v2216_v50 = vpop.f32.mrb[77].mxu1 }
 0x345   : > { %v2217_v25 = vadd.f32 %v10769_v35, %v2216_v50  ;;  %v7881_v56 = vpop.f32.mrb[78].mxu1 }
 0x346   : > { %v10921_v33 = vadd.f32 %v10767_v7, %v2225_v44  ;;  %v2228_v23 = vadd.f32 %v7881_v56, %v10785_v60  ;;  %v2219_v28 = vpop.f32.mrb[79].mxu1 }
 0x347   : > { %v10925_v26 = vadd.f32 %v10755_v59, %v2217_v25  ;;  %v2220_v12 = vadd.f32 %v10773_v41, %v2219_v28 }
 0x348   : > { %v10929_v9 = vadd.f32 %v10771_v58, %v2228_v23 }
 0x349   : > { %v10932_v15 = vadd.f32 %v10759_v45, %v2220_v12  ;;  %v13294_v12 = vld [vmem:[#allocation39_spill] sm:$0xff] }
 0x34b   : > { %v7884_v10 = vpop.f32.mrb[80].mxu1 }
 0x34c   : > { %v2241_v35 = vadd.f32 %v7884_v10, %v10803_v39  ;;  %v2232_v17 = vpop.f32.mrb[81].mxu1 }
 0x34d   : > { %v2233_v7 = vadd.f32 %v10793_v57, %v2232_v17  ;;  %v7885_v43 = vpop.f32.mrb[82].mxu1 }
 0x34e   : > { %v10937_v60 = vadd.f32 %v10791_v49, %v2241_v35  ;;  %v2244_v59 = vadd.f32 %v7885_v43, %v10807_v0  ;;  %v2235_v18 = vpop.f32.mrb[83].mxu1 }
 0x34f   : > { %v10941_v41 = vadd.f32 %v10779_v55, %v2233_v7  ;;  %v2236_v58 = vadd.f32 %v10797_v29, %v2235_v18 }
 0x350   : > { %v10945_v45 = vadd.f32 %v10795_v54, %v2244_v59 }
 0x351   : > { %v10948_v39 = vadd.f32 %v10783_v24, %v2236_v58 }
 0x353   : > { %v7888_v52 = vpop.f32.mrb[84].mxu1 }
 0x354   : > { %v2257_v57 = vadd.f32 %v7888_v52, %v10827_v3  ;;  %v2248_v19 = vpop.f32.mrb[85].mxu1 }
 0x355   : > { %v2249_v49 = vadd.f32 %v10815_v32, %v2248_v19  ;;  %v7889_v61 = vpop.f32.mrb[86].mxu1  ;;  %v13287_v32 = vld [vmem:[#allocation44_spill] sm:$0xff] }
 0x356   : > { %v10953_v0 = vadd.f32 %v10817_v14, %v2257_v57  ;;  %v2260_v55 = vadd.f32 %v7889_v61, %v10831_v20  ;;  %v2251_v53 = vpop.f32.mrb[87].mxu1  ;;  %v13288_v14 = vld [vmem:[#allocation40_spill] sm:$0xff]  ;;  %v13289_v20 = vld [vmem:[#allocation41_spill] sm:$0xff] }
 0x357   : > { %v10957_v29 = vadd.f32 %v10805_v4, %v2249_v49  ;;  %v2252_v54 = vadd.f32 %v10819_v48, %v2251_v53  ;;  %v13290_v4 = vld [vmem:[#allocation59_spill] sm:$0xff]  ;;  %v13291_v48 = vld [vmem:[#allocation37_spill] sm:$0xff]  ;;  %v13295_v57 = vld [vmem:[#allocation52_spill] sm:$0xff] }
 0x358   : > { %v10961_v24 = vadd.f32 %v10821_v42, %v2260_v55  ;;  %v13292_v42 = vld [vmem:[#allocation42_spill] sm:$0xff]  ;;  %v13296_v53 = vld [vmem:[#allocation45_spill] sm:$0xff] }
 0x359   : > { %v10964_v3 = vadd.f32 %v10809_v21, %v2252_v54  ;;  %v13293_v21 = vld [vmem:[#allocation43_spill] sm:$0xff] }
 0x35b   : > { %v7892_v8 = vpop.f32.mrb[88].mxu1 }
 0x35c   : > { %v2273_v36 = vadd.f32 %v7892_v8, %v13287_v32  ;;  %v2264_v51 = vpop.f32.mrb[89].mxu1  ;;  %v13298_v32 = vld [vmem:[#allocation47_spill] sm:$0xff] }
 0x35d   : > { %v2265_v2 = vadd.f32 %v13288_v14, %v2264_v51  ;;  %v7893_v16 = vpop.f32.mrb[90].mxu1 }
 0x35e   : > { %v10969_v44 = vadd.f32 %v13289_v20, %v2273_v36  ;;  %v2276_v50 = vadd.f32 %v7893_v16, %v13290_v4  ;;  %v2267_v25 = vpop.f32.mrb[91].mxu1 }
 0x35f   : > { %v10973_v56 = vadd.f32 %v13291_v48, %v2265_v2  ;;  %v2268_v23 = vadd.f32 %v13292_v42, %v2267_v25 }
 0x360   : > { %v10977_v28 = vadd.f32 %v13293_v21, %v2276_v50 }
 0x361   : > { %v10980_v10 = vadd.f32 %v13294_v12, %v2268_v23 }
 0x363   : > { %v7896_v35 = vpop.f32.mrb[92].mxu1 }
 0x364   : > { %v7964_v17 = vpop.f32.mrb[68].mxu0  ;;  %v2289_v7 = vadd.f32 %v7896_v35, %v10866_v38  ;;  %v2280_v43 = vpop.f32.mrb[93].mxu1 }
 0x365   : > { %v3197_v59 = vpop.f32.mrb[69].mxu0  ;;  %v2281_v18 = vadd.f32 %v10858_v30, %v2280_v43  ;;  %v7897_v58 = vpop.f32.mrb[94].mxu1 }
 0x366   : > { %v7965_v52 = vpop.f32.mrb[70].mxu0  ;;  %v10985_v19 = vadd.f32 %v13295_v57, %v2289_v7  ;;  %v2292_v49 = vadd.f32 %v7897_v58, %v10868_v40  ;;  %v2283_v61 = vpop.f32.mrb[95].mxu1 }
 0x367   : > { %v3200_v55 = vpop.f32.mrb[71].mxu0  ;;  %v10989_v54 = vadd.f32 %v13296_v53, %v2281_v18  ;;  %v2284_v8 = vadd.f32 %v10862_v37, %v2283_v61 }
 0x368   : > { %v10993_v38 = vadd.f32 %v10864_v5, %v2292_v49 }
 0x369   : > { %v10996_v36 = vadd.f32 %v13298_v32, %v2284_v8 }
 0x36a   : > { %13297 = vst [vmem:[#allocation56_spill] sm:$0xff] %v10993_v38 }
 0x36b   : > { %v7253_v30 = vpop.f32.mrb[96].mxu1 }
 0x36c   : > { %v7968_v51 = vpop.f32.mrb[72].mxu0  ;;  %v7254_v14 = vpop.f32.mrb[97].mxu1 }
 0x36d   : > { %v3213_v2 = vpop.f32.mrb[73].mxu0  ;;  %v7255_v16 = vadd.f32 %v7254_v14, %v7253_v30  ;;  %v7256_v20 = vpop.f32.mrb[98].mxu1 }
 0x36e   : > { %v7969_v40 = vpop.f32.mrb[74].mxu0  ;;  %v7257_v4 = vpop.f32.mrb[99].mxu1 }
 0x36f   : > { %v3216_v50 = vpop.f32.mrb[75].mxu0  ;;  %v8286_v25 = vadd.f32 %v7255_v16, %v10877_v34  ;;  %v7258_v48 = vadd.f32 %v7257_v4, %v7256_v20 }
 0x371   : > { %v10999_v42 = vadd.f32 %v8286_v25, %v3197_v59  ;;  %v8294_v5 = vadd.f32 %v7258_v48, %v10884_v62 }
 0x373   : > { %13299 = vst [vmem:[#allocation58_spill] sm:$0xff] %v10999_v42  ;;  %v11002_v37 = vadd.f32 %v8294_v5, %v3200_v55  ;;  %v7259_v23 = vpop.f32.mrb[100].mxu1  ;;  %v8794_v5 = vld [vmem:[#allocation8 + $0x150] sm:$0xff]  }
 0x374   : > { %v11004_v21 = vpop.f32.mrb[76].mxu0  ;;  %v7260_v12 = vpop.f32.mrb[101].mxu1 }
 0x375   : > { %13300 = vst [vmem:[#allocation55_spill] sm:$0xff] %v11002_v37  ;;  %v3229_v35 = vpop.f32.mrb[77].mxu0  ;;  %v7261_v7 = vadd.f32 %v7260_v12, %v7259_v23  ;;  %v7262_v43 = vpop.f32.mrb[102].mxu1 }
 0x376   : > { %v11006_v18 = vpop.f32.mrb[78].mxu0  ;;  %v7263_v58 = vpop.f32.mrb[103].mxu1 }
 0x377   : > { %v3232_v57 = vpop.f32.mrb[79].mxu0  ;;  %v8282_v34 = vadd.f32 %v7261_v7, %v10873_v47  ;;  %v7264_v49 = vadd.f32 %v7263_v58, %v7262_v43  ;;  %v8792_v47 = vld [vmem:[#allocation8 + $0x140] sm:$0xff]  }
 0x378   : > { %8029 = vmatprep.subr.bf16.mxu0 %v8792_v47 }
 0x379   : > { %v11009_v59 = vadd.f32 %v8282_v34, %v7964_v17  ;;  %v8290_v62 = vadd.f32 %v7264_v49, %v10881_v46  ;;  %v8793_v17 = vld [vmem:[#allocation8 + $0x148] sm:$0xff]   ;;  %8030 = vmatpush3.bf16.msra.mxu0 %v8792_v47 }
 0x37a   : > { %8031 = vmatprep.subr.bf16.mxu0 %v8793_v17 }
 0x37b   : > { %13301 = vst [vmem:[#allocation61_spill] sm:$0xff] %v11009_v59  ;;  %v11012_v61 = vadd.f32 %v8290_v62, %v7965_v52  ;;  %v7265_v55 = vpop.f32.mrb[104].mxu1 }
 0x37c   : > { %v11014_v53 = vpop.f32.mrb[80].mxu0  ;;  %v7266_v8 = vpop.f32.mrb[105].mxu1 }
 0x37d   : > { %13302 = vst [vmem:[#allocation35_spill] sm:$0xff] %v11012_v61  ;;  %v11016_v32 = vpop.f32.mrb[81].mxu0  ;;  %v7267_v30 = vadd.f32 %v7266_v8, %v7265_v55  ;;  %v7268_v14 = vpop.f32.mrb[106].mxu1  ;;  %8032 = vmatpush3.bf16.msra.mxu0 %v8793_v17 }
 0x37e   : > { %v11018_v16 = vpop.f32.mrb[82].mxu0  ;;  %v7269_v20 = vpop.f32.mrb[107].mxu1  ;;  %8033 = vmatprep.subr.bf16.mxu0 %v8794_v5 }
 0x37f   : > { %v11020_v4 = vpop.f32.mrb[83].mxu0  ;;  %v8302_v25 = vadd.f32 %v7267_v30, %v10893_v1  ;;  %v7270_v46 = vadd.f32 %v7269_v20, %v7268_v14 }
 0x381   : > { %v11023_v52 = vadd.f32 %v8302_v25, %v3213_v2  ;;  %v8310_v48 = vadd.f32 %v7270_v46, %v10900_v27  ;;  %v8795_v27 = vld [vmem:[#allocation8 + $0x158] sm:$0xff]   ;;  %8034 = vmatpush3.bf16.msra.mxu0 %v8794_v5 }
 0x382   : > { %8035 = vmatprep.subr.bf16.mxu0 %v8795_v27 }
 0x383   : > { %v11026_v23 = vadd.f32 %v8310_v48, %v3216_v50  ;;  %v7271_v12 = vpop.f32.mrb[108].mxu1  ;;  %v3399_v38 = vmul.f32 %v11023_v52, %v11023_v52 }
 0x384   : > { %v11028_v7 = vpop.f32.mrb[84].mxu0  ;;  %v7272_v43 = vpop.f32.mrb[109].mxu1 }
 0x385   : > { %v11030_v58 = vpop.f32.mrb[85].mxu0  ;;  %v7273_v34 = vadd.f32 %v7272_v43, %v7271_v12  ;;  %v7274_v49 = vpop.f32.mrb[110].mxu1  ;;  %8036 = vmatpush3.bf16.msra.mxu0 %v8795_v27 }
 0x386   : > { %v11032_v1 = vpop.f32.mrb[86].mxu0  ;;  %v7275_v2 = vpop.f32.mrb[111].mxu1 }
 0x387   : > { %v11034_v62 = vpop.f32.mrb[87].mxu0  ;;  %v8298_v55 = vadd.f32 %v7273_v34, %v10889_v6  ;;  %v7276_v50 = vadd.f32 %v7275_v2, %v7274_v49  ;;  %v3396_v34 = vmul.f32 %v11002_v37, %v11002_v37 }
 0x389   : > { %v11037_v8 = vadd.f32 %v8298_v55, %v7968_v51  ;;  %v8306_v30 = vadd.f32 %v7276_v50, %v10897_v11 }
 0x38b   : > { %v11040_v14 = vadd.f32 %v8306_v30, %v7969_v40  ;;  %v7277_v20 = vpop.f32.mrb[112].mxu1  ;;  %v3395_v30 = vmul.f32 %v10999_v42, %v10999_v42 }
 0x38c   : > { %v11042_v47 = vpop.f32.mrb[88].mxu0  ;;  %v7278_v17 = vpop.f32.mrb[113].mxu1 }
 0x38d   : > { %v11044_v25 = vpop.f32.mrb[89].mxu0  ;;  %v7279_v46 = vadd.f32 %v7278_v17, %v7277_v20  ;;  %v7280_v48 = vpop.f32.mrb[114].mxu1 }
 0x38e   : > { %v11046_v12 = vpop.f32.mrb[90].mxu0  ;;  %v7281_v6 = vpop.f32.mrb[115].mxu1 }
 0x38f   : > { %v11048_v51 = vpop.f32.mrb[91].mxu0  ;;  %v8318_v11 = vadd.f32 %v7279_v46, %v10909_v22  ;;  %v7282_v5 = vadd.f32 %v7281_v6, %v7280_v48  ;;  %v3358_v22 = vadd.f32 %v11002_v37, %v10999_v42  ;;  %v3427_v48 = vadd.f32 %v3396_v34, %v3395_v30 }
 0x390   : > { %v3398_v37 = vmul.f32 %v11012_v61, %v11012_v61 }
 0x391   : > { %v11051_v43 = vadd.f32 %v8318_v11, %v3229_v35  ;;  %v8326_v40 = vadd.f32 %v7282_v5, %v10916_v63  ;;  %v3397_v63 = vmul.f32 %v11009_v59, %v11009_v59  ;;  %v3359_v6 = vadd.f32 %v11009_v59, %v3358_v22 }
 0x393   : > { %v11056_v49 = vadd.f32 %v8326_v40, %v3232_v57  ;;  %v7283_v2 = vpop.f32.mrb[116].mxu1  ;;  %v3428_v40 = vadd.f32 %v3427_v48, %v3397_v63 }
 0x394   : > { %v11058_v55 = vpop.f32.mrb[92].mxu0  ;;  %v7284_v50 = vpop.f32.mrb[117].mxu1 }
 0x395   : > { %v11060_v27 = vpop.f32.mrb[93].mxu0  ;;  %v7285_v35 = vadd.f32 %v7284_v50, %v7283_v2  ;;  %v7286_v20 = vpop.f32.mrb[118].mxu1  ;;  %v3360_v50 = vadd.f32 %v11012_v61, %v3359_v6 }
 0x396   : > { %v11068_v17 = vpop.f32.mrb[94].mxu0  ;;  %v7287_v57 = vpop.f32.mrb[119].mxu1 }
 0x397   : > { %v11070_v46 = vpop.f32.mrb[95].mxu0  ;;  %v8314_v11 = vadd.f32 %v7285_v35, %v10905_v13  ;;  %v7288_v5 = vadd.f32 %v7287_v57, %v7286_v20  ;;  %v3429_v35 = vadd.f32 %v3428_v40, %v3398_v37  ;;  %v3401_v37 = vmul.f32 %v11037_v8, %v11037_v8 }
 0x399   : > { %v11077_v42 = vadd.f32 %v8314_v11, %v11004_v21  ;;  %v8322_v2 = vadd.f32 %v7288_v5, %v10913_v31  ;;  %v3361_v21 = vadd.f32 %v11023_v52, %v3360_v50  ;;  %v3430_v11 = vadd.f32 %v3429_v35, %v3399_v38 }
 0x39b   : > { %v11084_v34 = vadd.f32 %v8322_v2, %v11006_v18  ;;  %v7289_v30 = vpop.f32.mrb[120].mxu1  ;;  %v3400_v18 = vmul.f32 %v11026_v23, %v11026_v23  ;;  %v3362_v61 = vadd.f32 %v11026_v23, %v3361_v21  ;;  %v3402_v21 = vmul.f32 %v11040_v14, %v11040_v14 }
 0x39c   : > { %v11086_v13 = vpop.f32.mrb[96].mxu0  ;;  %v7290_v22 = vpop.f32.mrb[121].mxu1 }
 0x39d   : > { %v11088_v63 = vpop.f32.mrb[97].mxu0  ;;  %v7291_v20 = vadd.f32 %v7290_v22, %v7289_v30  ;;  %v7292_v57 = vpop.f32.mrb[122].mxu1  ;;  %v3431_v30 = vadd.f32 %v3430_v11, %v3400_v18  ;;  %v3363_v22 = vadd.f32 %v11037_v8, %v3362_v61 }
 0x39e   : > { %v11091_v31 = vpop.f32.mrb[98].mxu0  ;;  %v7293_v48 = vpop.f32.mrb[123].mxu1 }
 0x39f   : > { %v11093_v6 = vpop.f32.mrb[99].mxu0  ;;  %v8334_v5 = vadd.f32 %v7291_v20, %v10925_v26  ;;  %v7294_v2 = vadd.f32 %v7293_v48, %v7292_v57  ;;  %v3432_v26 = vadd.f32 %v3431_v30, %v3401_v37 }
 0x3a1   : > { %v11102_v40 = vadd.f32 %v8334_v5, %v11016_v32  ;;  %v8342_v50 = vadd.f32 %v7294_v2, %v10932_v15  ;;  %v3364_v32 = vadd.f32 %v11040_v14, %v3363_v22  ;;  %v3403_v15 = vmul.f32 %v11051_v43, %v11051_v43 }
 0x3a2   : > { %v3433_v18 = vadd.f32 %v3432_v26, %v3402_v21 }
 0x3a3   : > { %v11107_v38 = vadd.f32 %v8342_v50, %v11020_v4  ;;  %v7295_v35 = vpop.f32.mrb[124].mxu1  ;;  %v3365_v4 = vadd.f32 %v11051_v43, %v3364_v32 }
 0x3a4   : > { %v7296_v59 = vpop.f32.mrb[125].mxu1  ;;  %v3434_v37 = vadd.f32 %v3433_v18, %v3403_v15  ;;  %v3407_v18 = vmul.f32 %v11102_v40, %v11102_v40 }
 0x3a5   : > { %v7297_v20 = vadd.f32 %v7296_v59, %v7295_v35  ;;  %v7298_v57 = vpop.f32.mrb[126].mxu1  ;;  %v3404_v59 = vmul.f32 %v11056_v49, %v11056_v49  ;;  %v3405_v35 = vmul.f32 %v11077_v42, %v11077_v42 }
 0x3a6   : > { %v7299_v48 = vpop.f32.mrb[127].mxu1 }
 0x3a7   : > { %v8330_v11 = vadd.f32 %v7297_v20, %v10921_v33  ;;  %v7300_v61 = vadd.f32 %v7299_v48, %v7298_v57  ;;  %v3366_v33 = vadd.f32 %v11056_v49, %v3365_v4  ;;  %v3435_v20 = vadd.f32 %v3434_v37, %v3404_v59 }
 0x3a9   : > { %v11117_v5 = vadd.f32 %v8330_v11, %v11014_v53  ;;  %v8338_v2 = vadd.f32 %v7300_v61, %v10929_v9  ;;  %v3367_v9 = vadd.f32 %v11077_v42, %v3366_v33  ;;  %v3436_v32 = vadd.f32 %v3435_v20, %v3405_v35 }
 0x3ab   : > { %v11123_v50 = vadd.f32 %v8338_v2, %v11018_v16  ;;  %v7301_v30 = vpop.f32.mrb[128].mxu1  ;;  %v3406_v16 = vmul.f32 %v11084_v34, %v11084_v34  ;;  %v3368_v61 = vadd.f32 %v11084_v34, %v3367_v9 }
 0x3ac   : > { %v7302_v22 = vpop.f32.mrb[129].mxu1 }
 0x3ad   : > { %v7303_v26 = vadd.f32 %v7302_v22, %v7301_v30  ;;  %v7304_v21 = vpop.f32.mrb[130].mxu1  ;;  %v3437_v37 = vadd.f32 %v3436_v32, %v3406_v16  ;;  %v3369_v59 = vadd.f32 %v11102_v40, %v3368_v61 }
 0x3ae   : > { %v7305_v53 = vpop.f32.mrb[131].mxu1 }
 0x3af   : > { %v8350_v57 = vadd.f32 %v7303_v26, %v10941_v41  ;;  %v7306_v48 = vadd.f32 %v7305_v53, %v7304_v21  ;;  %v3370_v21 = vadd.f32 %v11107_v38, %v3369_v59 }
 0x3b1   : > { %v11133_v15 = vadd.f32 %v8350_v57, %v11030_v58  ;;  %v8358_v11 = vadd.f32 %v7306_v48, %v10948_v39  ;;  %v3438_v58 = vadd.f32 %v3437_v37, %v3407_v18  ;;  %v3408_v39 = vmul.f32 %v11107_v38, %v11107_v38 }
 0x3b2   : > { %v3371_v57 = vadd.f32 %v11117_v5, %v3370_v21 }
 0x3b3   : > { %v11140_v4 = vadd.f32 %v8358_v11, %v11034_v62  ;;  %v7307_v2 = vpop.f32.mrb[132].mxu1  ;;  %v3409_v62 = vmul.f32 %v11117_v5, %v11117_v5  ;;  %v3439_v9 = vadd.f32 %v3438_v58, %v3408_v39  ;;  %v3410_v11 = vmul.f32 %v11123_v50, %v11123_v50 }
 0x3b4   : > { %v7308_v41 = vpop.f32.mrb[133].mxu1 }
 0x3b5   : > { %v7309_v30 = vadd.f32 %v7308_v41, %v7307_v2  ;;  %v7310_v22 = vpop.f32.mrb[134].mxu1  ;;  %v3412_v58 = vmul.f32 %v11140_v4, %v11140_v4 }
 0x3b6   : > { %v7311_v33 = vpop.f32.mrb[135].mxu1 }
 0x3b7   : > { %v8346_v35 = vadd.f32 %v7309_v30, %v10937_v60  ;;  %v7312_v26 = vadd.f32 %v7311_v33, %v7310_v22  ;;  %v3440_v60 = vadd.f32 %v3439_v9, %v3409_v62 }
 0x3b9   : > { %v11150_v53 = vadd.f32 %v8346_v35, %v11028_v7  ;;  %v8354_v20 = vadd.f32 %v7312_v26, %v10945_v45  ;;  %v3372_v7 = vadd.f32 %v11123_v50, %v3371_v57  ;;  %v3411_v45 = vmul.f32 %v11133_v15, %v11133_v15 }
 0x3ba   : > { %v3441_v59 = vadd.f32 %v3440_v60, %v3410_v11 }
 0x3bb   : > { %v11155_v48 = vadd.f32 %v8354_v20, %v11032_v1  ;;  %v7313_v32 = vpop.f32.mrb[136].mxu1  ;;  %v3373_v1 = vadd.f32 %v11133_v15, %v3372_v7  ;;  %v3413_v21 = vmul.f32 %v11150_v53, %v11150_v53 }
 0x3bc   : > { %v7314_v16 = vpop.f32.mrb[137].mxu1  ;;  %v3442_v33 = vadd.f32 %v3441_v59, %v3411_v45 }
 0x3bd   : > { %v7315_v61 = vadd.f32 %v7314_v16, %v7313_v32  ;;  %v7316_v18 = vpop.f32.mrb[138].mxu1 }
 0x3be   : > { %v7317_v2 = vpop.f32.mrb[139].mxu1  ;;  %v3443_v9 = vadd.f32 %v3442_v33, %v3412_v58 }
 0x3bf   : > { %v8366_v41 = vadd.f32 %v7315_v61, %v10957_v29  ;;  %v7318_v37 = vadd.f32 %v7317_v2, %v7316_v18  ;;  %v3374_v29 = vadd.f32 %v11140_v4, %v3373_v1 }
 0x3c0   : > { %v3444_v16 = vadd.f32 %v3443_v9, %v3413_v21 }
 0x3c1   : > { %v11165_v30 = vadd.f32 %v8366_v41, %v11044_v25  ;;  %v8374_v22 = vadd.f32 %v7318_v37, %v10964_v3  ;;  %v3375_v3 = vadd.f32 %v11150_v53, %v3374_v29 }
 0x3c3   : > { %v11171_v39 = vadd.f32 %v8374_v22, %v11048_v51  ;;  %v7319_v35 = vpop.f32.mrb[140].mxu1  ;;  %v3414_v51 = vmul.f32 %v11155_v48, %v11155_v48  ;;  %v3376_v61 = vadd.f32 %v11155_v48, %v3375_v3  ;;  %v3415_v18 = vmul.f32 %v11165_v30, %v11165_v30 }
 0x3c4   : > { %v7320_v26 = vpop.f32.mrb[141].mxu1 }
 0x3c5   : > { %v7321_v62 = vadd.f32 %v7320_v26, %v7319_v35  ;;  %v7322_v20 = vpop.f32.mrb[142].mxu1  ;;  %v3445_v45 = vadd.f32 %v3444_v16, %v3414_v51  ;;  %v3377_v41 = vadd.f32 %v11165_v30, %v3376_v61 }
 0x3c6   : > { %v7323_v25 = vpop.f32.mrb[143].mxu1 }
 0x3c7   : > { %v8362_v57 = vadd.f32 %v7321_v62, %v10953_v0  ;;  %v7324_v32 = vadd.f32 %v7323_v25, %v7322_v20  ;;  %v3378_v58 = vadd.f32 %v11171_v39, %v3377_v41 }
 0x3c9   : > { %v11181_v60 = vadd.f32 %v8362_v57, %v11042_v47  ;;  %v8370_v11 = vadd.f32 %v7324_v32, %v10961_v24  ;;  %v3446_v47 = vadd.f32 %v3445_v45, %v3415_v18  ;;  %v3416_v24 = vmul.f32 %v11171_v39, %v11171_v39 }
 0x3cb   : > { %v11188_v2 = vadd.f32 %v8370_v11, %v11046_v12  ;;  %v7325_v7 = vpop.f32.mrb[144].mxu1  ;;  %v3417_v12 = vmul.f32 %v11181_v60, %v11181_v60  ;;  %v3447_v29 = vadd.f32 %v3446_v47, %v3416_v24  ;;  %v3379_v21 = vadd.f32 %v11181_v60, %v3378_v58 }
 0x3cc   : > { %v7326_v0 = vpop.f32.mrb[145].mxu1 }
 0x3cd   : > { %v7327_v37 = vadd.f32 %v7326_v0, %v7325_v7  ;;  %v7328_v59 = vpop.f32.mrb[146].mxu1  ;;  %v3418_v9 = vmul.f32 %v11188_v2, %v11188_v2 }
 0x3ce   : > { %v7329_v1 = vpop.f32.mrb[147].mxu1 }
 0x3cf   : > { %v8382_v22 = vadd.f32 %v7327_v37, %v10973_v56  ;;  %v7330_v33 = vadd.f32 %v7329_v1, %v7328_v59  ;;  %v3448_v56 = vadd.f32 %v3447_v29, %v3417_v12 }
 0x3d1   : > { %v11198_v35 = vadd.f32 %v8382_v22, %v11060_v27  ;;  %v8390_v26 = vadd.f32 %v7330_v33, %v10980_v10  ;;  %v3380_v27 = vadd.f32 %v11188_v2, %v3379_v21  ;;  %v3449_v11 = vadd.f32 %v3448_v56, %v3418_v9 }
 0x3d3   : > { %v11203_v62 = vadd.f32 %v8390_v26, %v11070_v46  ;;  %v7331_v20 = vpop.f32.mrb[148].mxu1  ;;  %v3419_v10 = vmul.f32 %v11198_v35, %v11198_v35  ;;  %v3381_v46 = vadd.f32 %v11198_v35, %v3380_v27 }
 0x3d4   : > { %v7332_v25 = vpop.f32.mrb[149].mxu1 }
 0x3d5   : > { %v7333_v3 = vadd.f32 %v7332_v25, %v7331_v20  ;;  %v7334_v57 = vpop.f32.mrb[150].mxu1  ;;  %v3450_v7 = vadd.f32 %v3449_v11, %v3419_v10  ;;  %v3420_v0 = vmul.f32 %v11203_v62, %v11203_v62 }
 0x3d6   : > { %v7335_v32 = vpop.f32.mrb[151].mxu1 }
 0x3d7   : > { %v8378_v16 = vadd.f32 %v7333_v3, %v10969_v44  ;;  %v7336_v51 = vadd.f32 %v7335_v32, %v7334_v57  ;;  %v3382_v44 = vadd.f32 %v11203_v62, %v3381_v46  ;;  %v3451_v24 = vadd.f32 %v3450_v7, %v3420_v0 }
 0x3d9   : > { %v11213_v61 = vadd.f32 %v8378_v16, %v11058_v55  ;;  %v8386_v18 = vadd.f32 %v7336_v51, %v10977_v28  ;;  %v13303_v51 = vld [vmem:[#allocation56_spill] sm:$0xff] }
 0x3db   : > { %v11219_v45 = vadd.f32 %v8386_v18, %v11068_v17  ;;  %v7337_v41 = vpop.f32.mrb[152].mxu1  ;;  %v3421_v59 = vmul.f32 %v11213_v61, %v11213_v61  ;;  %v3383_v28 = vadd.f32 %v11213_v61, %v3382_v44 }
 0x3dc   : > { %v7338_v37 = vpop.f32.mrb[153].mxu1 }
 0x3dd   : > { %v7339_v1 = vadd.f32 %v7338_v37, %v7337_v41  ;;  %v7340_v47 = vpop.f32.mrb[154].mxu1  ;;  %v3452_v58 = vadd.f32 %v3451_v24, %v3421_v59  ;;  %v3422_v17 = vmul.f32 %v11219_v45, %v11219_v45  ;;  %v3384_v29 = vadd.f32 %v11219_v45, %v3383_v28 }
 0x3de   : > { %v7341_v55 = vpop.f32.mrb[155].mxu1 }
 0x3df   : > { %v8398_v22 = vadd.f32 %v7339_v1, %v10989_v54  ;;  %v7342_v33 = vadd.f32 %v7341_v55, %v7340_v47  ;;  %v3453_v56 = vadd.f32 %v3452_v58, %v3422_v17 }
 0x3e1   : > { %v11229_v12 = vadd.f32 %v8398_v22, %v11088_v63  ;;  %v8406_v26 = vadd.f32 %v7342_v33, %v10996_v36 }
 0x3e3   : > { %v3423_v21 = vmul.f32 %v11229_v12, %v11229_v12  ;;  %v11236_v20 = vadd.f32 %v8406_v26, %v11093_v6  ;;  %v7343_v25 = vpop.f32.mrb[156].mxu1  ;;  %v3385_v9 = vadd.f32 %v11229_v12, %v3384_v29  ;;  %v8796_v29 = vld [vmem:[#allocation8 + $0x100] sm:$0xff]  }
 0x3e4   : > { %v7344_v54 = vpop.f32.mrb[157].mxu1  ;;  %7390 = vmatprep.subr.bf16.mxu1 %v8796_v29 }
 0x3e5   : > { %v7345_v3 = vadd.f32 %v7344_v54, %v7343_v25  ;;  %v7346_v57 = vpop.f32.mrb[158].mxu1  ;;  %v3454_v63 = vadd.f32 %v3453_v56, %v3423_v21  ;;  %v3424_v36 = vmul.f32 %v11236_v20, %v11236_v20  ;;  %v3386_v16 = vadd.f32 %v11236_v20, %v3385_v9  ;;  %v8797_v21 = vld [vmem:[#allocation8 + $0x160] sm:$0xff]   ;;  %v8799_v54 = vld [vmem:[#allocation8 + $0x108] sm:$0xff]  }
 0x3e6   : > { %v7347_v32 = vpop.f32.mrb[159].mxu1  ;;  %v8798_v25 = vld [vmem:[#allocation8 + $0xc0] sm:$0xff]   ;;  %8037 = vmatprep.subr.bf16.mxu0 %v8797_v21  ;;  %v8802_v56 = vld [vmem:[#allocation8 + $0x168] sm:$0xff]  }
 0x3e7   : > { %v8394_v27 = vadd.f32 %v7345_v3, %v10985_v19  ;;  %v7348_v10 = vadd.f32 %v7347_v32, %v7346_v57  ;;  %v3455_v46 = vadd.f32 %v3454_v63, %v3424_v36  ;;  %8038 = vmatpush3.bf16.msra.mxu0 %v8797_v21  ;;  %v8800_v9 = vld [vmem:[#allocation8 + $0xc8] sm:$0xff]   ;;  %v8801_v3 = vld [vmem:[#allocation8 + $0x110] sm:$0xff]   ;;  %v8804_v63 = vld [vmem:[#allocation8 + $0x118] sm:$0xff]  }
 0x3e8   : > { %8039 = vmatprep.subr.bf16.mxu0 %v8802_v56  ;;  %v8807_v57 = vld [vmem:[#allocation8 + $0x170] sm:$0xff]   ;;  %v8812_v36 = vld [vmem:[#allocation8 + $0x178] sm:$0xff]   ;;  %v13306_v21 = vld [vmem:[#allocation34_spill] sm:$0xff] }
 0x3e9   : > { %v11244_v6 = vadd.f32 %v8394_v27, %v11086_v13  ;;  %v8402_v11 = vadd.f32 %v7348_v10, %v13303_v51  ;;  %v8803_v32 = vld [vmem:[#allocation8 + $0xd0] sm:$0xff]   ;;  %v8805_v27 = vld [vmem:[#allocation8 + $0xd8] sm:$0xff]   ;;  %v8806_v10 = vld [vmem:[#allocation8 + $0x120] sm:$0xff]  }
 0x3ea   : > { %v8808_v51 = vld [vmem:[#allocation8 + $0xe0] sm:$0xff]  }
 0x3eb   : > { %v3387_v18 = vadd.f32 %v11244_v6, %v3386_v16  ;;  %v3425_v7 = vmul.f32 %v11244_v6, %v11244_v6  ;;  %v11251_v0 = vadd.f32 %v8402_v11, %v11091_v31  ;;  %8040 = vmatpush3.bf16.msra.mxu0 %v8802_v56  ;;  %v8816_v16 = vld [vmem:[#allocation8 + $0x40] sm:$0xff]   ;;  %v8809_v11 = vld [vmem:[#allocation8 + $0x128] sm:$0xff]  }
 0x3ec   : > { %8041 = vmatprep.subr.bf16.mxu0 %v8807_v57 }
 0x3ed   : > { %v3456_v41 = vadd.f32 %v3455_v46, %v3425_v7  ;;  %v3388_v19 = vadd.f32 %v11251_v0, %v3387_v18  ;;  %v3426_v37 = vmul.f32 %v11251_v0, %v11251_v0  ;;  %v8810_v46 = vld [vmem:[#allocation8 + $0xe8] sm:$0xff]   ;;  %v8811_v18 = vld [vmem:[#allocation8 + $0x130] sm:$0xff]  }
 0x3ee   : > { %v8813_v7 = vld [vmem:[#allocation8 + $0xf0] sm:$0xff]  }
 0x3ef   : > { %v3389_v44 = vrot.slane %v3388_v19, 4  ;;  %v3457_v13 = vadd.f32 %v3456_v41, %v3426_v37  ;;  %8042 = vmatpush3.bf16.msra.mxu0 %v8807_v57  ;;  %v8814_v41 = vld [vmem:[#allocation8 + $0x138] sm:$0xff]   ;;  %v8833_v37 = vld [vmem:[#allocation8 + $0x1c0] sm:$0xff]  }
 0x3f0   : > { %8043 = vmatprep.subr.bf16.mxu0 %v8812_v36 }
 0x3f1   : > { %v3390_v59 = vadd.f32 %v3389_v44, %v3388_v19  ;;  %v3458_v1 = vrot.slane %v3457_v13, 4  ;;  %v8815_v19 = vld [vmem:[#allocation8 + $0xf8] sm:$0xff]  }
 0x3f3   : > { %v3391_v47 = vrot.slane %v3390_v59, 2  ;;  %v3459_v55 = vadd.f32 %v3458_v1, %v3457_v13  ;;  %8044 = vmatpush3.bf16.msra.mxu0 %v8812_v36 }
 0x3f4   : > { %7526 = vmatprep.subr.bf16.mxu0 %v8816_v16  ;;  %v13309_v16 = vld [vmem:[#allocation55_spill] sm:$0xff] }
 0x3f5   : > { %v3392_v24 = vadd.f32 %v3391_v47, %v3390_v59  ;;  %v3460_v28 = vrot.slane %v3459_v55, 2 }
 0x3f7   : > { %v3393_v22 = vrot.slane %v3392_v24, 1  ;;  %v3461_v33 = vadd.f32 %v3460_v28, %v3459_v55 }
 0x3f9   : > { %v3462_v58 = vrot.slane %v3461_v33, 1  ;;  %v3394_v17 = vadd.f32 %v3393_v22, %v3392_v24  ;;  %v6131_v24 = vld [vmem:[%s12756_s4] ss:$0 sm:$0xff] }
 0x3fb   : > { %v3463_v31 = vadd.f32 %v3462_v58, %v3461_v33 }
 0x3fd   : > { %v3464_v26 = vsel %vm13304_vm5, %v3394_v17, %v3463_v31  ;;  %v3357_v17 = vld [vmem:[%s12757_s5] sm:$0x1] }
 0x3fe   : > { %8027 = vmatmul.mubr.f32.vlgmr.msra.gmra.mrb[160].mxu1 %v3464_v26  ;;  %v13305_v26 = vld [vmem:[#allocation33_spill] sm:$0xff] }
 0x3ff   : > { %7391 = vmatpush3.bf16.msra.mxu1 %v8798_v25 }
 0x400   : > { %7392 = vmatprep.subr.bf16.mxu1 %v8799_v54 }
 0x403   : > { %7393 = vmatpush3.bf16.msra.mxu1 %v8800_v9 }
 0x404   : > { %7394 = vmatprep.subr.bf16.mxu1 %v8801_v3  ;;  %v13307_v3 = vld [vmem:[#allocation61_spill] sm:$0xff] }
 0x407   : > { %7395 = vmatpush3.bf16.msra.mxu1 %v8803_v32 }
 0x408   : > { %7396 = vmatprep.subr.bf16.mxu1 %v8804_v63 }
 0x40b   : > { %7397 = vmatpush3.bf16.msra.mxu1 %v8805_v27 }
 0x40c   : > { %7398 = vmatprep.subr.bf16.mxu1 %v8806_v10 }
 0x40f   : > { %7399 = vmatpush3.bf16.msra.mxu1 %v8808_v51 }
 0x410   : > { %7400 = vmatprep.subr.bf16.mxu1 %v8809_v11  ;;  %v13310_v11 = vld [vmem:[#allocation35_spill] sm:$0xff] }
 0x413   : > { %7401 = vmatpush3.bf16.msra.mxu1 %v8810_v46 }
 0x414   : > { %7402 = vmatprep.subr.bf16.mxu1 %v8811_v18 }
 0x417   : > { %7403 = vmatpush3.bf16.msra.mxu1 %v8813_v7 }
 0x418   : > { %7404 = vmatprep.subr.bf16.mxu1 %v8814_v41 }
 0x41b   : > { %7405 = vmatpush3.bf16.msra.mxu1 %v8815_v19 }
 0x41c   : > { %7662 = vmatprep.subr.bf16.mxu1 %v8833_v37 }
 0x4d1   : > { %v3531_v44 = vpop.f32.mrb[160].mxu1 }
 0x4d2   : > { %v3535_v13 = vmul.f32 %v3531_v44, %v3531_v44  ;;  %v8028_v59 = vpop.f32.mrb[161].mxu1 }
 0x4d4   : > { %v3537_v1 = vrot.slane %v3535_v13, 7 }
 0x4d6   : > { %v3539_v47 = vsub.f32 %v3531_v44, %v3537_v1 }
 0x4d8   : > { %v3540_v55 = vadd.f32 1e-05, %v3539_v47 }
 0x4da   : > { %8866 = vrsqrt.f32 %v3540_v55 }
 0x4e4   : > { %v8867_v28 = vpop.eup %8866 }
 0x4e5   : > { %v3548_v22 = vmul.f32 %v8867_v28, %v6131_v24 }
 0x4e7   : > { %v3550_v33 = vrot.slane %v3548_v22, 1  ;;  %v11264_v29 = vrot.slane %v3548_v22, %v13305_v26 }
 0x4e9   : > { %v3552_v58 = vmul.f32 %v3550_v33, %v3531_v44  ;;  %v3562_v54 = vmul.f32 %v11023_v52, %v11264_v29  ;;  %v3563_v56 = vmul.f32 %v11026_v23, %v11264_v29  ;;  %v3564_v9 = vmul.f32 %v11037_v8, %v11264_v29  ;;  %v13308_v52 = vld [vmem:[#allocation58_spill] sm:$0xff] }
 0x4ea   : > { %v3560_v57 = vmul.f32 %v13307_v3, %v11264_v29  ;;  %v3589_v36 = vmul.f32 %v11251_v0, %v11264_v29  ;;  %v3558_v10 = vmul.f32 %v13308_v52, %v11264_v29  ;;  %v3565_v23 = vmul.f32 %v11040_v14, %v11264_v29 }
 0x4eb   : > { %v3553_v31 = vsub.f32 %v3357_v17, %v3552_v58  ;;  %v3559_v51 = vmul.f32 %v13309_v16, %v11264_v29  ;;  %v3561_v46 = vmul.f32 %v13310_v11, %v11264_v29  ;;  %v3566_v18 = vmul.f32 %v11051_v43, %v11264_v29 }
 0x4ec   : > { %v3567_v7 = vmul.f32 %v11056_v49, %v11264_v29  ;;  %v3568_v37 = vmul.f32 %v11077_v42, %v11264_v29  ;;  %v3569_v44 = vmul.f32 %v11084_v34, %v11264_v29  ;;  %v3570_v43 = vmul.f32 %v11102_v40, %v11264_v29 }
 0x4ed   : > { %v11267_v25 = vrot.slane %v3553_v31, %v13306_v21  ;;  %v3571_v49 = vmul.f32 %v11107_v38, %v11264_v29 }
 0x4ef   : > { %v3600_v32 = vadd.f32 %v11267_v25, %v3562_v54  ;;  %v3601_v63 = vadd.f32 %v11267_v25, %v3563_v56  ;;  %v3602_v27 = vadd.f32 %v11267_v25, %v3564_v9  ;;  %v3598_v8 = vadd.f32 %v11267_v25, %v3560_v57 }
 0x4f0   : > { %v3627_v0 = vadd.f32 %v11267_v25, %v3589_v36  ;;  %v3603_v41 = vadd.f32 %v11267_v25, %v3565_v23  ;;  %v3604_v59 = vadd.f32 %v11267_v25, %v3566_v18  ;;  %v3605_v1 = vadd.f32 %v11267_v25, %v3567_v7 }
 0x4f1   : > { %v11297_v19 = vmax.f32 %v3600_v32, 0.0  ;;  %v11299_v14 = vmax.f32 %v3601_v63, 0.0  ;;  %v11307_v13 = vmax.f32 %v3602_v27, 0.0  ;;  %v11313_v47 = vmax.f32 %v3598_v8, 0.0  ;;  %v13311_v8 = vld [vmem:[#allocation26_spill] sm:$0xff] }
 0x4f2   : > { %v3606_v55 = vadd.f32 %v11267_v25, %v3568_v37  ;;  %v11316_v42 = vmax.f32 %v3627_v0, 0.0  ;;  %v3596_v34 = vadd.f32 %v11267_v25, %v3558_v10  ;;  %v3597_v24 = vadd.f32 %v11267_v25, %v3559_v51  ;;  %v8834_v37 = vld [vmem:[#allocation8 + $0x180] sm:$0xff]  }
 0x4f3   : > { %v11320_v40 = vmax.f32 %v3603_v41, 0.0  ;;  %v3760_v28 = vrot.slane %v11297_v19, 1  ;;  %v3599_v38 = vadd.f32 %v11267_v25, %v3561_v46  ;;  %v3761_v22 = vrot.slane %v11299_v14, 1 }
 0x4f4   : > { %v12958_v33 = vrot.slane %v11316_v42, 7  ;;  %v11326_v58 = vmax.f32 %v3596_v34, 0.0  ;;  %v3629_v17 = vmax.f32 %v3597_v24, 0.0  ;;  %v12960_v31 = vrot.slane %v11307_v13, 1  ;;  %v8817_v34 = vld [vmem:[#allocation8] sm:$0xff]  }
 0x4f5   : > { %v11329_v54 = vmax.f32 %v3604_v59, 0.0  ;;  %v11331_v56 = vmax.f32 %v3605_v1, 0.0  ;;  %v3758_v9 = vrot.slane %v11313_v47, 1  ;;  %v11334_v3 = vmax.f32 %v3599_v38, 0.0 }
 0x4f6   : > { %v3660_v57 = vrot.slane %v11326_v58, 7  ;;  %v3661_v32 = vrot.slane %v3629_v17, 7  ;;  %v11338_v63 = vpack.c.bf16 %v3629_v17, %v11326_v58  ;;  %v12957_v36 = vrot.slane %v11326_v58, 1 }
 0x4f7   : > { %v11341_v27 = vmax.f32 %v3606_v55, 0.0  ;;  %v3757_v52 = vrot.slane %v3629_v17, 1  ;;  %v3759_v10 = vrot.slane %v11334_v3, 1  ;;  %v3662_v23 = vrot.slane %v11313_v47, 7  ;;  %v13320_v17 = vld [vmem:[#allocation36_spill] sm:$0xff] }
 0x4f8   : > { %4272 = vmatprep.mubr.bf16.mxu1 %v11338_v63  ;;  %vm13312_vm5 = vcmp.lt.s32.totalorder %v13311_v8, 1  ;;  %vm13314_vm13 = vcmp.lt.s32.totalorder %v13311_v8, 7  ;;  %v11374_v55 = vpack.c.bf16 %v11334_v3, %v11313_v47  ;;  %v12959_v24 = vrot.slane %v11334_v3, 7 }
 0x4f9   : > { %v3722_v16 = vsel %vm13312_vm5, %v3660_v57, %v3661_v32  ;;  %vm13313_vm1 = vmmov %vm13312_vm5  ;;  %v3813_v11 = vsel %vm13314_vm13, %v3761_v22, %v12960_v31  ;;  %v3572_v38 = vmul.f32 %v11117_v5, %v11264_v29  ;;  %v3609_v47 = vadd.f32 %v11267_v25, %v3571_v49 }
 0x4fa   : > { %v3723_v51 = vsel %vm13313_vm1, %v12958_v33, %v3660_v57  ;;  %vm13315_vm15 = vmmov %vm13314_vm13  ;;  %v3765_v49 = vrot.slane %v11331_v56, 1  ;;  %v13341_v21 = vrot.slane %v11334_v3, 7 }
 0x4fb   : > { %v3814_v46 = vsel %vm13315_vm15, %v3760_v28, %v3761_v22  ;;  %v11358_v18 = vpack.c.bf16 %v3722_v16, %v3723_v51  ;;  %vm13316_vm8 = vmmov %vm13314_vm13  ;;  %v3607_v22 = vadd.f32 %v11267_v25, %v3569_v44  ;;  %vm13321_vm15 = vnez %v13320_v17  ;;  %v13325_v51 = vld [vmem:[#allocation32_spill] sm:$0xff] }
 0x4fc   : > { %v3817_v0 = vsel %vm13316_vm8, %v3757_v52, %v3758_v9  ;;  %vm13317_vm5 = vmmov %vm13316_vm8  ;;  %v11391_v5 = vpack.c.bf16 %v3813_v11, %v3814_v46  ;;  %v3763_v44 = vrot.slane %v11320_v40, 1  ;;  %v3610_v16 = vadd.f32 %v11267_v25, %v3572_v38  ;;  %v8839_v38 = vld [vmem:[#allocation8 + $0x1d0] sm:$0xff]  }
 0x4fd   : > { %v3818_v7 = vsel %vm13317_vm5, %v12957_v36, %v3757_v52  ;;  %vm13318_vm1 = vmmov %vm13317_vm5  ;;  %6583 = vmatmul.mubr.msk.bf16.vlgmr.msra.gmra.mrb[164].mxu1 %vm13321_vm15, %v11358_v18  ;;  %v8836_v52 = vld [vmem:[#allocation8 + $0x1c8] sm:$0xff]   ;;  %vm13327_vm5 = vcmp.lt.s32.totalorder %v13311_v8, 1  ;;  %v3573_v36 = vmul.f32 %v11123_v50, %v11264_v29  ;;  %v11416_v33 = vmax.f32 %v3607_v22, 0.0 }
 0x4fe   : > { %v3815_v41 = vsel %vm13318_vm1, %v3759_v10, %v3760_v28  ;;  %v11368_v59 = vpack.c.bf16 %v3817_v0, %v3818_v7  ;;  %vm13319_vm13 = vmmov %vm13318_vm1  ;;  %v3608_v28 = vadd.f32 %v11267_v25, %v3570_v43  ;;  %4280 = vmatprep.mubr.bf16.mxu1 %v11374_v55  ;;  %13324 = vst [vmem:[#allocation49_spill] sm:$0xff] %v11391_v5  ;;  %v3764_v43 = vrot.slane %v11329_v54, 1  ;;  %v8837_v7 = vld [vmem:[#allocation8 + $0x188] sm:$0xff]   ;;  %v8820_v0 = vld [vmem:[#allocation8 + $0x50] sm:$0xff]  }
 0x4ff   : > { %v3816_v1 = vsel %vm13319_vm13, %v3758_v9, %v3759_v10  ;;  %v8818_v9 = vld [vmem:[#allocation8 + $0x48] sm:$0xff]   ;;  %7663 = vmatpush3.bf16.msra.mxu1 %v8834_v37  ;;  %v3720_v46 = vsel %vm13327_vm5, %v3662_v23, %v12959_v24  ;;  %vm13328_vm1 = vmmov %vm13327_vm5  ;;  %v3574_v37 = vmul.f32 %v11133_v15, %v11264_v29  ;;  %v11420_v31 = vmax.f32 %v3609_v47, 0.0 }
 0x500   : > { %v11384_v57 = vpack.c.bf16 %v3815_v41, %v3816_v1  ;;  %v13322_v10 = vld [vmem:[#allocation31_spill] sm:$0xff]  ;;  %v3721_v41 = vsel %vm13328_vm1, %v3661_v32, %v3662_v23  ;;  %7664 = vmatprep.subr.bf16.mxu1 %v8836_v52  ;;  %v11418_v24 = vmax.f32 %v3608_v28, 0.0  ;;  %v3811_v32 = vsel %vm13319_vm13, %v3763_v44, %v3764_v43  ;;  %vm13330_vm5 = vmmov %vm13319_vm13  ;;  %v8840_v52 = vld [vmem:[#allocation8 + $0x190] sm:$0xff]  }
 0x501   : > { %vm13323_vm8 = vnez %v13322_v10  ;;  %v8819_v1 = vld [vmem:[#allocation8 + $0x8] sm:$0xff]   ;;  %v13329_v50 = vrot.slane %v11307_v13, 1  ;;  %v11428_v23 = vmax.f32 %v3610_v16, 0.0  ;;  %v13331_v22 = vrot.slane %v11341_v27, 1  ;;  %vm13332_vm1 = vmmov %vm13330_vm5 }
 0x502   : > { %8045 = vmatprep.mubr.msk.bf16.mxu0 %vm13323_vm8, %v11368_v59  ;;  %v3576_v47 = vmul.f32 %v11150_v53, %v11264_v29  ;;  %v3664_v16 = vrot.slane %v11297_v19, 7 }
 0x503   : > { %8046 = vmatmul.mubr.msk.bf16.vlgmr.msra.gmra.mrb[100].mxu0 %vm10421_vm2, %v11384_v57  ;;  %v3812_v15 = vsel %vm13330_vm5, %v13329_v50, %v3763_v44  ;;  %v3809_v28 = vsel %vm13332_vm1, %v3765_v49, %v13331_v22  ;;  %7665 = vmatpush3.bf16.msra.mxu1 %v8837_v7  ;;  %v11442_v44 = vpack.c.bf16 %v11299_v14, %v11297_v19  ;;  %v8822_v7 = vld [vmem:[#allocation8 + $0x58] sm:$0xff]   ;;  %vm13343_vm5 = vmmov %vm13332_vm1 }
 0x504   : > { %7527 = vmatpush3.bf16.msra.mxu0 %v8817_v34  ;;  %8049 = vmatprep.mubr.msk.bf16.mxu0 %vm10443_vm7, %v11391_v5  ;;  %v3575_v34 = vmul.f32 %v11140_v4, %v11264_v29  ;;  %v11430_v4 = vpack.c.bf16 %v3720_v46, %v3721_v41  ;;  %vm13333_vm7 = vmmov %vm13332_vm1  ;;  %v8821_v41 = vld [vmem:[#allocation8 + $0x10] sm:$0xff]   ;;  %v3611_v50 = vadd.f32 %v11267_v25, %v3573_v36  ;;  %v8841_v22 = vld [vmem:[#allocation8 + $0x1d8] sm:$0xff]   ;;  %v3768_v36 = vrot.slane %v11418_v24, 1 }
 0x505   : > { %7528 = vmatprep.subr.bf16.mxu0 %v8818_v9  ;;  %v3810_v9 = vsel %vm13333_vm7, %v3764_v43, %v3765_v49  ;;  %7666 = vmatprep.subr.bf16.mxu1 %v8839_v38  ;;  %v3612_v43 = vadd.f32 %v11267_v25, %v3574_v37  ;;  %v11451_v53 = vpack.c.bf16 %v3811_v32, %v3812_v15  ;;  %v3767_v38 = vrot.slane %v11416_v33, 1  ;;  %v8842_v15 = vld [vmem:[#allocation8 + $0x198] sm:$0xff]   ;;  %v13451_v49 = vld [vmem:[#allocation22_spill] sm:$0xff] }
 0x506   : > { %6587 = vmatmul.mubr.msk.bf16.gmra.mrb[168].mxu1 %vm9686_vm9, %v11430_v4  ;;  %v11455_v19 = vpack.c.bf16 %v3809_v28, %v3810_v9  ;;  %v3577_v37 = vmul.f32 %v11155_v48, %v11264_v29  ;;  %v3614_v46 = vadd.f32 %v11267_v25, %v3576_v47  ;;  %v3578_v28 = vmul.f32 %v11165_v30, %v11264_v29 }
 0x507   : > { %13335 = vst [vmem:[#allocation44_spill] sm:$0xff] %v11451_v53  ;;  %4288 = vmatprep.mubr.bf16.mxu1 %v11442_v44  ;;  %7667 = vmatpush3.bf16.msra.mxu1 %v8840_v52  ;;  %v13339_v48 = vrot.slane %v11299_v14, 7  ;;  %vm13340_vm7 = vcmp.lt.s32.totalorder %v13311_v8, 1  ;;  %v8823_v52 = vld [vmem:[#allocation8 + $0x18] sm:$0xff]   ;;  %v3580_v30 = vmul.f32 %v11181_v60, %v11264_v29  ;;  %v3581_v9 = vmul.f32 %v11188_v2, %v11264_v29 }
 0x508   : > { %7529 = vmatpush3.bf16.msra.mxu0 %v8819_v1  ;;  %v3613_v1 = vadd.f32 %v11267_v25, %v3575_v34  ;;  %13336 = vst [vmem:[#allocation40_spill] sm:$0xff] %v11455_v19  ;;  %vm13342_vm13 = vmmov %vm13340_vm7  ;;  %v3579_v34 = vmul.f32 %v11171_v39, %v11264_v29  ;;  %7668 = vmatprep.subr.bf16.mxu1 %v8841_v22  ;;  %v11488_v3 = vmax.f32 %v3612_v43, 0.0  ;;  %v13344_v39 = vrot.slane %v11341_v27, 1  ;;  %v8845_v22 = vld [vmem:[#allocation8 + $0x1a0] sm:$0xff]  }
 0x509   : > { %7530 = vmatprep.subr.bf16.mxu0 %v8820_v0  ;;  %v3769_v0 = vrot.slane %v11420_v31, 1  ;;  %v3718_v47 = vsel %vm13340_vm7, %v3664_v16, %v13339_v48  ;;  %v3719_v26 = vsel %vm13342_vm13, %v13341_v21, %v3664_v16  ;;  %v8824_v48 = vld [vmem:[#allocation8 + $0x60] sm:$0xff]   ;;  %v3807_v21 = vsel %vm13343_vm5, %v3767_v38, %v3768_v36  ;;  %vm13346_vm7 = vmmov %vm13332_vm1 }
 0x50a   : > { %v11490_v32 = vmax.f32 %v3613_v1, 0.0  ;;  %v3808_v60 = vsel %vm13332_vm1, %v13344_v39, %v3767_v38  ;;  %v8844_v16 = vld [vmem:[#allocation8 + $0x1e0] sm:$0xff]   ;;  %v11500_v2 = vpack.c.bf16 %v3718_v47, %v3719_v26  ;;  %vm13347_vm13 = vmmov %vm13332_vm1  ;;  %v3582_v1 = vmul.f32 %v11198_v35, %v11264_v29  ;;  %v8826_v35 = vld [vmem:[#allocation8 + $0x68] sm:$0xff]  }
 0x50b   : > { %8050 = vmatmul.mubr.msk.bf16.gmra.mrb[104].mxu0 %vm10448_vm0, %v11451_v53  ;;  %7669 = vmatpush3.bf16.msra.mxu1 %v8842_v15  ;;  %v11512_v38 = vpack.c.bf16 %v11320_v40, %v11307_v13  ;;  %v3666_v26 = vrot.slane %v11307_v13, 7  ;;  %v8825_v47 = vld [vmem:[#allocation8 + $0x20] sm:$0xff]   ;;  %v3615_v39 = vadd.f32 %v11267_v25, %v3577_v37  ;;  %v8846_v15 = vld [vmem:[#allocation8 + $0x1e8] sm:$0xff]   ;;  %v3617_v53 = vadd.f32 %v11267_v25, %v3579_v34 }
 0x50c   : > { %8053 = vmatprep.mubr.msk.bf16.mxu0 %vm10469_vm3, %v11455_v19  ;;  %7531 = vmatpush3.bf16.msra.mxu0 %v8821_v41  ;;  %v11486_v19 = vmax.f32 %v3611_v50, 0.0  ;;  %v11498_v41 = vmax.f32 %v3614_v46, 0.0  ;;  %v13345_v50 = vrot.slane %v11428_v23, 1  ;;  %v12971_v46 = vrot.slane %v11320_v40, 7 }
 0x50d   : > { %7532 = vmatprep.subr.bf16.mxu0 %v8822_v7  ;;  %v3806_v7 = vsel %vm13347_vm13, %v3768_v36, %v3769_v0  ;;  %v3772_v37 = vrot.slane %v11488_v3, 1  ;;  %7670 = vmatprep.subr.bf16.mxu1 %v8844_v16  ;;  %v3773_v34 = vrot.slane %v11490_v32, 1  ;;  %vm13353_vm5 = vcmp.lt.s32.totalorder %v13311_v8, 1  ;;  %vm13357_vm13 = vmmov %vm13346_vm7  ;;  %v13454_v36 = vld [vmem:[#allocation25_spill] sm:$0xff] }
 0x50e   : > { %v3805_v43 = vsel %vm13346_vm7, %v3769_v0, %v13345_v50  ;;  %v3616_v50 = vadd.f32 %v11267_v25, %v3578_v28  ;;  %6591 = vmatmul.mubr.msk.bf16.gmra.mrb[172].mxu1 %vm9775_vm11, %v11500_v2  ;;  %v11521_v0 = vpack.c.bf16 %v3807_v21, %v3808_v60  ;;  %v3583_v28 = vmul.f32 %v11203_v62, %v11264_v29  ;;  %vm13355_vm1 = vmmov %vm13353_vm5  ;;  %v8848_v60 = vld [vmem:[#allocation8 + $0x1f0] sm:$0xff]  }
 0x50f   : > { %4296 = vmatprep.mubr.bf16.mxu1 %v11512_v38  ;;  %v11525_v13 = vpack.c.bf16 %v3805_v43, %v3806_v7  ;;  %v3618_v21 = vadd.f32 %v11267_v25, %v3580_v30  ;;  %7671 = vmatpush3.bf16.msra.mxu1 %v8845_v22  ;;  %v8847_v43 = vld [vmem:[#allocation8 + $0x1a8] sm:$0xff]   ;;  %v3584_v7 = vmul.f32 %v11213_v61, %v11264_v29  ;;  %v13354_v30 = vrot.slane %v11299_v14, 7 }
 0x510   : > { %7533 = vmatpush3.bf16.msra.mxu0 %v8823_v52  ;;  %13349 = vst [vmem:[#allocation41_spill] sm:$0xff] %v11521_v0  ;;  %v3771_v52 = vrot.slane %v11486_v19, 1  ;;  %v3716_v62 = vsel %vm13353_vm5, %v3666_v26, %v12971_v46  ;;  %v8827_v22 = vld [vmem:[#allocation8 + $0x28] sm:$0xff]   ;;  %v3587_v61 = vmul.f32 %v11236_v20, %v11264_v29  ;;  %v3588_v16 = vmul.f32 %v11244_v6, %v11264_v29  ;;  %v8828_v46 = vld [vmem:[#allocation8 + $0x70] sm:$0xff]   ;;  %vm13359_vm5 = vmmov %vm13346_vm7 }
 0x511   : > { %7534 = vmatprep.subr.bf16.mxu0 %v8824_v48  ;;  %13350 = vst [vmem:[#allocation59_spill] sm:$0xff] %v11525_v13  ;;  %v3717_v48 = vsel %vm13355_vm1, %v13354_v30, %v3666_v26  ;;  %7672 = vmatprep.subr.bf16.mxu1 %v8846_v15  ;;  %v11557_v14 = vmax.f32 %v3616_v50, 0.0  ;;  %v11559_v11 = vmax.f32 %v3617_v53, 0.0  ;;  %v11567_v6 = vmax.f32 %v3618_v21, 0.0  ;;  %vm13360_vm1 = vmmov %vm13359_vm5 }
 0x512   : > { %v3803_v26 = vsel %vm13346_vm7, %v3771_v52, %v3772_v37  ;;  %v3802_v53 = vsel %vm13360_vm1, %v3772_v37, %v3773_v34  ;;  %v3620_v15 = vadd.f32 %v11267_v25, %v3582_v1  ;;  %v11580_v30 = vpack.c.bf16 %v11331_v56, %v11329_v54  ;;  %v8859_v37 = vld [vmem:[#allocation8 + $0x218] sm:$0xff]  }
 0x513   : > { %8054 = vmatmul.mubr.msk.bf16.gmra.mrb[108].mxu0 %vm10474_vm12, %v11521_v0  ;;  %v11555_v0 = vmax.f32 %v3615_v39, 0.0  ;;  %v13358_v39 = vrot.slane %v11498_v41, 1  ;;  %7673 = vmatpush3.bf16.msra.mxu1 %v8847_v43  ;;  %v12978_v21 = vrot.slane %v11331_v56, 7  ;;  %v8850_v43 = vld [vmem:[#allocation8 + $0x1f8] sm:$0xff]   ;;  %v3682_v17 = vrot.slane %v11567_v6, 7 }
 0x514   : > { %8057 = vmatprep.mubr.msk.bf16.mxu0 %vm10495_vm4, %v11525_v13  ;;  %7535 = vmatpush3.bf16.msra.mxu0 %v8825_v47  ;;  %v3619_v13 = vadd.f32 %v11267_v25, %v3581_v9  ;;  %v13356_v47 = vrot.slane %v11428_v23, 1  ;;  %v11569_v9 = vpack.c.bf16 %v3716_v62, %v3717_v48  ;;  %v8829_v48 = vld [vmem:[#allocation8 + $0x30] sm:$0xff]   ;;  %v3621_v62 = vadd.f32 %v11267_v25, %v3583_v28 }
 0x515   : > { %7536 = vmatprep.subr.bf16.mxu0 %v8826_v35  ;;  %v3801_v50 = vsel %vm13359_vm5, %v3773_v34, %v13358_v39  ;;  %v8849_v35 = vld [vmem:[#allocation8 + $0x1b0] sm:$0xff]   ;;  %7674 = vmatprep.subr.bf16.mxu1 %v8848_v60  ;;  %v8830_v34 = vld [vmem:[#allocation8 + $0x78] sm:$0xff]   ;;  %v3775_v60 = vrot.slane %v11555_v0, 1  ;;  %v3776_v28 = vrot.slane %v11557_v14, 1  ;;  %v11620_v5 = vmax.f32 %v3620_v15, 0.0 }
 0x516   : > { %v3804_v20 = vsel %vm13357_vm13, %v13356_v47, %v3771_v52  ;;  %v3668_v52 = vrot.slane %v11329_v54, 7  ;;  %v3622_v47 = vadd.f32 %v11267_v25, %v3584_v7  ;;  %6595 = vmatmul.mubr.msk.bf16.gmra.mrb[176].mxu1 %vm13239_vm10, %v11569_v9  ;;  %v3625_v54 = vadd.f32 %v11267_v25, %v3587_v61  ;;  %v13364_v39 = vld [vmem:[#allocation69_spill] sm:$0xff] }
 0x517   : > { %v11589_v1 = vpack.c.bf16 %v3803_v26, %v3804_v20  ;;  %4304 = vmatprep.mubr.bf16.mxu1 %v11580_v30  ;;  %v3626_v7 = vadd.f32 %v11267_v25, %v3588_v16  ;;  %vm13365_vm7 = vnez %v13364_v39  ;;  %v3778_v26 = vrot.slane %v11567_v6, 1  ;;  %7675 = vmatpush3.bf16.msra.mxu1 %v8849_v35  ;;  %v8851_v61 = vld [vmem:[#allocation8 + $0x1b8] sm:$0xff]  }
 0x518   : > { %7537 = vmatpush3.bf16.msra.mxu0 %v8827_v22  ;;  %v11593_v22 = vpack.c.bf16 %v3801_v50, %v3802_v53  ;;  %v3585_v20 = vmul.f32 %v11219_v45, %v11264_v29  ;;  %vm13367_vm13 = vcmp.lt.s32.totalorder %v13311_v8, 1  ;;  %v13368_v53 = vrot.slane %v11320_v40, 7  ;;  %v8831_v35 = vld [vmem:[#allocation8 + $0x38] sm:$0xff]   ;;  %7676 = vmatprep.subr.bf16.mxu1 %v8850_v43 }
 0x519   : > { %13362 = vst [vmem:[#allocation37_spill] sm:$0xff] %v11589_v1  ;;  %7538 = vmatprep.subr.bf16.mxu0 %v8828_v46  ;;  %v3777_v46 = vrot.slane %v11559_v11, 1  ;;  %v3714_v16 = vsel %vm13367_vm13, %v3668_v52, %v12978_v21  ;;  %vm13369_vm5 = vmmov %vm13367_vm13  ;;  %v11618_v45 = vmax.f32 %v3619_v13, 0.0  ;;  %v11622_v50 = vmax.f32 %v3621_v62, 0.0 }
 0x51a   : > { %13363 = vst [vmem:[#allocation42_spill] sm:$0xff] %v11593_v22  ;;  %v3715_v39 = vsel %vm13369_vm5, %v13368_v53, %v3668_v52  ;;  %v11626_v21 = vmax.f32 %v3622_v47, 0.0  ;;  %v11628_v40 = vmax.f32 %v3625_v54, 0.0  ;;  %v3799_v52 = vsel %vm13360_vm1, %v3775_v60, %v3776_v28  ;;  %vm13371_vm13 = vmmov %vm13360_vm1 }
 0x51b   : > { %8058 = vmatmul.mubr.msk.bf16.gmra.mrb[112].mxu0 %vm13365_vm7, %v11589_v1  ;;  %v3586_v1 = vmul.f32 %v11229_v12, %v11264_v29  ;;  %v11636_v29 = vmax.f32 %v3626_v7, 0.0  ;;  %v11638_v13 = vpack.c.bf16 %v3714_v16, %v3715_v39  ;;  %vm13372_vm5 = vmmov %vm13360_vm1  ;;  %7677 = vmatpush3.bf16.msra.mxu1 %v8851_v61  ;;  %v11646_v47 = vpack.c.bf16 %v11416_v33, %v11341_v27  ;;  %v8861_v39 = vld [vmem:[#allocation8 + $0x228] sm:$0xff]  }
 0x51c   : > { %8061 = vmatprep.mubr.msk.bf16.mxu0 %vm13240_vm6, %v11593_v22  ;;  %7539 = vmatpush3.bf16.msra.mxu0 %v8829_v48  ;;  %v11624_v22 = vld [vmem:[#allocation8 + $0x80] sm:$0xff]   ;;  %v13370_v48 = vrot.slane %v11498_v41, 1  ;;  %v3797_v15 = vsel %vm13372_vm5, %v3777_v46, %v3778_v26  ;;  %vm13373_vm6 = vmmov %vm13360_vm1  ;;  %v3671_v43 = vrot.slane %v11416_v33, 7  ;;  %v13374_v54 = vmov 0.0|0.0  }
 0x51d   : > { %7540 = vmatprep.subr.bf16.mxu0 %v8830_v34  ;;  %v3798_v62 = vsel %vm13373_vm6, %v3776_v28, %v3777_v46  ;;  %v3670_v34 = vrot.slane %v11341_v27, 7  ;;  %8256 = vmatprep.subr.bf16.mxu1 %v13374_v54  ;;  %v3624_v7 = vadd.f32 %v11267_v25, %v3586_v1  ;;  %v3779_v33 = vrot.slane %v11618_v45, 1 }
 0x51e   : > { %v3800_v12 = vsel %vm13371_vm13, %v13370_v48, %v3775_v60  ;;  %v3623_v60 = vadd.f32 %v11267_v25, %v3585_v20  ;;  %6599 = vmatmul.mubr.msk.bf16.gmra.mrb[180].mxu1 %vm13245_vm14, %v11638_v13  ;;  %v11660_v27 = vpack.c.bf16 %v3797_v15, %v3798_v62  ;;  %v3780_v46 = vrot.slane %v11620_v5, 1  ;;  %v13378_v25 = vld [vmem:[#allocation71_spill] sm:$0xff] }
 0x51f   : > { %v11656_v28 = vpack.c.bf16 %v3799_v52, %v3800_v12  ;;  %4312 = vmatprep.mubr.bf16.mxu1 %v11646_v47  ;;  %vm13379_vm6 = vnez %v13378_v25  ;;  %v3781_v1 = vrot.slane %v11622_v50, 1  ;;  %v3782_v20 = vrot.slane %v11626_v21, 1 }
 0x520   : > { %7541 = vmatpush3.bf16.msra.mxu0 %v8831_v35  ;;  %13377 = vst [vmem:[#allocation39_spill] sm:$0xff] %v11660_v27  ;;  %v11672_v16 = vpack.c.bf16 %v11316_v42, %v11636_v29  ;;  %v3690_v53 = vrot.slane %v11636_v29, 7  ;;  %v13380_v35 = vld [vmem:[#allocation72_spill] sm:$0xff]  ;;  %vm13382_vm13 = vcmp.lt.s32.totalorder %v13311_v8, 1  ;;  %v13383_v48 = vrot.slane %v11331_v56, 7 }
 0x521   : > { %13376 = vst [vmem:[#allocation43_spill] sm:$0xff] %v11656_v28  ;;  %8077 = vmatprep.subr.bf16.mxu0 %v11624_v22  ;;  %vm13381_vm1 = vnez %v13380_v35  ;;  %v3712_v52 = vsel %vm13382_vm13, %v3670_v34, %v3671_v43  ;;  %vm13384_vm5 = vmmov %vm13382_vm13  ;;  %v11684_v15 = vmax.f32 %v3623_v60, 0.0  ;;  %v13385_v62 = vrot.slane %v11316_v42, 7 }
 0x522   : > { %v3713_v12 = vsel %vm13384_vm5, %v13383_v48, %v3670_v34  ;;  %v13387_v25 = vrot.slane %v11628_v40, 7  ;;  %vm13388_vm7 = vmmov %vm13384_vm5  ;;  %vm13389_vm13 = vcmp.lt.s32.totalorder %v13311_v8, 7  ;;  %vm13402_vm4 = vcmp.lt.s32.totalorder %v13311_v8, 7 }
 0x523   : > { %8062 = vmatmul.mubr.msk.bf16.gmra.mrb[116].mxu0 %vm13379_vm6, %v11656_v28  ;;  %vm13386_vm6 = vmmov %vm13384_vm5  ;;  %v3795_v56 = vsel %vm13389_vm13, %v3779_v33, %v3780_v46  ;;  %v11702_v48 = vpack.c.bf16 %v3712_v52, %v3713_v12  ;;  %v13398_v52 = vld [vmem:[#allocation74_spill] sm:$0xff] }
 0x524   : > { %8065 = vmatprep.mubr.msk.bf16.mxu0 %vm13381_vm1, %v11660_v27  ;;  %v3692_v61 = vsel %vm13386_vm6, %v3690_v53, %v13385_v62  ;;  %v3693_v35 = vsel %vm13388_vm7, %v13387_v25, %v3690_v53  ;;  %v11694_v27 = vmax.f32 %v3624_v7, 0.0  ;;  %vm13390_vm1 = vmmov %vm13389_vm13  ;;  %v11710_v7 = vpack.c.bf16 %v11420_v31, %v11418_v24 }
 0x525   : > { %v3796_v34 = vsel %vm13390_vm1, %v3778_v26, %v3779_v33  ;;  %v11700_v60 = vpack.c.bf16 %v3692_v61, %v3693_v35  ;;  %vm13391_vm5 = vmmov %vm13390_vm1  ;;  %v3672_v25 = vrot.slane %v11418_v24, 7  ;;  %v3673_v53 = vrot.slane %v11420_v31, 7  ;;  %v13393_v26 = vld [vmem:[#allocation60_spill] sm:$0xff]  ;;  %v13396_v35 = vld [vmem:[#allocation73_spill] sm:$0xff] }
 0x526   : > { %v3793_v62 = vsel %vm13391_vm5, %v3781_v1, %v3782_v20  ;;  %vm13392_vm6 = vmmov %vm13390_vm1  ;;  %vm13394_vm7 = vnez %v13393_v26  ;;  %v11717_v33 = vpack.c.bf16 %v3795_v56, %v3796_v34  ;;  %vm13397_vm1 = vnez %v13396_v35  ;;  %v13406_v35 = vld [vmem:[#allocation62_spill] sm:$0xff]  ;;  %v13466_v26 = vld [vmem:[#allocation41_spill] sm:$0xff] }
 0x527   : > { %v3794_v28 = vsel %vm13392_vm6, %v3780_v46, %v3781_v1  ;;  %6603 = vmatmul.mubr.msk.bf16.gmra.mrb[184].mxu1 %vm13394_vm7, %v11702_v48  ;;  %v3783_v46 = vrot.slane %v11684_v15, 1  ;;  %v3784_v1 = vrot.slane %v11694_v27, 1  ;;  %v3785_v31 = vrot.slane %v11628_v40, 1  ;;  %vm13403_vm12 = vmmov %vm13402_vm4 }
 0x528   : > { %4320 = vmatprep.mubr.bf16.mxu1 %v11710_v7  ;;  %v11720_v61 = vpack.c.bf16 %v3793_v62, %v3794_v28  ;;  %v3786_v24 = vrot.slane %v11636_v29, 1  ;;  %vm13399_vm13 = vnez %v13398_v52  ;;  %vm13400_vm5 = vcmp.lt.s32.totalorder %v13311_v8, 1 }
 0x529   : > { %v3710_v28 = vsel %vm13400_vm5, %v3672_v25, %v3673_v53  ;;  %vm13401_vm6 = vmmov %vm13400_vm5  ;;  %v3791_v56 = vsel %vm13402_vm4, %v3783_v46, %v3784_v1  ;;  %v3792_v34 = vsel %vm13403_vm12, %v3782_v20, %v3783_v46 }
 0x52a   : > { %13395 = vst [vmem:[#allocation52_spill] sm:$0xff] %v11720_v61  ;;  %v3711_v12 = vsel %vm13401_vm6, %v3671_v43, %v3672_v25  ;;  %v3674_v43 = vrot.slane %v11428_v23, 7  ;;  %v3675_v25 = vrot.slane %v11486_v19, 7  ;;  %v11755_v20 = vpack.c.bf16 %v3791_v56, %v3792_v34 }
 0x52b   : > { %8066 = vmatmul.mubr.msk.bf16.gmra.mrb[120].mxu0 %vm13397_vm1, %v11717_v33  ;;  %v11740_v62 = vpack.c.bf16 %v3710_v28, %v3711_v12  ;;  %vm13404_vm1 = vmmov %vm13402_vm4  ;;  %vm13407_vm4 = vnez %v13406_v35  ;;  %vm13414_vm6 = vcmp.lt.s32.totalorder %v13311_v8, 7  ;;  %v13415_v12 = vrot.slane %v11326_v58, 1  ;;  %v13420_v58 = vld [vmem:[#allocation77_spill] sm:$0xff]  ;;  %v13447_v8 = vld [vmem:[#allocation18_spill] sm:$0xff] }
 0x52c   : > { %8069 = vmatprep.mubr.msk.bf16.mxu0 %vm13399_vm13, %v11720_v61  ;;  %v3789_v29 = vsel %vm13404_vm1, %v3785_v31, %v3786_v24  ;;  %vm13405_vm3 = vmmov %vm13404_vm1  ;;  %v11748_v61 = vpack.c.bf16 %v11486_v19, %v11428_v23  ;;  %v13410_v23 = vld [vmem:[#allocation76_spill] sm:$0xff]  ;;  %v11781_v34 = vpack.c.bf16 %v11490_v32, %v11488_v3 }
 0x52d   : > { %v3790_v52 = vsel %vm13405_vm3, %v3784_v1, %v3785_v31  ;;  %v3787_v1 = vrot.slane %v11316_v42, 1  ;;  %v13408_v31 = vld [vmem:[#allocation75_spill] sm:$0xff]  ;;  %vm13411_vm12 = vnez %v13410_v23  ;;  %vm13412_vm1 = vmmov %vm13400_vm5  ;;  %v3677_v23 = vrot.slane %v11490_v32, 7 }
 0x52e   : > { %v11758_v46 = vpack.c.bf16 %v3789_v29, %v3790_v52  ;;  %vm13409_vm3 = vnez %v13408_v31  ;;  %v3708_v19 = vsel %vm13412_vm1, %v3674_v43, %v3675_v25  ;;  %vm13413_vm5 = vmmov %vm13412_vm1  ;;  %v3676_v29 = vrot.slane %v11488_v3, 7 }
 0x52f   : > { %6607 = vmatmul.mubr.msk.bf16.gmra.mrb[188].mxu1 %vm13407_vm4, %v11740_v62  ;;  %v3709_v28 = vsel %vm13413_vm5, %v3673_v53, %v3674_v43  ;;  %v3788_v52 = vsel %vm13414_vm6, %v3786_v24, %v3787_v1  ;;  %vm13416_vm13 = vmmov %vm13414_vm6  ;;  %v13417_v53 = vld [vmem:[#allocation63_spill] sm:$0xff] }
 0x530   : > { %4328 = vmatprep.mubr.bf16.mxu1 %v11748_v61  ;;  %v3819_v42 = vsel %vm13416_vm13, %v3787_v1, %v13415_v12  ;;  %v11777_v56 = vpack.c.bf16 %v3708_v19, %v3709_v28  ;;  %vm13418_vm1 = vnez %v13417_v53  ;;  %vm13421_vm13 = vnez %v13420_v58  ;;  %vm13422_vm6 = vmmov %vm13413_vm5  ;;  %v13424_v12 = vld [vmem:[#allocation64_spill] sm:$0xff]  ;;  %v8843_v58 = vld [vmem:[#allocation8 + $0x98] sm:$0xff]  }
 0x531   : > { %v11788_v24 = vpack.c.bf16 %v3819_v42, %v3788_v52  ;;  %v3706_v43 = vsel %vm13413_vm5, %v3676_v29, %v3677_v23  ;;  %v3707_v3 = vsel %vm13422_vm6, %v3675_v25, %v3676_v29  ;;  %v13423_v1 = vmov 0   ;;  %v8835_v42 = vld [vmem:[#allocation8 + $0x88] sm:$0xff]   ;;  %vm13426_vm6 = vmmov %vm13413_vm5 }
 0x532   : > { %v11799_v32 = vpack.c.bf16 %v3706_v43, %v3707_v3  ;;  %v11803_v19 = vpack.c.bf16 %v11555_v0, %v11498_v41  ;;  %v3678_v28 = vrot.slane %v11498_v41, 7  ;;  %v3679_v52 = vrot.slane %v11555_v0, 7  ;;  %v8838_v0 = vld [vmem:[#allocation8 + $0x90] sm:$0xff]  }
 0x533   : > { %8070 = vmatmul.mubr.msk.bf16.gmra.mrb[124].mxu0 %vm13409_vm3, %v11755_v20  ;;  %13419 = vst [vmem:[#allocation45_spill] sm:$0xff] %v11788_v24  ;;  %v11822_v43 = vpack.c.bf16 %v11559_v11, %v11557_v14  ;;  %v3680_v3 = vrot.slane %v11557_v14, 7 }
 0x534   : > { %8073 = vmatprep.mubr.msk.bf16.mxu0 %vm13411_vm12, %v11758_v46  ;;  %v3704_v25 = vsel %vm13413_vm5, %v3678_v28, %v3679_v52  ;;  %v3705_v41 = vsel %vm13426_vm6, %v3677_v23, %v3678_v28  ;;  %vm13429_vm6 = vmmov %vm13413_vm5  ;;  %v8852_v23 = vld [vmem:[#allocation8 + $0xa0] sm:$0xff]  }
 0x535   : > { %v11818_v29 = vpack.c.bf16 %v3704_v25, %v3705_v41  ;;  %v13430_v25 = vld [vmem:[#allocation48_spill] sm:$0xff] }
 0x537   : > { %6611 = vmatmul.mubr.msk.bf16.gmra.mrb[192].mxu1 %vm13418_vm1, %v11777_v56 }
 0x538   : > { %4336 = vmatprep.mubr.bf16.mxu1 %v11781_v34 }
 0x53b   : > { %8074 = vmatmul.mubr.msk.bf16.gmra.mrb[128].mxu0 %vm13421_vm13, %v11788_v24  ;;  %vm13425_vm13 = vnez %v13424_v12  ;;  %v13436_v24 = vld [vmem:[#allocation51_spill] sm:$0xff]  ;;  %v8863_v12 = vld [vmem:[#allocation8 + $0x238] sm:$0xff]  }
 0x53c   : > { %4738 = vmatprep.mubr.bf16.mxu0 %v13423_v1 }
 0x53f   : > { %6615 = vmatmul.mubr.msk.bf16.gmra.mrb[196].mxu1 %vm13425_vm13, %v11799_v32 }
 0x540   : > { %4344 = vmatprep.mubr.bf16.mxu1 %v11803_v19 }
 0x543   : > { %4739 = vmatmul.mubr.bf16.vlgmr.msra.gmra.mrb[132].mxu0 %v13423_v1 }
 0x544   : > { %8078 = vmatpush3.bf16.msra.mxu0 %v11624_v22  ;;  %4746 = vmatprep.mubr.bf16.mxu0 %v11338_v63  ;;  %v3681_v22 = vrot.slane %v11559_v11, 7  ;;  %v13427_v63 = vld [vmem:[#allocation27_spill] sm:$0xff]  ;;  %v3703_v11 = vsel %vm13429_vm6, %v3679_v52, %v3680_v3  ;;  %vm13432_vm6 = vmmov %vm13413_vm5 }
 0x545   : > { %8079 = vmatprep.subr.bf16.mxu0 %v8835_v42  ;;  %vm13428_vm12 = vnez %v13427_v63  ;;  %v8853_v52 = vld [vmem:[#allocation8 + $0xa8] sm:$0xff]   ;;  %vm13435_vm3 = vmmov %vm13432_vm6  ;;  %v13472_v63 = vld [vmem:[#allocation37_spill] sm:$0xff] }
 0x546   : > { %v3702_v14 = vsel %vm13413_vm5, %v3680_v3, %v3681_v22  ;;  %v3684_v3 = vrot.slane %v11620_v5, 7  ;;  %vm13438_vm0 = vmmov %vm13435_vm3 }
 0x547   : > { %6619 = vmatmul.mubr.msk.bf16.gmra.mrb[200].mxu1 %vm13428_vm12, %v11818_v29  ;;  %v11838_v28 = vpack.c.bf16 %v3702_v14, %v3703_v11  ;;  %v3685_v14 = vrot.slane %v11622_v50, 7  ;;  %v13433_v11 = vld [vmem:[#allocation28_spill] sm:$0xff] }
 0x548   : > { %8080 = vmatpush3.bf16.msra.mxu0 %v8835_v42  ;;  %4352 = vmatprep.mubr.bf16.mxu1 %v11822_v43  ;;  %v11842_v42 = vpack.c.bf16 %v11618_v45, %v11567_v6 }
 0x549   : > { %8081 = vmatprep.subr.bf16.mxu0 %v8838_v0 }
 0x54b   : > { %6711 = vmatmul.mubr.msk.bf16.gmra.mrb[136].mxu0 %vm13321_vm15, %v11358_v18  ;;  %v3683_v18 = vrot.slane %v11618_v45, 7  ;;  %vm13431_vm15 = vnez %v13430_v25  ;;  %v3701_v45 = vsel %vm13432_vm6, %v3681_v22, %v3682_v17  ;;  %v8855_v22 = vld [vmem:[#allocation8 + $0xb8] sm:$0xff]  }
 0x54c   : > { %4754 = vmatprep.mubr.bf16.mxu0 %v11374_v55  ;;  %8082 = vmatpush3.bf16.msra.mxu0 %v8838_v0  ;;  %v11862_v0 = vpack.c.bf16 %v11622_v50, %v11620_v5  ;;  %v3698_v5 = vsel %vm13432_vm6, %v3684_v3, %v3685_v14  ;;  %vm13437_vm6 = vnez %v13436_v24 }
 0x54d   : > { %8083 = vmatprep.subr.bf16.mxu0 %v8843_v58  ;;  %v3700_v6 = vsel %vm13413_vm5, %v3682_v17, %v3683_v18  ;;  %vm13434_vm5 = vnez %v13433_v11  ;;  %v3699_v50 = vsel %vm13435_vm3, %v3683_v18, %v3684_v3  ;;  %v3688_v3 = vrot.slane %v11694_v27, 7 }
 0x54e   : > { %v11858_v41 = vpack.c.bf16 %v3700_v6, %v3701_v45  ;;  %v11880_v17 = vpack.c.bf16 %v3698_v5, %v3699_v50  ;;  %v3686_v6 = vrot.slane %v11626_v21, 7  ;;  %v3687_v45 = vrot.slane %v11684_v15, 7 }
 0x54f   : > { %6623 = vmatmul.mubr.msk.bf16.gmra.mrb[204].mxu1 %vm13431_vm15, %v11838_v28 }
 0x550   : > { %8084 = vmatpush3.bf16.msra.mxu0 %v8843_v58  ;;  %4360 = vmatprep.mubr.bf16.mxu1 %v11842_v42  ;;  %v8854_v58 = vld [vmem:[#allocation8 + $0xb0] sm:$0xff]  }
 0x551   : > { %8085 = vmatprep.subr.bf16.mxu0 %v8852_v23 }
 0x553   : > { %6715 = vmatmul.mubr.msk.bf16.gmra.mrb[140].mxu0 %vm9686_vm9, %v11430_v4 }
 0x554   : > { %4762 = vmatprep.mubr.bf16.mxu0 %v11442_v44  ;;  %8086 = vmatpush3.bf16.msra.mxu0 %v8852_v23  ;;  %v11878_v23 = vld [vmem:[#allocation8 + $0x200] sm:$0xff]  }
 0x555   : > { %8087 = vmatprep.subr.bf16.mxu0 %v8853_v52 }
 0x557   : > { %6627 = vmatmul.mubr.msk.bf16.gmra.mrb[208].mxu1 %vm13434_vm5, %v11858_v41 }
 0x558   : > { %8088 = vmatpush3.bf16.msra.mxu0 %v8853_v52  ;;  %4368 = vmatprep.mubr.bf16.mxu1 %v11862_v0  ;;  %v11884_v52 = vpack.c.bf16 %v11684_v15, %v11626_v21  ;;  %v3696_v21 = vsel %vm13435_vm3, %v3686_v6, %v3687_v45  ;;  %v3697_v15 = vsel %vm13438_vm0, %v3685_v14, %v3686_v6  ;;  %v13441_v14 = vrot.slane %v11628_v40, 7  ;;  %vm13442_vm3 = vmmov %vm13438_vm0  ;;  %v13443_v6 = vld [vmem:[#allocation54_spill] sm:$0xff] }
 0x559   : > { %8089 = vmatprep.subr.bf16.mxu0 %v8854_v58  ;;  %v11901_v18 = vpack.c.bf16 %v3696_v21, %v3697_v15  ;;  %vm13444_vm8 = vnez %v13443_v6 }
 0x55a   : > { %v3694_v5 = vsel %vm13438_vm0, %v3688_v3, %v13441_v14 }
 0x55b   : > { %6719 = vmatmul.mubr.msk.bf16.gmra.mrb[144].mxu0 %vm9775_vm11, %v11500_v2 }
 0x55c   : > { %4770 = vmatprep.mubr.bf16.mxu0 %v11512_v38  ;;  %8090 = vmatpush3.bf16.msra.mxu0 %v8854_v58  ;;  %v11905_v58 = vpack.c.bf16 %v11628_v40, %v11694_v27  ;;  %v3695_v27 = vsel %vm13442_vm3, %v3687_v45, %v3688_v3  ;;  %v13445_v40 = vld [vmem:[#allocation30_spill] sm:$0xff]  ;;  %v13479_v45 = vld [vmem:[#allocation71_spill] sm:$0xff]  ;;  %vm13491_vm3 = vmmov 0  }
 0x55d   : > { %8091 = vmatprep.subr.bf16.mxu0 %v8855_v22  ;;  %v11922_v50 = vpack.c.bf16 %v3694_v5, %v3695_v27  ;;  %vm13446_vm0 = vnez %v13445_v40  ;;  %v13492_v40 = vld [vmem:[#allocation76_spill] sm:$0xff] }
 0x55f   : > { %6631 = vmatmul.mubr.msk.bf16.gmra.mrb[212].mxu1 %vm13437_vm6, %v11880_v17 }
 0x560   : > { %8092 = vmatpush3.bf16.msra.mxu0 %v8855_v22  ;;  %4376 = vmatprep.mubr.bf16.mxu1 %v11884_v52  ;;  %v13439_v22 = vld [vmem:[#allocation29_spill] sm:$0xff] }
 0x561   : > { %8125 = vmatprep.subr.bf16.mxu0 %v11878_v23  ;;  %vm13440_vm2 = vnez %v13439_v22  ;;  %v13484_v22 = vld [vmem:[#allocation73_spill] sm:$0xff] }
 0x563   : > { %6723 = vmatmul.mubr.msk.bf16.gmra.mrb[148].mxu0 %vm13239_vm10, %v11569_v9 }
 0x564   : > { %4778 = vmatprep.mubr.bf16.mxu0 %v11580_v30 }
 0x567   : > { %6635 = vmatmul.mubr.msk.bf16.gmra.mrb[216].mxu1 %vm13440_vm2, %v11901_v18 }
 0x568   : > { %4384 = vmatprep.mubr.bf16.mxu1 %v11905_v58 }
 0x56b   : > { %6727 = vmatmul.mubr.msk.bf16.gmra.mrb[152].mxu0 %vm13245_vm14, %v11638_v13 }
 0x56c   : > { %4786 = vmatprep.mubr.bf16.mxu0 %v11646_v47 }
 0x56f   : > { %6639 = vmatmul.mubr.msk.bf16.gmra.mrb[220].mxu1 %vm13444_vm8, %v11922_v50 }
 0x570   : > { %4392 = vmatprep.mubr.bf16.mxu1 %v11672_v16 }
 0x573   : > { %6731 = vmatmul.mubr.msk.bf16.gmra.mrb[156].mxu0 %vm13394_vm7, %v11702_v48 }
 0x574   : > { %4794 = vmatprep.mubr.bf16.mxu0 %v11710_v7 }
 0x577   : > { %6643 = vmatmul.mubr.msk.bf16.gmra.mrb[224].mxu1 %vm13446_vm0, %v11700_v60 }
 0x578   : > { %5301 = vmatprep.mubr.bf16.mxu1 %v11374_v55  ;;  %v13448_v55 = vld [vmem:[#allocation19_spill] sm:$0xff] }
 0x57b   : > { %6735 = vmatmul.mubr.msk.bf16.gmra.mrb[160].mxu0 %vm13407_vm4, %v11740_v62 }
 0x57c   : > { %4802 = vmatprep.mubr.bf16.mxu0 %v11748_v61 }
 0x57f   : > { %6831 = vmatmul.mubr.msk.bf16.vlgmr.msra.gmra.mrb[228].mxu1 %vm9686_vm9, %v11430_v4  ;;  %v13449_v4 = vld [vmem:[#allocation20_spill] sm:$0xff]  ;;  %vm13455_vm9 = vnez %v13322_v10  ;;  %v13458_v10 = vld [vmem:[#allocation53_spill] sm:$0xff] }
 0x580   : > { %5309 = vmatprep.mubr.bf16.mxu1 %v11442_v44  ;;  %8258 = vmatpush3.bf16.msra.mxu1 %v13447_v8  ;;  %v13450_v44 = vld [vmem:[#allocation21_spill] sm:$0xff] }
 0x581   : > { %8259 = vmatprep.subr.bf16.mxu1 %v13374_v54 }
 0x583   : > { %6739 = vmatmul.mubr.msk.bf16.gmra.mrb[164].mxu0 %vm13418_vm1, %v11777_v56 }
 0x584   : > { %4810 = vmatprep.mubr.bf16.mxu0 %v11781_v34  ;;  %8261 = vmatpush3.bf16.msra.mxu1 %v13448_v55 }
 0x585   : > { %8262 = vmatprep.subr.bf16.mxu1 %v13374_v54 }
 0x587   : > { %6835 = vmatmul.mubr.msk.bf16.gmra.mrb[232].mxu1 %vm9775_vm11, %v11500_v2  ;;  %v13452_v2 = vld [vmem:[#allocation23_spill] sm:$0xff]  ;;  %vm13456_vm11 = vnez %v13325_v51 }
 0x588   : > { %5317 = vmatprep.mubr.bf16.mxu1 %v11512_v38  ;;  %8264 = vmatpush3.bf16.msra.mxu1 %v13449_v4  ;;  %v13453_v38 = vld [vmem:[#allocation24_spill] sm:$0xff] }
 0x589   : > { %8265 = vmatprep.subr.bf16.mxu1 %v13374_v54 }
 0x58b   : > { %6743 = vmatmul.mubr.msk.bf16.gmra.mrb[168].mxu0 %vm13425_vm13, %v11799_v32 }
 0x58c   : > { %4818 = vmatprep.mubr.bf16.mxu0 %v11803_v19  ;;  %8267 = vmatpush3.bf16.msra.mxu1 %v13450_v44 }
 0x58d   : > { %8268 = vmatprep.subr.bf16.mxu1 %v13374_v54 }
 0x58f   : > { %6839 = vmatmul.mubr.msk.bf16.gmra.mrb[236].mxu1 %vm13239_vm10, %v11569_v9  ;;  %v8857_v9 = vld [vmem:[#allocation8 + $0x208] sm:$0xff]  }
 0x590   : > { %5325 = vmatprep.mubr.bf16.mxu1 %v11580_v30  ;;  %8270 = vmatpush3.bf16.msra.mxu1 %v13451_v49  ;;  %v8858_v30 = vld [vmem:[#allocation8 + $0x210] sm:$0xff]  }
 0x591   : > { %8271 = vmatprep.subr.bf16.mxu1 %v13374_v54 }
 0x593   : > { %6747 = vmatmul.mubr.msk.bf16.gmra.mrb[172].mxu0 %vm13428_vm12, %v11818_v29 }
 0x594   : > { %4826 = vmatprep.mubr.bf16.mxu0 %v11822_v43  ;;  %8273 = vmatpush3.bf16.msra.mxu1 %v13452_v2 }
 0x595   : > { %8274 = vmatprep.subr.bf16.mxu1 %v13374_v54 }
 0x597   : > { %6843 = vmatmul.mubr.msk.bf16.gmra.mrb[240].mxu1 %vm13245_vm14, %v11638_v13  ;;  %v13457_v13 = vld [vmem:[#allocation49_spill] sm:$0xff]  ;;  %vm13459_vm14 = vnez %v13458_v10 }
 0x598   : > { %5333 = vmatprep.mubr.bf16.mxu1 %v11646_v47  ;;  %8276 = vmatpush3.bf16.msra.mxu1 %v13453_v38  ;;  %v13461_v47 = vld [vmem:[#allocation65_spill] sm:$0xff] }
 0x599   : > { %8277 = vmatprep.subr.bf16.mxu1 %v13374_v54  ;;  %vm13462_vm10 = vnez %v13461_v47  ;;  %v8860_v54 = vld [vmem:[#allocation8 + $0x220] sm:$0xff]  }
 0x59b   : > { %6751 = vmatmul.mubr.msk.bf16.gmra.mrb[176].mxu0 %vm13431_vm15, %v11838_v28 }
 0x59c   : > { %4834 = vmatprep.mubr.bf16.mxu0 %v11842_v42  ;;  %8279 = vmatpush3.bf16.msra.mxu1 %v13454_v36 }
 0x59f   : > { %6847 = vmatmul.mubr.msk.bf16.gmra.mrb[244].mxu1 %vm13394_vm7, %v11702_v48  ;;  %v13463_v48 = vld [vmem:[#allocation40_spill] sm:$0xff] }
 0x5a0   : > { %5341 = vmatprep.mubr.bf16.mxu1 %v11710_v7  ;;  %v13464_v7 = vld [vmem:[#allocation66_spill] sm:$0xff] }
 0x5a1   : > { %vm13465_vm7 = vnez %v13464_v7 }
 0x5a3   : > { %6755 = vmatmul.mubr.msk.bf16.gmra.mrb[180].mxu0 %vm13434_vm5, %v11858_v41 }
 0x5a4   : > { %4842 = vmatprep.mubr.bf16.mxu0 %v11862_v0 }
 0x5a7   : > { %6851 = vmatmul.mubr.msk.bf16.gmra.mrb[248].mxu1 %vm13407_vm4, %v11740_v62 }
 0x5a8   : > { %5349 = vmatprep.mubr.bf16.mxu1 %v11748_v61  ;;  %v13467_v61 = vld [vmem:[#allocation67_spill] sm:$0xff] }
 0x5a9   : > { %vm13468_vm4 = vnez %v13467_v61 }
 0x5ab   : > { %6759 = vmatmul.mubr.msk.bf16.gmra.mrb[184].mxu0 %vm13437_vm6, %v11880_v17 }
 0x5ac   : > { %4850 = vmatprep.mubr.bf16.mxu0 %v11884_v52 }
 0x5af   : > { %6855 = vmatmul.mubr.msk.bf16.gmra.mrb[252].mxu1 %vm13418_vm1, %v11777_v56  ;;  %v8862_v56 = vld [vmem:[#allocation8 + $0x230] sm:$0xff]  }
 0x5b0   : > { %5357 = vmatprep.mubr.bf16.mxu1 %v11781_v34 }
 0x5b3   : > { %6763 = vmatmul.mubr.msk.bf16.gmra.mrb[188].mxu0 %vm13440_vm2, %v11901_v18 }
 0x5b4   : > { %4858 = vmatprep.mubr.bf16.mxu0 %v11905_v58 }
 0x5b7   : > { %6859 = vmatmul.mubr.msk.bf16.gmra.mrb[0].mxu1 %vm13425_vm13, %v11799_v32 }
 0x5b8   : > { %5365 = vmatprep.mubr.bf16.mxu1 %v11803_v19 }
 0x5bb   : > { %6767 = vmatmul.mubr.msk.bf16.gmra.mrb[192].mxu0 %vm13444_vm8, %v11922_v50 }
 0x5bc   : > { %8093 = vmatprep.mubr.bf16.mxu0 %v13423_v1 }
 0x5bf   : > { %6863 = vmatmul.mubr.msk.bf16.gmra.mrb[4].mxu1 %vm13428_vm12, %v11818_v29  ;;  %v13469_v29 = vld [vmem:[#allocation59_spill] sm:$0xff] }
 0x5c0   : > { %5373 = vmatprep.mubr.bf16.mxu1 %v11822_v43  ;;  %v13470_v43 = vld [vmem:[#allocation68_spill] sm:$0xff] }
 0x5c1   : > { %vm13471_vm12 = vnez %v13470_v43 }
 0x5c3   : > { %8094 = vmatmul.mubr.msk.bf16.vlgmr.msra.gmra.mrb[100].mxu0 %vm13455_vm9, %v11368_v59  ;;  %v13460_v59 = vld [vmem:[#allocation44_spill] sm:$0xff] }
 0x5c4   : > { %8126 = vmatpush3.bf16.msra.mxu0 %v11878_v23  ;;  %8097 = vmatprep.mubr.msk.bf16.mxu0 %vm13456_vm11, %v11384_v57  ;;  %v13475_v23 = vld [vmem:[#allocation42_spill] sm:$0xff] }
 0x5c5   : > { %8127 = vmatprep.subr.bf16.mxu0 %v8857_v9 }
 0x5c7   : > { %6867 = vmatmul.mubr.msk.bf16.gmra.mrb[8].mxu1 %vm13431_vm15, %v11838_v28  ;;  %v13473_v28 = vld [vmem:[#allocation69_spill] sm:$0xff]  ;;  %vm13480_vm15 = vnez %v13479_v45 }
 0x5c8   : > { %8128 = vmatpush3.bf16.msra.mxu0 %v8857_v9  ;;  %5381 = vmatprep.mubr.bf16.mxu1 %v11842_v42  ;;  %vm13474_vm1 = vnez %v13473_v28 }
 0x5c9   : > { %8129 = vmatprep.subr.bf16.mxu0 %v8858_v30 }
 0x5cb   : > { %8098 = vmatmul.mubr.msk.bf16.gmra.mrb[104].mxu0 %vm13459_vm14, %v13457_v13 }
 0x5cc   : > { %8101 = vmatprep.mubr.msk.bf16.mxu0 %vm13462_vm10, %v13460_v59  ;;  %8130 = vmatpush3.bf16.msra.mxu0 %v8858_v30 }
 0x5cd   : > { %8131 = vmatprep.subr.bf16.mxu0 %v8859_v37 }
 0x5cf   : > { %6871 = vmatmul.mubr.msk.bf16.gmra.mrb[12].mxu1 %vm13434_vm5, %v11858_v41  ;;  %vm13485_vm5 = vnez %v13484_v22 }
 0x5d0   : > { %8132 = vmatpush3.bf16.msra.mxu0 %v8859_v37  ;;  %5389 = vmatprep.mubr.bf16.mxu1 %v11862_v0  ;;  %v7406_v35 = vpop.f32.mrb[164].mxu1 }
 0x5d1   : > { %8133 = vmatprep.subr.bf16.mxu0 %v8860_v54  ;;  %v7407_v62 = vpop.f32.mrb[165].mxu1 }
 0x5d2   : > { %v12050_v34 = vadd.f32 %v7407_v62, %v7406_v35  ;;  %v7409_v53 = vpop.f32.mrb[166].mxu1 }
 0x5d3   : > { %8102 = vmatmul.mubr.msk.bf16.gmra.mrb[108].mxu0 %vm13465_vm7, %v13463_v48  ;;  %v7410_v32 = vpop.f32.mrb[167].mxu1 }
 0x5d4   : > { %8105 = vmatprep.mubr.msk.bf16.mxu0 %vm13468_vm4, %v13466_v26  ;;  %8134 = vmatpush3.bf16.msra.mxu0 %v8860_v54  ;;  %v12052_v19 = vadd.f32 %v7410_v32, %v7409_v53 }
 0x5d5   : > { %8135 = vmatprep.subr.bf16.mxu0 %v8861_v39 }
 0x5d7   : > { %6875 = vmatmul.mubr.msk.bf16.gmra.mrb[16].mxu1 %vm13437_vm6, %v11880_v17  ;;  %v13476_v17 = vld [vmem:[#allocation70_spill] sm:$0xff]  ;;  %vm13489_vm6 = vnez %v13408_v31  ;;  %v13494_v31 = vld [vmem:[#allocation45_spill] sm:$0xff] }
 0x5d8   : > { %8136 = vmatpush3.bf16.msra.mxu0 %v8861_v39  ;;  %5397 = vmatprep.mubr.bf16.mxu1 %v11884_v52  ;;  %vm13477_vm13 = vnez %v13476_v17  ;;  %v13478_v52 = vld [vmem:[#allocation43_spill] sm:$0xff] }
 0x5d9   : > { %8137 = vmatprep.subr.bf16.mxu0 %v8862_v56  ;;  %v7412_v42 = vpop.f32.mrb[168].mxu1 }
 0x5da   : > { %v7413_v25 = vpop.f32.mrb[169].mxu1 }
 0x5db   : > { %8106 = vmatmul.mubr.msk.bf16.gmra.mrb[112].mxu0 %vm13471_vm12, %v13469_v29  ;;  %v12064_v41 = vadd.f32 %v7413_v25, %v7412_v42  ;;  %v7415_v24 = vpop.f32.mrb[170].mxu1 }
 0x5dc   : > { %8109 = vmatprep.mubr.msk.bf16.mxu0 %vm13474_vm1, %v13472_v63  ;;  %8138 = vmatpush3.bf16.msra.mxu0 %v8862_v56  ;;  %v7416_v0 = vpop.f32.mrb[171].mxu1 }
 0x5dd   : > { %8139 = vmatprep.subr.bf16.mxu0 %v8863_v12  ;;  %v12066_v11 = vadd.f32 %v7416_v0, %v7415_v24 }
 0x5df   : > { %6879 = vmatmul.mubr.msk.bf16.gmra.mrb[20].mxu1 %vm13440_vm2, %v11901_v18  ;;  %v13481_v18 = vld [vmem:[#allocation39_spill] sm:$0xff] }
 0x5e0   : > { %8140 = vmatpush3.bf16.msra.mxu0 %v8863_v12  ;;  %5405 = vmatprep.mubr.bf16.mxu1 %v11905_v58  ;;  %v13482_v58 = vld [vmem:[#allocation72_spill] sm:$0xff] }
 0x5e1   : > { %v7418_v21 = vpop.f32.mrb[172].mxu1  ;;  %vm13483_vm2 = vnez %v13482_v58 }
 0x5e2   : > { %v7419_v15 = vpop.f32.mrb[173].mxu1 }
 0x5e3   : > { %8110 = vmatmul.mubr.msk.bf16.gmra.mrb[116].mxu0 %vm13477_vm13, %v13475_v23  ;;  %v12078_v3 = vadd.f32 %v7419_v15, %v7418_v21  ;;  %v7421_v14 = vpop.f32.mrb[174].mxu1 }
 0x5e4   : > { %8113 = vmatprep.mubr.msk.bf16.mxu0 %vm13480_vm15, %v13478_v52  ;;  %v7422_v5 = vpop.f32.mrb[175].mxu1 }
 0x5e5   : > { %v12080_v27 = vadd.f32 %v7422_v5, %v7421_v14 }
 0x5e7   : > { %6883 = vmatmul.mubr.msk.bf16.gmra.mrb[24].mxu1 %vm13444_vm8, %v11922_v50  ;;  %v13487_v50 = vld [vmem:[#allocation74_spill] sm:$0xff] }
 0x5e8   : > { %5413 = vmatprep.mubr.bf16.mxu1 %v11672_v16  ;;  %v13486_v16 = vld [vmem:[#allocation52_spill] sm:$0xff]  ;;  %vm13488_vm8 = vnez %v13487_v50 }
 0x5e9   : > { %v7424_v8 = vpop.f32.mrb[176].mxu1 }
 0x5ea   : > { %v7425_v55 = vpop.f32.mrb[177].mxu1 }
 0x5eb   : > { %8114 = vmatmul.mubr.msk.bf16.gmra.mrb[120].mxu0 %vm13483_vm2, %v13481_v18  ;;  %v12092_v4 = vadd.f32 %v7425_v55, %v7424_v8  ;;  %v7427_v44 = vpop.f32.mrb[178].mxu1 }
 0x5ec   : > { %8117 = vmatprep.mubr.msk.bf16.mxu0 %vm13485_vm5, %v11717_v33  ;;  %v7428_v49 = vpop.f32.mrb[179].mxu1 }
 0x5ed   : > { %v12094_v2 = vadd.f32 %v7428_v49, %v7427_v44 }
 0x5ef   : > { %6887 = vmatmul.mubr.msk.bf16.gmra.mrb[28].mxu1 %vm13446_vm0, %v11700_v60  ;;  %v13490_v60 = vmov 0.0   ;;  %vm13493_vm0 = vnez %v13492_v40 }
 0x5f0   : > { %5421 = vmatprep.mubr.bf16.mxu1 %v13423_v1 }
 0x5f1   : > { %v7430_v6 = vpop.f32.mrb[180].mxu1 }
 0x5f2   : > { %v7431_v38 = vpop.f32.mrb[181].mxu1 }
 0x5f3   : > { %8118 = vmatmul.mubr.msk.bf16.gmra.mrb[124].mxu0 %vm13488_vm8, %v13486_v16  ;;  %v12106_v36 = vadd.f32 %v7431_v38, %v7430_v6  ;;  %v7433_v9 = vpop.f32.mrb[182].mxu1 }
 0x5f4   : > { %8121 = vmatprep.mubr.msk.bf16.mxu0 %vm13489_vm6, %v11755_v20  ;;  %v7434_v30 = vpop.f32.mrb[183].mxu1 }
 0x5f5   : > { %v12108_v37 = vadd.f32 %v7434_v30, %v7433_v9 }
 0x5f7   : > { %5422 = vmatmul.mubr.bf16.gmra.mrb[32].mxu1 %v13423_v1 }
 0x5f8   : > { %8205 = vmatprep.mubr.msk.f32.mxu1 %vm13491_vm3, %v13490_v60 }
 0x5fa   : > { %v7436_v54 = vpop.f32.mrb[184].mxu1 }
 0x5fb   : > { %8122 = vmatmul.mubr.msk.bf16.gmra.mrb[128].mxu0 %vm13493_vm0, %v11758_v46  ;;  %v7437_v39 = vpop.f32.mrb[185].mxu1 }
 0x5fc   : > { %8141 = vmatprep.mubr.msk.bf16.mxu0 %vm13456_vm11, %v11384_v57  ;;  %v12119_v35 = vadd.f32 %v7437_v39, %v7436_v54  ;;  %v7439_v62 = vpop.f32.mrb[186].mxu1  ;;  %vm13497_vm11 = vcmask 1040384  }
 0x5fd   : > { %v7440_v56 = vpop.f32.mrb[187].mxu1 }
 0x5fe   : > { %v12121_v53 = vadd.f32 %v7440_v56, %v7439_v62 }
 0x602   : > { %v7442_v32 = vpop.f32.mrb[188].mxu1 }
 0x603   : > { %8142 = vmatmul.mubr.msk.bf16.vlgmr.msra.gmra.mrb[100].mxu0 %vm13459_vm14, %v13457_v13  ;;  %v7443_v12 = vpop.f32.mrb[189].mxu1 }
 0x604   : > { %8145 = vmatprep.mubr.msk.bf16.mxu0 %vm13462_vm10, %v13460_v59  ;;  %v12129_v51 = vadd.f32 %v7443_v12, %v7442_v32  ;;  %v7445_v57 = vpop.f32.mrb[190].mxu1 }
 0x605   : > { %v7446_v42 = vpop.f32.mrb[191].mxu1 }
 0x606   : > { %v12131_v25 = vadd.f32 %v7446_v42, %v7445_v57 }
 0x60a   : > { %v7448_v13 = vpop.f32.mrb[192].mxu1 }
 0x60b   : > { %8146 = vmatmul.mubr.msk.bf16.gmra.mrb[104].mxu0 %vm13465_vm7, %v13463_v48  ;;  %v7449_v10 = vpop.f32.mrb[193].mxu1 }
 0x60c   : > { %8149 = vmatprep.mubr.msk.bf16.mxu0 %vm13468_vm4, %v13466_v26  ;;  %v12139_v47 = vadd.f32 %v7449_v10, %v7448_v13  ;;  %v7451_v59 = vpop.f32.mrb[194].mxu1 }
 0x60d   : > { %v7452_v24 = vpop.f32.mrb[195].mxu1 }
 0x60e   : > { %v12141_v0 = vadd.f32 %v7452_v24, %v7451_v59 }
 0x612   : > { %v7454_v48 = vpop.f32.mrb[196].mxu1 }
 0x613   : > { %8150 = vmatmul.mubr.msk.bf16.gmra.mrb[108].mxu0 %vm13471_vm12, %v13469_v29  ;;  %v7455_v7 = vpop.f32.mrb[197].mxu1 }
 0x614   : > { %8153 = vmatprep.mubr.msk.bf16.mxu0 %vm13474_vm1, %v13472_v63  ;;  %v12149_v61 = vadd.f32 %v7455_v7, %v7454_v48  ;;  %v7457_v21 = vpop.f32.mrb[198].mxu1 }
 0x615   : > { %v7458_v14 = vpop.f32.mrb[199].mxu1 }
 0x616   : > { %v7542_v26 = vpop.f32.mrb[132].mxu0  ;;  %v12151_v8 = vadd.f32 %v7458_v14, %v7457_v21 }
 0x617   : > { %v7543_v15 = vpop.f32.mrb[133].mxu0 }
 0x618   : > { %v7544_v5 = vadd.f32 %v7543_v15, %v7542_v26  ;;  %v7545_v55 = vpop.f32.mrb[134].mxu0 }
 0x619   : > { %v7546_v44 = vpop.f32.mrb[135].mxu0 }
 0x61a   : > { %v12154_v43 = vadd.f32 %v7544_v5, %v12050_v34  ;;  %v7547_v29 = vadd.f32 %v7546_v44, %v7545_v55  ;;  %v7460_v28 = vpop.f32.mrb[200].mxu1  ;;  %v13495_v5 = vld [vmem:[#allocation77_spill] sm:$0xff] }
 0x61b   : > { %8154 = vmatmul.mubr.msk.bf16.gmra.mrb[112].mxu0 %vm13477_vm13, %v13475_v23  ;;  %v7461_v49 = vpop.f32.mrb[201].mxu1  ;;  %vm13496_vm9 = vnez %v13495_v5 }
 0x61c   : > { %v12160_v63 = vadd.f32 %v7547_v29, %v12052_v19  ;;  %8157 = vmatprep.mubr.msk.bf16.mxu0 %vm13480_vm15, %v13478_v52  ;;  %v12165_v6 = vadd.f32 %v7461_v49, %v7460_v28  ;;  %v7463_v9 = vpop.f32.mrb[202].mxu1 }
 0x61d   : > { %v7464_v30 = vpop.f32.mrb[203].mxu1 }
 0x61e   : > { %v7548_v38 = vpop.f32.mrb[136].mxu0  ;;  %v12167_v54 = vadd.f32 %v7464_v30, %v7463_v9 }
 0x61f   : > { %v7549_v34 = vpop.f32.mrb[137].mxu0 }
 0x620   : > { %v7550_v60 = vadd.f32 %v7549_v34, %v7548_v38  ;;  %v7551_v17 = vpop.f32.mrb[138].mxu0 }
 0x621   : > { %v7552_v23 = vpop.f32.mrb[139].mxu0 }
 0x622   : > { %v12170_v19 = vadd.f32 %v7550_v60, %v12064_v41  ;;  %v7553_v39 = vadd.f32 %v7552_v23, %v7551_v17  ;;  %v7466_v45 = vpop.f32.mrb[204].mxu1 }
 0x623   : > { %8158 = vmatmul.mubr.msk.bf16.gmra.mrb[116].mxu0 %vm13483_vm2, %v13481_v18  ;;  %v7467_v62 = vpop.f32.mrb[205].mxu1 }
 0x624   : > { %v12176_v52 = vadd.f32 %v7553_v39, %v12066_v11  ;;  %8161 = vmatprep.mubr.msk.bf16.mxu0 %vm13485_vm5, %v11717_v33  ;;  %v12181_v56 = vadd.f32 %v7467_v62, %v7466_v45  ;;  %v7469_v12 = vpop.f32.mrb[206].mxu1 }
 0x625   : > { %v7470_v57 = vpop.f32.mrb[207].mxu1 }
 0x626   : > { %v7554_v32 = vpop.f32.mrb[140].mxu0  ;;  %v12183_v13 = vadd.f32 %v7470_v57, %v7469_v12 }
 0x627   : > { %v7555_v41 = vpop.f32.mrb[141].mxu0 }
 0x628   : > { %v7556_v42 = vadd.f32 %v7555_v41, %v7554_v32  ;;  %v7557_v58 = vpop.f32.mrb[142].mxu0 }
 0x629   : > { %v7558_v18 = vpop.f32.mrb[143].mxu0 }
 0x62a   : > { %v12186_v11 = vadd.f32 %v7556_v42, %v12078_v3  ;;  %v7559_v10 = vadd.f32 %v7558_v18, %v7557_v58  ;;  %v7472_v22 = vpop.f32.mrb[208].mxu1 }
 0x62b   : > { %8162 = vmatmul.mubr.msk.bf16.gmra.mrb[120].mxu0 %vm13488_vm8, %v13486_v16  ;;  %v7473_v59 = vpop.f32.mrb[209].mxu1 }
 0x62c   : > { %v12192_v33 = vadd.f32 %v7559_v10, %v12080_v27  ;;  %8165 = vmatprep.mubr.msk.bf16.mxu0 %vm13489_vm6, %v11755_v20  ;;  %v12197_v24 = vadd.f32 %v7473_v59, %v7472_v22  ;;  %v7475_v7 = vpop.f32.mrb[210].mxu1 }
 0x62d   : > { %v7476_v26 = vpop.f32.mrb[211].mxu1 }
 0x62e   : > { %v7560_v48 = vpop.f32.mrb[144].mxu0  ;;  %v12199_v15 = vadd.f32 %v7476_v26, %v7475_v7 }
 0x62f   : > { %v7561_v3 = vpop.f32.mrb[145].mxu0 }
 0x630   : > { %v7562_v21 = vadd.f32 %v7561_v3, %v7560_v48  ;;  %v7563_v50 = vpop.f32.mrb[146].mxu0 }
 0x631   : > { %v7564_v16 = vpop.f32.mrb[147].mxu0 }
 0x632   : > { %v12202_v27 = vadd.f32 %v7562_v21, %v12092_v4  ;;  %v7565_v14 = vadd.f32 %v7564_v16, %v7563_v50  ;;  %v7478_v55 = vpop.f32.mrb[212].mxu1 }
 0x633   : > { %8166 = vmatmul.mubr.msk.bf16.gmra.mrb[124].mxu0 %vm13493_vm0, %v11758_v46  ;;  %v7479_v44 = vpop.f32.mrb[213].mxu1 }
 0x634   : > { %v12208_v20 = vadd.f32 %v7565_v14, %v12094_v2  ;;  %8169 = vmatprep.mubr.msk.bf16.mxu0 %vm13496_vm9, %v13494_v31  ;;  %v12213_v29 = vadd.f32 %v7479_v44, %v7478_v55  ;;  %v7481_v49 = vpop.f32.mrb[214].mxu1 }
 0x635   : > { %v7482_v38 = vpop.f32.mrb[215].mxu1 }
 0x636   : > { %v7566_v28 = vpop.f32.mrb[148].mxu0  ;;  %v12215_v34 = vadd.f32 %v7482_v38, %v7481_v49 }
 0x637   : > { %v7567_v4 = vpop.f32.mrb[149].mxu0 }
 0x638   : > { %v7568_v9 = vadd.f32 %v7567_v4, %v7566_v28  ;;  %v7569_v40 = vpop.f32.mrb[150].mxu0 }
 0x639   : > { %v7570_v46 = vpop.f32.mrb[151].mxu0 }
 0x63a   : > { %v12218_v2 = vadd.f32 %v7568_v9, %v12106_v36  ;;  %v7571_v30 = vadd.f32 %v7570_v46, %v7569_v40  ;;  %v7484_v17 = vpop.f32.mrb[216].mxu1 }
 0x63b   : > { %8170 = vmatmul.mubr.bf16.gmra.mrb[128].mxu0 %v13423_v1  ;;  %v7485_v23 = vpop.f32.mrb[217].mxu1 }
 0x63c   : > { %v12222_v60 = vadd.f32 %v7571_v30, %v12108_v37  ;;  %v12224_v39 = vadd.f32 %v7485_v23, %v7484_v17  ;;  %v7487_v62 = vpop.f32.mrb[218].mxu1 }
 0x63d   : > { %v7488_v12 = vpop.f32.mrb[219].mxu1 }
 0x63e   : > { %v7572_v45 = vpop.f32.mrb[152].mxu0  ;;  %v12226_v57 = vadd.f32 %v7488_v12, %v7487_v62 }
 0x63f   : > { %v7573_v32 = vpop.f32.mrb[153].mxu0 }
 0x640   : > { %v7574_v41 = vadd.f32 %v7573_v32, %v7572_v45  ;;  %v7575_v42 = vpop.f32.mrb[154].mxu0 }
 0x641   : > { %v7576_v36 = vpop.f32.mrb[155].mxu0 }
 0x642   : > { %v12229_v58 = vadd.f32 %v7574_v41, %v12119_v35  ;;  %v7577_v1 = vadd.f32 %v7576_v36, %v7575_v42  ;;  %v7490_v18 = vpop.f32.mrb[220].mxu1 }
 0x643   : > { %v7491_v10 = vpop.f32.mrb[221].mxu1 }
 0x644   : > { %v12232_v37 = vadd.f32 %v7577_v1, %v12121_v53  ;;  %v12234_v22 = vadd.f32 %v7491_v10, %v7490_v18  ;;  %v7493_v48 = vpop.f32.mrb[222].mxu1 }
 0x645   : > { %v7494_v3 = vpop.f32.mrb[223].mxu1 }
 0x646   : > { %v7578_v59 = vpop.f32.mrb[156].mxu0  ;;  %v12236_v21 = vadd.f32 %v7494_v3, %v7493_v48 }
 0x647   : > { %v7579_v7 = vpop.f32.mrb[157].mxu0 }
 0x648   : > { %v7580_v26 = vadd.f32 %v7579_v7, %v7578_v59  ;;  %v7581_v50 = vpop.f32.mrb[158].mxu0 }
 0x649   : > { %v7582_v16 = vpop.f32.mrb[159].mxu0 }
 0x64a   : > { %v12239_v35 = vadd.f32 %v7580_v26, %v12129_v51  ;;  %v7583_v14 = vadd.f32 %v7582_v16, %v7581_v50  ;;  %v7496_v31 = vpop.f32.mrb[224].mxu1 }
 0x64b   : > { %v7497_v5 = vpop.f32.mrb[225].mxu1 }
 0x64c   : > { %v12242_v53 = vadd.f32 %v7583_v14, %v12131_v25  ;;  %v12244_v55 = vadd.f32 %v7497_v5, %v7496_v31  ;;  %v7499_v28 = vpop.f32.mrb[226].mxu1 }
 0x64d   : > { %v7500_v4 = vpop.f32.mrb[227].mxu1 }
 0x64e   : > { %v7584_v44 = vpop.f32.mrb[160].mxu0  ;;  %v12246_v9 = vadd.f32 %v7500_v4, %v7499_v28 }
 0x64f   : > { %v7585_v49 = vpop.f32.mrb[161].mxu0 }
 0x650   : > { %v7586_v38 = vadd.f32 %v7585_v49, %v7584_v44  ;;  %v7587_v40 = vpop.f32.mrb[162].mxu0 }
 0x651   : > { %v7588_v46 = vpop.f32.mrb[163].mxu0 }
 0x652   : > { %v12249_v51 = vadd.f32 %v7586_v38, %v12139_v47  ;;  %v7589_v30 = vadd.f32 %v7588_v46, %v7587_v40  ;;  %v7678_v17 = vpop.f32.mrb[228].mxu1 }
 0x653   : > { %v7679_v23 = vpop.f32.mrb[229].mxu1 }
 0x654   : > { %v12252_v25 = vadd.f32 %v7589_v30, %v12141_v0  ;;  %v7680_v62 = vadd.f32 %v7679_v23, %v7678_v17  ;;  %v7681_v32 = vpop.f32.mrb[230].mxu1 }
 0x655   : > { %v7682_v41 = vpop.f32.mrb[231].mxu1 }
 0x656   : > { %v7590_v45 = vpop.f32.mrb[164].mxu0  ;;  %v7683_v1 = vadd.f32 %v7682_v41, %v7681_v32  ;;  %v12255_v18 = vadd.f32 %v12154_v43, %v7680_v62 }
 0x657   : > { %v7591_v12 = vpop.f32.mrb[165].mxu0 }
 0x658   : > { %v7592_v42 = vadd.f32 %v7591_v12, %v7590_v45  ;;  %v7593_v36 = vpop.f32.mrb[166].mxu0  ;;  %v12261_v0 = vadd.f32 %v12160_v63, %v7683_v1 }
 0x659   : > { %v7594_v10 = vpop.f32.mrb[167].mxu0 }
 0x65a   : > { %v12258_v47 = vadd.f32 %v7592_v42, %v12149_v61  ;;  %v7595_v59 = vadd.f32 %v7594_v10, %v7593_v36  ;;  %v7684_v7 = vpop.f32.mrb[232].mxu1 }
 0x65b   : > { %v7685_v3 = vpop.f32.mrb[233].mxu1 }
 0x65c   : > { %v12264_v48 = vadd.f32 %v7595_v59, %v12151_v8  ;;  %v7686_v50 = vadd.f32 %v7685_v3, %v7684_v7  ;;  %v7687_v16 = vpop.f32.mrb[234].mxu1 }
 0x65d   : > { %v7688_v31 = vpop.f32.mrb[235].mxu1 }
 0x65e   : > { %v7596_v26 = vpop.f32.mrb[168].mxu0  ;;  %v7689_v44 = vadd.f32 %v7688_v31, %v7687_v16  ;;  %v12267_v61 = vadd.f32 %v12170_v19, %v7686_v50 }
 0x65f   : > { %v7597_v14 = vpop.f32.mrb[169].mxu0 }
 0x660   : > { %v7598_v43 = vadd.f32 %v7597_v14, %v7596_v26  ;;  %v7599_v5 = vpop.f32.mrb[170].mxu0  ;;  %v12273_v8 = vadd.f32 %v12176_v52, %v7689_v44 }
 0x661   : > { %v7600_v28 = vpop.f32.mrb[171].mxu0 }
 0x662   : > { %v12270_v63 = vadd.f32 %v7598_v43, %v12165_v6  ;;  %v7601_v49 = vadd.f32 %v7600_v28, %v7599_v5  ;;  %v7690_v38 = vpop.f32.mrb[236].mxu1 }
 0x663   : > { %v7691_v40 = vpop.f32.mrb[237].mxu1 }
 0x664   : > { %v12276_v4 = vadd.f32 %v7601_v49, %v12167_v54  ;;  %v7692_v30 = vadd.f32 %v7691_v40, %v7690_v38  ;;  %v7693_v17 = vpop.f32.mrb[238].mxu1 }
 0x665   : > { %v7694_v45 = vpop.f32.mrb[239].mxu1 }
 0x666   : > { %v7602_v46 = vpop.f32.mrb[172].mxu0  ;;  %v7695_v32 = vadd.f32 %v7694_v45, %v7693_v17  ;;  %v12279_v6 = vadd.f32 %v12186_v11, %v7692_v30 }
 0x667   : > { %v7603_v23 = vpop.f32.mrb[173].mxu0 }
 0x668   : > { %v7604_v19 = vadd.f32 %v7603_v23, %v7602_v46  ;;  %v7605_v62 = vpop.f32.mrb[174].mxu0  ;;  %v12285_v54 = vadd.f32 %v12192_v33, %v7695_v32 }
 0x669   : > { %v7606_v12 = vpop.f32.mrb[175].mxu0 }
 0x66a   : > { %v12282_v52 = vadd.f32 %v7604_v19, %v12181_v56  ;;  %v7607_v41 = vadd.f32 %v7606_v12, %v7605_v62  ;;  %v7696_v36 = vpop.f32.mrb[240].mxu1 }
 0x66b   : > { %v7697_v1 = vpop.f32.mrb[241].mxu1 }
 0x66c   : > { %v12288_v42 = vadd.f32 %v7607_v41, %v12183_v13  ;;  %v7698_v59 = vadd.f32 %v7697_v1, %v7696_v36  ;;  %v7699_v7 = vpop.f32.mrb[242].mxu1 }
 0x66d   : > { %v7700_v26 = vpop.f32.mrb[243].mxu1 }
 0x66e   : > { %v7608_v10 = vpop.f32.mrb[176].mxu0  ;;  %v7701_v16 = vadd.f32 %v7700_v26, %v7699_v7  ;;  %v12291_v56 = vadd.f32 %v12202_v27, %v7698_v59 }
 0x66f   : > { %v7609_v3 = vpop.f32.mrb[177].mxu0 }
 0x670   : > { %v7610_v11 = vadd.f32 %v7609_v3, %v7608_v10  ;;  %v7611_v50 = vpop.f32.mrb[178].mxu0  ;;  %v12297_v13 = vadd.f32 %v12208_v20, %v7701_v16 }
 0x671   : > { %v7612_v14 = vpop.f32.mrb[179].mxu0 }
 0x672   : > { %v12294_v33 = vadd.f32 %v7610_v11, %v12197_v24  ;;  %v7613_v31 = vadd.f32 %v7612_v14, %v7611_v50  ;;  %v7702_v5 = vpop.f32.mrb[244].mxu1 }
 0x673   : > { %v7703_v44 = vpop.f32.mrb[245].mxu1 }
 0x674   : > { %v12300_v43 = vadd.f32 %v7613_v31, %v12199_v15  ;;  %v7704_v49 = vadd.f32 %v7703_v44, %v7702_v5  ;;  %v7705_v38 = vpop.f32.mrb[246].mxu1 }
 0x675   : > { %v7706_v46 = vpop.f32.mrb[247].mxu1 }
 0x676   : > { %v7614_v28 = vpop.f32.mrb[180].mxu0  ;;  %v7707_v17 = vadd.f32 %v7706_v46, %v7705_v38  ;;  %v12303_v24 = vadd.f32 %v12218_v2, %v7704_v49 }
 0x677   : > { %v7615_v40 = vpop.f32.mrb[181].mxu0 }
 0x678   : > { %v7616_v27 = vadd.f32 %v7615_v40, %v7614_v28  ;;  %v7617_v30 = vpop.f32.mrb[182].mxu0  ;;  %v12309_v15 = vadd.f32 %v12222_v60, %v7707_v17 }
 0x679   : > { %v7618_v23 = vpop.f32.mrb[183].mxu0 }
 0x67a   : > { %v12306_v20 = vadd.f32 %v7616_v27, %v12213_v29  ;;  %v7619_v45 = vadd.f32 %v7618_v23, %v7617_v30  ;;  %v7708_v62 = vpop.f32.mrb[248].mxu1 }
 0x67b   : > { %v7709_v32 = vpop.f32.mrb[249].mxu1 }
 0x67c   : > { %v12312_v19 = vadd.f32 %v7619_v45, %v12215_v34  ;;  %v7710_v41 = vadd.f32 %v7709_v32, %v7708_v62  ;;  %v7711_v36 = vpop.f32.mrb[250].mxu1 }
 0x67d   : > { %v7712_v10 = vpop.f32.mrb[251].mxu1 }
 0x67e   : > { %v7620_v12 = vpop.f32.mrb[184].mxu0  ;;  %v7713_v7 = vadd.f32 %v7712_v10, %v7711_v36  ;;  %v12315_v29 = vadd.f32 %v12229_v58, %v7710_v41 }
 0x67f   : > { %v7621_v1 = vpop.f32.mrb[185].mxu0 }
 0x680   : > { %v7622_v2 = vadd.f32 %v7621_v1, %v7620_v12  ;;  %v7623_v59 = vpop.f32.mrb[186].mxu0  ;;  %v12321_v34 = vadd.f32 %v12232_v37, %v7713_v7 }
 0x681   : > { %v7624_v3 = vpop.f32.mrb[187].mxu0 }
 0x682   : > { %v12318_v60 = vadd.f32 %v7622_v2, %v12224_v39  ;;  %v7625_v26 = vadd.f32 %v7624_v3, %v7623_v59  ;;  %v7714_v50 = vpop.f32.mrb[252].mxu1 }
 0x683   : > { %v7715_v16 = vpop.f32.mrb[253].mxu1 }
 0x684   : > { %v12324_v11 = vadd.f32 %v7625_v26, %v12226_v57  ;;  %v7716_v31 = vadd.f32 %v7715_v16, %v7714_v50  ;;  %v7717_v5 = vpop.f32.mrb[254].mxu1 }
 0x685   : > { %v7718_v28 = vpop.f32.mrb[255].mxu1 }
 0x686   : > { %v7626_v14 = vpop.f32.mrb[188].mxu0  ;;  %v7719_v38 = vadd.f32 %v7718_v28, %v7717_v5  ;;  %v12327_v39 = vadd.f32 %v12239_v35, %v7716_v31 }
 0x687   : > { %v7627_v44 = vpop.f32.mrb[189].mxu0 }
 0x688   : > { %v7628_v58 = vadd.f32 %v7627_v44, %v7626_v14  ;;  %v7629_v49 = vpop.f32.mrb[190].mxu0  ;;  %v12333_v57 = vadd.f32 %v12242_v53, %v7719_v38 }
 0x689   : > { %v7630_v40 = vpop.f32.mrb[191].mxu0 }
 0x68a   : > { %v12330_v37 = vadd.f32 %v7628_v58, %v12234_v22  ;;  %v7631_v46 = vadd.f32 %v7630_v40, %v7629_v49  ;;  %v7720_v30 = vpop.f32.mrb[0].mxu1 }
 0x68b   : > { %v7721_v17 = vpop.f32.mrb[1].mxu1 }
 0x68c   : > { %v12336_v27 = vadd.f32 %v7631_v46, %v12236_v21  ;;  %v7722_v45 = vadd.f32 %v7721_v17, %v7720_v30  ;;  %v7723_v62 = vpop.f32.mrb[2].mxu1 }
 0x68d   : > { %v7724_v12 = vpop.f32.mrb[3].mxu1 }
 0x68e   : > { %v7632_v23 = vpop.f32.mrb[192].mxu0  ;;  %v7725_v36 = vadd.f32 %v7724_v12, %v7723_v62  ;;  %v12339_v22 = vadd.f32 %v12249_v51, %v7722_v45 }
 0x68f   : > { %v7633_v32 = vpop.f32.mrb[193].mxu0 }
 0x690   : > { %v7634_v35 = vadd.f32 %v7633_v32, %v7632_v23  ;;  %v7635_v41 = vpop.f32.mrb[194].mxu0  ;;  %v12345_v21 = vadd.f32 %v12252_v25, %v7725_v36 }
 0x691   : > { %v7636_v1 = vpop.f32.mrb[195].mxu0 }
 0x692   : > { %v12342_v53 = vadd.f32 %v7634_v35, %v12244_v55  ;;  %v7637_v10 = vadd.f32 %v7636_v1, %v7635_v41  ;;  %v7726_v59 = vpop.f32.mrb[4].mxu1 }
 0x693   : > { %v7727_v7 = vpop.f32.mrb[5].mxu1 }
 0x694   : > { %v12348_v2 = vadd.f32 %v7637_v10, %v12246_v9  ;;  %v7728_v3 = vadd.f32 %v7727_v7, %v7726_v59  ;;  %v7729_v26 = vpop.f32.mrb[6].mxu1 }
 0x695   : > { %v7730_v50 = vpop.f32.mrb[7].mxu1 }
 0x696   : > { %v7731_v16 = vadd.f32 %v7730_v50, %v7729_v26  ;;  %v12351_v51 = vadd.f32 %v12258_v47, %v7728_v3 }
 0x698   : > { %v12354_v14 = vadd.f32 %v12264_v48, %v7731_v16 }
 0x69a   : > { %v7732_v55 = vpop.f32.mrb[8].mxu1 }
 0x69b   : > { %v7733_v31 = vpop.f32.mrb[9].mxu1 }
 0x69c   : > { %v7734_v5 = vadd.f32 %v7733_v31, %v7732_v55  ;;  %v7735_v25 = vpop.f32.mrb[10].mxu1 }
 0x69d   : > { %v7736_v44 = vpop.f32.mrb[11].mxu1 }
 0x69e   : > { %v7737_v28 = vadd.f32 %v7736_v44, %v7735_v25  ;;  %v12357_v9 = vadd.f32 %v12270_v63, %v7734_v5 }
 0x6a0   : > { %v12360_v58 = vadd.f32 %v12276_v4, %v7737_v28 }
 0x6a2   : > { %v7738_v49 = vpop.f32.mrb[12].mxu1 }
 0x6a3   : > { %v7739_v38 = vpop.f32.mrb[13].mxu1 }
 0x6a4   : > { %v7740_v40 = vadd.f32 %v7739_v38, %v7738_v49  ;;  %v7741_v47 = vpop.f32.mrb[14].mxu1 }
 0x6a5   : > { %v7742_v46 = vpop.f32.mrb[15].mxu1 }
 0x6a6   : > { %v7743_v30 = vadd.f32 %v7742_v46, %v7741_v47  ;;  %v12363_v48 = vadd.f32 %v12282_v52, %v7740_v40 }
 0x6a8   : > { %v12366_v17 = vadd.f32 %v12288_v42, %v7743_v30 }
 0x6aa   : > { %v7744_v23 = vpop.f32.mrb[16].mxu1 }
 0x6ab   : > { %v7745_v45 = vpop.f32.mrb[17].mxu1 }
 0x6ac   : > { %v7746_v62 = vadd.f32 %v7745_v45, %v7744_v23  ;;  %v7747_v63 = vpop.f32.mrb[18].mxu1 }
 0x6ad   : > { %v7748_v32 = vpop.f32.mrb[19].mxu1 }
 0x6ae   : > { %v7749_v12 = vadd.f32 %v7748_v32, %v7747_v63  ;;  %v12369_v4 = vadd.f32 %v12294_v33, %v7746_v62 }
 0x6b0   : > { %v12372_v35 = vadd.f32 %v12300_v43, %v7749_v12 }
 0x6b2   : > { %v7750_v41 = vpop.f32.mrb[20].mxu1 }
 0x6b3   : > { %v7751_v36 = vpop.f32.mrb[21].mxu1 }
 0x6b4   : > { %v7752_v1 = vadd.f32 %v7751_v36, %v7750_v41  ;;  %v7753_v52 = vpop.f32.mrb[22].mxu1 }
 0x6b5   : > { %v7754_v10 = vpop.f32.mrb[23].mxu1 }
 0x6b6   : > { %v7755_v59 = vadd.f32 %v7754_v10, %v7753_v52  ;;  %v12375_v42 = vadd.f32 %v12306_v20, %v7752_v1 }
 0x6b8   : > { %v12378_v7 = vadd.f32 %v12312_v19, %v7755_v59 }
 0x6ba   : > { %v7756_v3 = vpop.f32.mrb[24].mxu1 }
 0x6bb   : > { %v7757_v26 = vpop.f32.mrb[25].mxu1 }
 0x6bc   : > { %v7758_v50 = vadd.f32 %v7757_v26, %v7756_v3  ;;  %v7759_v33 = vpop.f32.mrb[26].mxu1 }
 0x6bd   : > { %v7760_v16 = vpop.f32.mrb[27].mxu1 }
 0x6be   : > { %v7761_v55 = vadd.f32 %v7760_v16, %v7759_v33  ;;  %v12381_v43 = vadd.f32 %v12318_v60, %v7758_v50 }
 0x6c0   : > { %v12384_v31 = vadd.f32 %v12324_v11, %v7761_v55 }
 0x6c2   : > { %v7762_v5 = vpop.f32.mrb[28].mxu1 }
 0x6c3   : > { %v7763_v25 = vpop.f32.mrb[29].mxu1 }
 0x6c4   : > { %v7764_v44 = vadd.f32 %v7763_v25, %v7762_v5  ;;  %v7765_v20 = vpop.f32.mrb[30].mxu1 }
 0x6c5   : > { %v7766_v28 = vpop.f32.mrb[31].mxu1 }
 0x6c6   : > { %v7767_v49 = vadd.f32 %v7766_v28, %v7765_v20  ;;  %v12387_v19 = vadd.f32 %v12330_v37, %v7764_v44 }
 0x6c8   : > { %v12390_v38 = vadd.f32 %v12336_v27, %v7767_v49 }
 0x6ca   : > { %v7768_v40 = vpop.f32.mrb[32].mxu1 }
 0x6cb   : > { %v7769_v47 = vpop.f32.mrb[33].mxu1 }
 0x6cc   : > { %v7770_v46 = vadd.f32 %v7769_v47, %v7768_v40  ;;  %v7771_v60 = vpop.f32.mrb[34].mxu1 }
 0x6cd   : > { %v7772_v30 = vpop.f32.mrb[35].mxu1 }
 0x6ce   : > { %v7773_v23 = vadd.f32 %v7772_v30, %v7771_v60  ;;  %v12393_v11 = vadd.f32 %v12342_v53, %v7770_v46 }
 0x6d0   : > { %v12396_v45 = vadd.f32 %v12348_v2, %v7773_v23 }
 0x6d6   : > { %v8143_v62 = vpop.f32.mrb[100].mxu0 }
 0x6d7   : > { %v12399_v63 = vadd.f32 %v12267_v61, %v8143_v62  ;;  %v5464_v37 = vpop.f32.mrb[101].mxu0 }
 0x6d8   : > { %v12402_v27 = vadd.f32 %v12255_v18, %v5464_v37  ;;  %v8144_v32 = vpop.f32.mrb[102].mxu0 }
 0x6d9   : > { %v12405_v12 = vadd.f32 %v12273_v8, %v8144_v32  ;;  %v5467_v41 = vpop.f32.mrb[103].mxu0  ;;  %v5664_v18 = vmul.f32 %v12399_v63, %v12399_v63 }
 0x6da   : > { %v12408_v36 = vadd.f32 %v12261_v0, %v5467_v41  ;;  %v5662_v53 = vmul.f32 %v12402_v27, %v12402_v27 }
 0x6db   : > { %v5665_v59 = vmul.f32 %v12405_v12, %v12405_v12 }
 0x6dc   : > { %v5625_v2 = vadd.f32 %v12408_v36, %v12402_v27  ;;  %v5663_v61 = vmul.f32 %v12408_v36, %v12408_v36 }
 0x6de   : > { %v5626_v1 = vadd.f32 %v12399_v63, %v5625_v2  ;;  %v5694_v8 = vadd.f32 %v5663_v61, %v5662_v53  ;;  %v8147_v52 = vpop.f32.mrb[104].mxu0 }
 0x6df   : > { %v12420_v10 = vadd.f32 %v12291_v56, %v8147_v52  ;;  %v5480_v0 = vpop.f32.mrb[105].mxu0 }
 0x6e0   : > { %v5695_v3 = vadd.f32 %v5694_v8, %v5664_v18  ;;  %v12425_v26 = vadd.f32 %v12279_v6, %v5480_v0  ;;  %v5627_v50 = vadd.f32 %v12405_v12, %v5626_v1  ;;  %v8148_v33 = vpop.f32.mrb[106].mxu0 }
 0x6e1   : > { %v12429_v16 = vadd.f32 %v12297_v13, %v8148_v33  ;;  %v5483_v55 = vpop.f32.mrb[107].mxu0  ;;  %v5668_v13 = vmul.f32 %v12420_v10, %v12420_v10 }
 0x6e2   : > { %v5628_v5 = vadd.f32 %v12425_v26, %v5627_v50  ;;  %v5666_v56 = vmul.f32 %v12425_v26, %v12425_v26  ;;  %v5696_v25 = vadd.f32 %v5695_v3, %v5665_v59  ;;  %v12435_v44 = vadd.f32 %v12285_v54, %v5483_v55 }
 0x6e3   : > { %v5669_v54 = vmul.f32 %v12429_v16, %v12429_v16 }
 0x6e4   : > { %v5697_v20 = vadd.f32 %v5696_v25, %v5666_v56  ;;  %v5629_v6 = vadd.f32 %v12435_v44, %v5628_v5  ;;  %v5667_v28 = vmul.f32 %v12435_v44, %v12435_v44 }
 0x6e6   : > { %v5630_v49 = vadd.f32 %v12420_v10, %v5629_v6  ;;  %v5698_v40 = vadd.f32 %v5697_v20, %v5667_v28  ;;  %v8151_v47 = vpop.f32.mrb[108].mxu0 }
 0x6e7   : > { %v12444_v46 = vadd.f32 %v12315_v29, %v8151_v47  ;;  %v5496_v60 = vpop.f32.mrb[109].mxu0 }
 0x6e8   : > { %v5699_v30 = vadd.f32 %v5698_v40, %v5668_v13  ;;  %v12449_v23 = vadd.f32 %v12303_v24, %v5496_v60  ;;  %v5631_v62 = vadd.f32 %v12429_v16, %v5630_v49  ;;  %v8152_v37 = vpop.f32.mrb[110].mxu0 }
 0x6e9   : > { %v12453_v32 = vadd.f32 %v12321_v34, %v8152_v37  ;;  %v5499_v41 = vpop.f32.mrb[111].mxu0  ;;  %v5672_v34 = vmul.f32 %v12444_v46, %v12444_v46 }
 0x6ea   : > { %v5632_v53 = vadd.f32 %v12449_v23, %v5631_v62  ;;  %v5670_v29 = vmul.f32 %v12449_v23, %v12449_v23  ;;  %v5700_v2 = vadd.f32 %v5699_v30, %v5669_v54  ;;  %v12459_v61 = vadd.f32 %v12309_v15, %v5499_v41 }
 0x6eb   : > { %v5673_v15 = vmul.f32 %v12453_v32, %v12453_v32 }
 0x6ec   : > { %v5701_v18 = vadd.f32 %v5700_v2, %v5670_v29  ;;  %v5633_v24 = vadd.f32 %v12459_v61, %v5632_v53  ;;  %v5671_v1 = vmul.f32 %v12459_v61, %v12459_v61 }
 0x6ee   : > { %v5634_v8 = vadd.f32 %v12444_v46, %v5633_v24  ;;  %v5702_v52 = vadd.f32 %v5701_v18, %v5671_v1  ;;  %v8155_v0 = vpop.f32.mrb[112].mxu0 }
 0x6ef   : > { %v12468_v59 = vadd.f32 %v12339_v22, %v8155_v0  ;;  %v5512_v3 = vpop.f32.mrb[113].mxu0 }
 0x6f0   : > { %v5703_v50 = vadd.f32 %v5702_v52, %v5672_v34  ;;  %v12473_v33 = vadd.f32 %v12327_v39, %v5512_v3  ;;  %v5635_v55 = vadd.f32 %v12453_v32, %v5634_v8  ;;  %v8156_v5 = vpop.f32.mrb[114].mxu0 }
 0x6f1   : > { %v12477_v56 = vadd.f32 %v12345_v21, %v8156_v5  ;;  %v5515_v25 = vpop.f32.mrb[115].mxu0  ;;  %v5676_v21 = vmul.f32 %v12468_v59, %v12468_v59 }
 0x6f2   : > { %v5636_v20 = vadd.f32 %v12473_v33, %v5635_v55  ;;  %v5674_v22 = vmul.f32 %v12473_v33, %v12473_v33  ;;  %v5704_v6 = vadd.f32 %v5703_v50, %v5673_v15  ;;  %v12483_v28 = vadd.f32 %v12333_v57, %v5515_v25 }
 0x6f3   : > { %v5677_v57 = vmul.f32 %v12477_v56, %v12477_v56 }
 0x6f4   : > { %v5705_v13 = vadd.f32 %v5704_v6, %v5674_v22  ;;  %v5637_v39 = vadd.f32 %v12483_v28, %v5636_v20  ;;  %v5675_v49 = vmul.f32 %v12483_v28, %v12483_v28 }
 0x6f6   : > { %v5638_v40 = vadd.f32 %v12468_v59, %v5637_v39  ;;  %v5706_v47 = vadd.f32 %v5705_v13, %v5675_v49  ;;  %v8159_v60 = vpop.f32.mrb[116].mxu0 }
 0x6f7   : > { %v12492_v54 = vadd.f32 %v12357_v9, %v8159_v60  ;;  %v5528_v30 = vpop.f32.mrb[117].mxu0 }
 0x6f8   : > { %v5707_v62 = vadd.f32 %v5706_v47, %v5676_v21  ;;  %v12497_v37 = vadd.f32 %v12351_v51, %v5528_v30  ;;  %v5639_v41 = vadd.f32 %v12477_v56, %v5638_v40  ;;  %v8160_v53 = vpop.f32.mrb[118].mxu0 }
 0x6f9   : > { %v12501_v29 = vadd.f32 %v12360_v58, %v8160_v53  ;;  %v5531_v2 = vpop.f32.mrb[119].mxu0  ;;  %v5680_v58 = vmul.f32 %v12492_v54, %v12492_v54 }
 0x6fa   : > { %v5640_v18 = vadd.f32 %v12497_v37, %v5639_v41  ;;  %v5678_v9 = vmul.f32 %v12497_v37, %v12497_v37  ;;  %v5708_v24 = vadd.f32 %v5707_v62, %v5677_v57  ;;  %v12507_v1 = vadd.f32 %v12354_v14, %v5531_v2 }
 0x6fb   : > { %v5681_v14 = vmul.f32 %v12501_v29, %v12501_v29 }
 0x6fc   : > { %v5709_v34 = vadd.f32 %v5708_v24, %v5678_v9  ;;  %v5641_v51 = vadd.f32 %v12507_v1, %v5640_v18  ;;  %v5679_v8 = vmul.f32 %v12507_v1, %v12507_v1 }
 0x6fe   : > { %v5642_v52 = vadd.f32 %v12492_v54, %v5641_v51  ;;  %v5710_v0 = vadd.f32 %v5709_v34, %v5679_v8  ;;  %v8163_v3 = vpop.f32.mrb[120].mxu0 }
 0x6ff   : > { %v12516_v15 = vadd.f32 %v12369_v4, %v8163_v3  ;;  %v5544_v50 = vpop.f32.mrb[121].mxu0 }
 0x700   : > { %v5711_v55 = vadd.f32 %v5710_v0, %v5680_v58  ;;  %v12521_v5 = vadd.f32 %v12363_v48, %v5544_v50  ;;  %v5643_v25 = vadd.f32 %v12501_v29, %v5642_v52  ;;  %v8164_v20 = vpop.f32.mrb[122].mxu0 }
 0x701   : > { %v12525_v22 = vadd.f32 %v12372_v35, %v8164_v20  ;;  %v5547_v6 = vpop.f32.mrb[123].mxu0  ;;  %v5684_v35 = vmul.f32 %v12516_v15, %v12516_v15 }
 0x702   : > { %v5644_v13 = vadd.f32 %v12521_v5, %v5643_v25  ;;  %v5682_v4 = vmul.f32 %v12521_v5, %v12521_v5  ;;  %v5712_v39 = vadd.f32 %v5711_v55, %v5681_v14  ;;  %v12531_v49 = vadd.f32 %v12366_v17, %v5547_v6 }
 0x703   : > { %v5685_v17 = vmul.f32 %v12525_v22, %v12525_v22 }
 0x704   : > { %v5713_v21 = vadd.f32 %v5712_v39, %v5682_v4  ;;  %v5645_v48 = vadd.f32 %v12531_v49, %v5644_v13  ;;  %v5683_v40 = vmul.f32 %v12531_v49, %v12531_v49 }
 0x706   : > { %v5646_v47 = vadd.f32 %v12516_v15, %v5645_v48  ;;  %v5714_v60 = vadd.f32 %v5713_v21, %v5683_v40  ;;  %v8167_v30 = vpop.f32.mrb[124].mxu0 }
 0x707   : > { %v12540_v57 = vadd.f32 %v12381_v43, %v8167_v30  ;;  %v5560_v62 = vpop.f32.mrb[125].mxu0 }
 0x708   : > { %v5715_v41 = vadd.f32 %v5714_v60, %v5684_v35  ;;  %v12545_v53 = vadd.f32 %v12375_v42, %v5560_v62  ;;  %v5647_v2 = vadd.f32 %v12525_v22, %v5646_v47  ;;  %v8168_v18 = vpop.f32.mrb[126].mxu0 }
 0x709   : > { %v12549_v9 = vadd.f32 %v12384_v31, %v8168_v18  ;;  %v5563_v24 = vpop.f32.mrb[127].mxu0  ;;  %v5688_v31 = vmul.f32 %v12540_v57, %v12540_v57 }
 0x70a   : > { %v5648_v34 = vadd.f32 %v12545_v53, %v5647_v2  ;;  %v5686_v43 = vmul.f32 %v12545_v53, %v12545_v53  ;;  %v5716_v51 = vadd.f32 %v5715_v41, %v5685_v17  ;;  %v12555_v8 = vadd.f32 %v12378_v7, %v5563_v24 }
 0x70b   : > { %v5689_v7 = vmul.f32 %v12549_v9, %v12549_v9 }
 0x70c   : > { %v5717_v58 = vadd.f32 %v5716_v51, %v5686_v43  ;;  %v5649_v42 = vadd.f32 %v12555_v8, %v5648_v34  ;;  %v5687_v52 = vmul.f32 %v12555_v8, %v12555_v8 }
 0x70e   : > { %v5650_v0 = vadd.f32 %v12540_v57, %v5649_v42  ;;  %v5718_v3 = vadd.f32 %v5717_v58, %v5687_v52  ;;  %v8171_v50 = vpop.f32.mrb[128].mxu0 }
 0x70f   : > { %v12564_v14 = vadd.f32 %v12393_v11, %v8171_v50  ;;  %v5576_v55 = vpop.f32.mrb[129].mxu0 }
 0x710   : > { %v5719_v25 = vadd.f32 %v5718_v3, %v5688_v31  ;;  %v12569_v20 = vadd.f32 %v12387_v19, %v5576_v55  ;;  %v5651_v6 = vadd.f32 %v12549_v9, %v5650_v0  ;;  %v8172_v13 = vpop.f32.mrb[130].mxu0 }
 0x711   : > { %v12573_v4 = vadd.f32 %v12396_v45, %v8172_v13  ;;  %v5579_v39 = vpop.f32.mrb[131].mxu0  ;;  %v5692_v45 = vmul.f32 %v12564_v14, %v12564_v14 }
 0x712   : > { %v5652_v21 = vadd.f32 %v12569_v20, %v5651_v6  ;;  %v5690_v11 = vmul.f32 %v12569_v20, %v12569_v20  ;;  %v5720_v48 = vadd.f32 %v5719_v25, %v5689_v7  ;;  %v12579_v40 = vadd.f32 %v12390_v38, %v5579_v39 }
 0x713   : > { %v5693_v62 = vmul.f32 %v12573_v4, %v12573_v4 }
 0x714   : > { %v5721_v35 = vadd.f32 %v5720_v48, %v5690_v11  ;;  %v5653_v19 = vadd.f32 %v12579_v40, %v5652_v21  ;;  %v5691_v47 = vmul.f32 %v12579_v40, %v12579_v40  ;;  %v6204_v21 = vld [vmem:[%s12759_s7] ss:$0 sm:$0xff] }
 0x716   : > { %v5654_v60 = vadd.f32 %v12564_v14, %v5653_v19  ;;  %v5722_v30 = vadd.f32 %v5721_v35, %v5691_v47  ;;  %v13498_v19 = vld [vmem:[#allocation33_spill] sm:$0xff] }
 0x718   : > { %v5655_v17 = vadd.f32 %v12573_v4, %v5654_v60  ;;  %v5723_v41 = vadd.f32 %v5722_v30, %v5692_v45  ;;  %v5624_v45 = vld [vmem:[%s13499_s11] sm:$0x1] }
 0x71a   : > { %v5656_v38 = vrot.slane %v5655_v17, 4  ;;  %v5724_v2 = vadd.f32 %v5723_v41, %v5693_v62 }
 0x71c   : > { %v5657_v18 = vadd.f32 %v5656_v38, %v5655_v17  ;;  %v5725_v24 = vrot.slane %v5724_v2, 4 }
 0x71e   : > { %v5658_v34 = vrot.slane %v5657_v18, 2  ;;  %v5726_v43 = vadd.f32 %v5725_v24, %v5724_v2 }
 0x720   : > { %v5659_v51 = vadd.f32 %v5658_v34, %v5657_v18  ;;  %v5727_v58 = vrot.slane %v5726_v43, 2 }
 0x722   : > { %v5660_v42 = vrot.slane %v5659_v51, 1  ;;  %v5728_v52 = vadd.f32 %v5727_v58, %v5726_v43 }
 0x724   : > { %v5729_v31 = vrot.slane %v5728_v52, 1  ;;  %v5661_v0 = vadd.f32 %v5660_v42, %v5659_v51 }
 0x726   : > { %v5730_v3 = vadd.f32 %v5729_v31, %v5728_v52 }
 0x728   : > { %v5731_v50 = vsel %vm13497_vm11, %v5661_v0, %v5730_v3 }
 0x729   : > { %8206 = vmatmul.mubr.f32.vlgmr.msra.gmra.mrb[162].mxu1 %v5731_v50 }
 0x7fc   : > { %v5798_v55 = vpop.f32.mrb[162].mxu1 }
 0x7fd   : > { %v5802_v7 = vmul.f32 %v5798_v55, %v5798_v55  ;;  %v8207_v25 = vpop.f32.mrb[163].mxu1 }
 0x7ff   : > { %v5804_v6 = vrot.slane %v5802_v7, 7 }
 0x801   : > { %v5806_v13 = vsub.f32 %v5798_v55, %v5804_v6 }
 0x803   : > { %v5807_v39 = vadd.f32 1e-05, %v5806_v13 }
 0x805   : > { %8868 = vrsqrt.f32 %v5807_v39 }
 0x80f   : > { %v8869_v11 = vpop.eup %8868 }
 0x810   : > { %v5815_v48 = vmul.f32 %v8869_v11, %v6204_v21 }
 0x812   : > { %v5817_v35 = vrot.slane %v5815_v48, 1  ;;  %v5824_v47 = vrot.slane %v5815_v48, %v13498_v19 }
 0x814   : > { %v5819_v60 = vmul.f32 %v5817_v35, %v5798_v55  ;;  %v5825_v30 = vmul.f32 %v12402_v27, %v5824_v47  ;;  %v5826_v62 = vmul.f32 %v12408_v36, %v5824_v47  ;;  %v5827_v17 = vmul.f32 %v12399_v63, %v5824_v47 }
 0x815   : > { %v5828_v41 = vmul.f32 %v12405_v12, %v5824_v47  ;;  %v5829_v38 = vmul.f32 %v12425_v26, %v5824_v47  ;;  %v5830_v2 = vmul.f32 %v12435_v44, %v5824_v47  ;;  %v5831_v18 = vmul.f32 %v12420_v10, %v5824_v47  ;;  %v13500_v26 = vld [vmem:[#allocation34_spill] sm:$0xff] }
 0x816   : > { %v5820_v24 = vsub.f32 %v5624_v45, %v5819_v60  ;;  %v5832_v34 = vmul.f32 %v12429_v16, %v5824_v47  ;;  %v5833_v43 = vmul.f32 %v12449_v23, %v5824_v47  ;;  %v5834_v51 = vmul.f32 %v12459_v61, %v5824_v47 }
 0x817   : > { %v5835_v27 = vmul.f32 %v12444_v46, %v5824_v47  ;;  %v5836_v36 = vmul.f32 %v12453_v32, %v5824_v47  ;;  %v5837_v63 = vmul.f32 %v12473_v33, %v5824_v47  ;;  %v5838_v12 = vmul.f32 %v12483_v28, %v5824_v47 }
 0x818   : > { %v12613_v58 = vrot.slane %v5820_v24, %v13500_v26  ;;  %v5839_v10 = vmul.f32 %v12468_v59, %v5824_v47  ;;  %v5840_v44 = vmul.f32 %v12477_v56, %v5824_v47  ;;  %v5841_v16 = vmul.f32 %v12497_v37, %v5824_v47 }
 0x819   : > { %v5842_v23 = vmul.f32 %v12507_v1, %v5824_v47  ;;  %v5843_v61 = vmul.f32 %v12492_v54, %v5824_v47  ;;  %v5844_v46 = vmul.f32 %v12501_v29, %v5824_v47  ;;  %v5845_v32 = vmul.f32 %v12521_v5, %v5824_v47 }
 0x81a   : > { %v5846_v33 = vmul.f32 %v12531_v49, %v5824_v47  ;;  %v5847_v28 = vmul.f32 %v12516_v15, %v5824_v47  ;;  %v5848_v42 = vmul.f32 %v12525_v22, %v5824_v47  ;;  %v5849_v59 = vmul.f32 %v12545_v53, %v5824_v47 }
 0x81b   : > { %v5850_v56 = vmul.f32 %v12555_v8, %v5824_v47  ;;  %v5851_v37 = vmul.f32 %v12540_v57, %v5824_v47  ;;  %v5852_v1 = vmul.f32 %v12549_v9, %v5824_v47  ;;  %v5853_v54 = vmul.f32 %v12569_v20, %v5824_v47 }
 0x81c   : > { %v5854_v29 = vmul.f32 %v12579_v40, %v5824_v47  ;;  %v5855_v5 = vmul.f32 %v12564_v14, %v5824_v47  ;;  %v5856_v49 = vmul.f32 %v12573_v4, %v5824_v47  ;;  %v5863_v15 = vadd.f32 %v12613_v58, %v5825_v30 }
 0x81d   : > { %v5864_v22 = vadd.f32 %v12613_v58, %v5826_v62  ;;  %v5865_v53 = vadd.f32 %v12613_v58, %v5827_v17  ;;  %v5866_v8 = vadd.f32 %v12613_v58, %v5828_v41  ;;  %v5867_v57 = vadd.f32 %v12613_v58, %v5829_v38 }
 0x81e   : > { %v5868_v9 = vadd.f32 %v12613_v58, %v5830_v2  ;;  %v5869_v20 = vadd.f32 %v12613_v58, %v5831_v18  ;;  %v5870_v40 = vadd.f32 %v12613_v58, %v5832_v34  ;;  %v5871_v14 = vadd.f32 %v12613_v58, %v5833_v43  ;;  %5895 = vst [vmem:[%s12644_s19] sm:$0xff] %v5863_v15 }
 0x81f   : > { %v5872_v4 = vadd.f32 %v12613_v58, %v5834_v51  ;;  %v5873_v52 = vadd.f32 %v12613_v58, %v5835_v27  ;;  %v5874_v31 = vadd.f32 %v12613_v58, %v5836_v36  ;;  %v5875_v0 = vadd.f32 %v12613_v58, %v5837_v63  ;;  %5896 = vst [vmem:[%s12644_s19 + $0x8] sm:$0xff] %v5864_v22 }
 0x820   : > { %5897 = vst [vmem:[%s12644_s19 + $0x10] sm:$0xff] %v5865_v53  ;;  %5898 = vst [vmem:[%s12644_s19 + $0x18] sm:$0xff] %v5866_v8  ;;  %v5876_v3 = vadd.f32 %v12613_v58, %v5838_v12  ;;  %v5877_v50 = vadd.f32 %v12613_v58, %v5839_v10  ;;  %v5878_v55 = vadd.f32 %v12613_v58, %v5840_v44 }
 0x821   : > { %5899 = vst [vmem:[%s12644_s19 + $0x20] sm:$0xff] %v5867_v57  ;;  %v5879_v7 = vadd.f32 %v12613_v58, %v5841_v16  ;;  %5900 = vst [vmem:[%s12644_s19 + $0x28] sm:$0xff] %v5868_v9  ;;  %v5880_v25 = vadd.f32 %v12613_v58, %v5842_v23  ;;  %v5881_v6 = vadd.f32 %v12613_v58, %v5843_v61 }
 0x822   : > { %5901 = vst [vmem:[%s12644_s19 + $0x30] sm:$0xff] %v5869_v20  ;;  %5902 = vst [vmem:[%s12644_s19 + $0x38] sm:$0xff] %v5870_v40  ;;  %v5882_v13 = vadd.f32 %v12613_v58, %v5844_v46  ;;  %v5883_v39 = vadd.f32 %v12613_v58, %v5845_v32  ;;  %v5884_v21 = vadd.f32 %v12613_v58, %v5846_v33 }
 0x823   : > { %5903 = vst [vmem:[%s12644_s19 + $0x40] sm:$0xff] %v5871_v14  ;;  %5904 = vst [vmem:[%s12644_s19 + $0x48] sm:$0xff] %v5872_v4  ;;  %v5885_v11 = vadd.f32 %v12613_v58, %v5847_v28  ;;  %v5886_v48 = vadd.f32 %v12613_v58, %v5848_v42  ;;  %v5887_v35 = vadd.f32 %v12613_v58, %v5849_v59 }
 0x824   : > { %5905 = vst [vmem:[%s12644_s19 + $0x50] sm:$0xff] %v5873_v52  ;;  %5906 = vst [vmem:[%s12644_s19 + $0x58] sm:$0xff] %v5874_v31  ;;  %v5888_v19 = vadd.f32 %v12613_v58, %v5850_v56  ;;  %v5889_v47 = vadd.f32 %v12613_v58, %v5851_v37  ;;  %v5890_v45 = vadd.f32 %v12613_v58, %v5852_v1 }
 0x825   : > { %5907 = vst [vmem:[%s12644_s19 + $0x60] sm:$0xff] %v5875_v0  ;;  %5908 = vst [vmem:[%s12644_s19 + $0x68] sm:$0xff] %v5876_v3  ;;  %v5891_v60 = vadd.f32 %v12613_v58, %v5853_v54  ;;  %v5892_v30 = vadd.f32 %v12613_v58, %v5854_v29  ;;  %v5893_v62 = vadd.f32 %v12613_v58, %v5855_v5 }
 0x826   : > { %5909 = vst [vmem:[%s12644_s19 + $0x70] sm:$0xff] %v5877_v50  ;;  %5910 = vst [vmem:[%s12644_s19 + $0x78] sm:$0xff] %v5878_v55  ;;  %v5894_v17 = vadd.f32 %v12613_v58, %v5856_v49 }
 0x827   : > { %5911 = vst [vmem:[%s12644_s19 + $0x80] sm:$0xff] %v5879_v7  ;;  %5912 = vst [vmem:[%s12644_s19 + $0x88] sm:$0xff] %v5880_v25 }
 0x828   : > { %5913 = vst [vmem:[%s12644_s19 + $0x90] sm:$0xff] %v5881_v6  ;;  %5914 = vst [vmem:[%s12644_s19 + $0x98] sm:$0xff] %v5882_v13 }
 0x829   : > { %5915 = vst [vmem:[%s12644_s19 + $0xa0] sm:$0xff] %v5883_v39  ;;  %5916 = vst [vmem:[%s12644_s19 + $0xa8] sm:$0xff] %v5884_v21 }
 0x82a   : > { %5917 = vst [vmem:[%s12644_s19 + $0xb0] sm:$0xff] %v5885_v11  ;;  %5918 = vst [vmem:[%s12644_s19 + $0xb8] sm:$0xff] %v5886_v48 }
 0x82b   : > { %5919 = vst [vmem:[%s12644_s19 + $0xc0] sm:$0xff] %v5887_v35  ;;  %5920 = vst [vmem:[%s12644_s19 + $0xc8] sm:$0xff] %v5888_v19 }
 0x82c   : > { %5921 = vst [vmem:[%s12644_s19 + $0xd0] sm:$0xff] %v5889_v47  ;;  %5922 = vst [vmem:[%s12644_s19 + $0xd8] sm:$0xff] %v5890_v45 }
 0x82d   : > { %5923 = vst [vmem:[%s12644_s19 + $0xe0] sm:$0xff] %v5891_v60  ;;  %5924 = vst [vmem:[%s12644_s19 + $0xe8] sm:$0xff] %v5892_v30 }
 0x82e   : > { %5925 = vst [vmem:[%s12644_s19 + $0xf0] sm:$0xff] %v5893_v62  ;;  %5926 = vst [vmem:[%s12644_s19 + $0xf8] sm:$0xff] %v5894_v17 }
 0x82f   : > { %9028 = shalt.err (!%p9025_p4)
}
 0x830   : > { %s9029_s27 = scalar_lea.hbm %s12692_s29, 4096  ;;  %s9033_s19 = scalar_lea.hbm %s13501_s22, 8192 }
 0x831   : > { %p9030_p9 = scmp.ne.s32.totalorder %s12692_s29, %s9029_s27  ;;  %p9034_p8 = scmp.lt.u32.totalorder %s12692_s29, %s13501_s22 }
 0x832   : > { %p9035_p13 = scmp.lt.u32.totalorder %s9033_s19, %s9029_s27  ;;  %p9037_p10 = scmp.lt.u32.totalorder %s9029_s27, %s12692_s29 }
 0x833   : > { %p9031_p0 = pnand %p9030_p9, %p9310_p5 }
 0x834   : > { %p9036_p6 = por %p9035_p13, %p9034_p8 }
 0x835   : > { %p9032_p11 = pneg %p9031_p0 }
 0x836   : > { %p9038_p3 = por %p9037_p10, %p9036_p6 }
 0x838   : > { %p9039_p7 = pnand %p9038_p3, %p9032_p11 }
 0x83a   : > { %9042 = shalt.err (!%p9039_p7)
}
 0x83b   : > { %s9105_s26 = smov 128   ;;  %s9106_s10 = smov 8  }
 0x83c   : > { %8614 = dma.vmem_to_hbm [thread:$0]  (%p9310_p5), %s12694_s21, 4096, %s12692_s29, %s5928_s30, %s9105_s26, %s9105_s26, %s9106_s10  }
 0x83d PF: > { %s13502_s12 = sld [smem:[#allocation16_spill]]  ;;  %s13503_s18 = sld [smem:[#allocation17_spill]] }
 0x83e   : > { %p13505_p2 = scmp.ge.s32.totalorder %s9089_s16, 2 }
 0x843   : > { %s5956_s28 = sand.u32 1, %s13502_s12   ;;  %p13504_p12 = scmp.ne.s32.totalorder %s13503_s18, 0 }
 0x844   : > { %s5957_s27 = scalar_lea.sflag [#allocation5], %s5956_s28 }
 0x845   : > { %p8631_p1 = pnand %p13505_p2, %p13504_p12 }
 0x847   : > { %9072 = dma.done.wait (!%p8631_p1), %s5957_s27, 4096  }
 0x848   : > { %9074 = vsyncadd (!%p8631_p1), %s5957_s27, 4294963200  ;;  %p25_p4 = scmp.ge.s32.totalorder %s9296_s8, 4   ;;  %s13506_s13 = smov %s9081_s14 }
 0x849   : > { %s13507_s14 = smov %s9085_s15  ;;  %s13508_s15 = smov %s9306_s20 }
 0x84a   : > { %s13509_s16 = smov %s9296_s8  ;;  %27 = sbr.rel (!%p25_p4) target bundleno = 10 (0xa), region = 121 }
 0x851   :  { %5962 = vsyncpa [#allocation4], 1 }
 0x852   :  { %5964 = vsyncpa [#allocation4 + $0x1], 1 }
 0x853   :  { %5965 = vsyncpa [#allocation7], 1 }
 0x854   :  { %5966 = vsyncpa [#allocation10], 1 }
 0x855   :  { %5967 = vsyncpa [#allocation5], 1 }
 0x856   :  { %5969 = vsyncpa [#allocation5 + $0x1], 1 }

</bundles_post_ra>
